<compile_context>
chip_gen: v7x
topology: tpu7x:2x2x1
jax: 0.10.0
libtpu: 0.0.40
codegen_flags: <defaults>
</compile_context>

<pallas_src>
import math
from functools import partial

import jax
import jax.numpy as jnp
from jax.experimental import pallas as pl
from jax.experimental.pallas import tpu as pltpu

BN_EPS = 1e-5        # torch.nn.BatchNorm1d default eps
LN_EPS = 1e-5        # torch.nn.LayerNorm default eps
LRELU_SLOPE = 0.01   # F.leaky_relu default negative_slope
LANE = 128           # TPU lane width
DEFAULT_TILE_M = 256  # batch tile (fits comfortably in v7x's 64 MiB VMEM)


def _round_up(x, m):
    return ((x + m - 1) // m) * m


def _leaky_relu(x):
    return jnp.where(x >= 0, x, LRELU_SLOPE * x)


def _layernorm(h, gamma, beta):
    m = jnp.mean(h, axis=-1, keepdims=True)
    v = jnp.mean((h - m) ** 2, axis=-1, keepdims=True)
    return (h - m) * jax.lax.rsqrt(v + LN_EPS) * gamma + beta


# ---------------------------------------------------------------------------
# Kernel: one batch tile per grid step.  BN stats are precomputed inputs.
# ---------------------------------------------------------------------------
def actor_kernel(obs_ref, mu_ref, inv_std_ref,
                 w1_ref, b1_ref, g1_ref, be1_ref,
                 w2_ref, b2_ref, g2_ref, be2_ref,
                 w3_ref, b3_ref,
                 out_ref):
    # --- BatchNorm1d normalize (stats over the full batch, affine = identity)
    x = (obs_ref[...] - mu_ref[...]) * inv_std_ref[...]            # f32

    # --- fc1 -> LayerNorm -> leaky_relu   (bf16 MXU inputs, f32 accumulate)
    h = jnp.dot(x.astype(jnp.bfloat16), w1_ref[...],
                preferred_element_type=jnp.float32) + b1_ref[...]
    h = _leaky_relu(_layernorm(h, g1_ref[...], be1_ref[...]))

    # --- fc2 -> LayerNorm -> leaky_relu
    h = jnp.dot(h.astype(jnp.bfloat16), w2_ref[...],
                preferred_element_type=jnp.float32) + b2_ref[...]
    h = _leaky_relu(_layernorm(h, g2_ref[...], be2_ref[...]))

    # --- fc3 (lane-padded to 128 outputs) -> tanh
    y = jnp.dot(h.astype(jnp.bfloat16), w3_ref[...],
                preferred_element_type=jnp.float32) + b3_ref[...]
    out_ref[...] = jnp.tanh(y).astype(out_ref.dtype)


# ---------------------------------------------------------------------------
# Wrapper
# ---------------------------------------------------------------------------
@partial(jax.jit, static_argnames=("tile_m",))
def _actor_forward_impl(obs, params, tile_m):
    B, S = obs.shape
    obs = obs.astype(jnp.float32)

    # BatchNorm1d training-mode statistics over the FULL (unpadded) batch.
    mu = jnp.mean(obs, axis=0, keepdims=True)
    var = jnp.mean(jnp.square(obs - mu), axis=0, keepdims=True)    # biased
    inv_std = jax.lax.rsqrt(var + BN_EPS)

    f1 = params["w1"].shape[1]
    f2 = params["w2"].shape[1]
    A = params["w3"].shape[1]

    # Lane-pad fc3 so the output store is a dense [tm, 128] slab.
    a_pad = _round_up(max(A, 1), LANE)
    w3p = jnp.zeros((f2, a_pad), jnp.bfloat16).at[:, :A].set(
        params["w3"].astype(jnp.bfloat16))
    b3p = jnp.zeros((1, a_pad), jnp.float32).at[:, :A].set(
        params["b3"].astype(jnp.float32))

    # Batch tiling: 256-row tiles for large B; clamp + pad for small B.
    tm = min(tile_m, _round_up(B, 8))
    b_pad = _round_up(B, tm)
    if b_pad != B:
        obs_p = jnp.zeros((b_pad, S), jnp.float32).at[:B].set(obs)
    else:
        obs_p = obs

    grid = (b_pad // tm,)

    def row_tile(i):        # obs / out: tile over batch
        return (i, 0)

    def whole(i):           # weights / biases / stats: same block every step
        return (0, 0)

    in_specs = [
        pl.BlockSpec((tm, S), row_tile),          # obs tile
        pl.BlockSpec((1, S), whole),              # mu
        pl.BlockSpec((1, S), whole),              # inv_std
        pl.BlockSpec((S, f1), whole),             # w1 (bf16)
        pl.BlockSpec((1, f1), whole),             # b1
        pl.BlockSpec((1, f1), whole),             # g1
        pl.BlockSpec((1, f1), whole),             # be1
        pl.BlockSpec((f1, f2), whole),            # w2 (bf16)
        pl.BlockSpec((1, f2), whole),             # b2
        pl.BlockSpec((1, f2), whole),             # g2
        pl.BlockSpec((1, f2), whole),             # be2
        pl.BlockSpec((f2, a_pad), whole),         # w3 padded (bf16)
        pl.BlockSpec((1, a_pad), whole),          # b3 padded
    ]

    out = pl.pallas_call(
        actor_kernel,
        out_shape=jax.ShapeDtypeStruct((b_pad, a_pad), jnp.float32),
        grid_spec=pltpu.PrefetchScalarGridSpec(
            num_scalar_prefetch=0,
            grid=grid,
            in_specs=in_specs,
            out_specs=pl.BlockSpec((tm, a_pad), row_tile),
        ),
        compiler_params=pltpu.CompilerParams(
            dimension_semantics=("parallel",),   # shard batch tiles across TCs
        ),
    )(obs_p, mu, inv_std,
      params["w1"].astype(jnp.bfloat16), params["b1"],
      params["g1"], params["be1"],
      params["w2"].astype(jnp.bfloat16), params["b2"],
      params["g2"], params["be2"],
      w3p, b3p)

    return out[:B, :A]


def actor_forward(obs, params, *, tile_m=DEFAULT_TILE_M):
    """obs: [B, state_size] with B >= 2; returns [B, action_size]."""
    if obs.ndim == 1 or obs.shape[0] < 2:
        # PyTorch BatchNorm1d raises for batch size 1 in training mode
        # ("Expected more than 1 value per channel"); mirror that here instead
        # of silently producing 1/sqrt(eps)-scaled activations.
        raise ValueError(
            "ActorNormLayers forward requires batch size >= 2 "
            "(BatchNorm1d in training mode).")
    return _actor_forward_impl(obs, params, tile_m)


# ---------------------------------------------------------------------------
# Pure-JAX reference (same bf16-operand / f32-accumulate matmul recipe).
# ---------------------------------------------------------------------------
def reference_forward(obs, params):
    obs = obs.astype(jnp.float32)
    mu = jnp.mean(obs, axis=0, keepdims=True)
    var = jnp.mean(jnp.square(obs - mu), axis=0, keepdims=True)
    x = (obs - mu) * jax.lax.rsqrt(var + BN_EPS)

    h = jnp.dot(x.astype(jnp.bfloat16), params["w1"].astype(jnp.bfloat16),
                preferred_element_type=jnp.float32) + params["b1"]
    h = _leaky_relu(_layernorm(h, params["g1"], params["be1"]))
    h = jnp.dot(h.astype(jnp.bfloat16), params["w2"].astype(jnp.bfloat16),
                preferred_element_type=jnp.float32) + params["b2"]
    h = _leaky_relu(_layernorm(h, params["g2"], params["be2"]))
    y = jnp.dot(h.astype(jnp.bfloat16), params["w3"].astype(jnp.bfloat16),
                preferred_element_type=jnp.float32) + params["b3"]
    return jnp.tanh(y)


# ---------------------------------------------------------------------------
# Parameter init mirroring the PyTorch module's shapes / ranges.
# Weights are stored transposed vs torch ([in, out]) so the kernel does x @ W,
# and in bf16 (MXU-native).  hidden_init uses weight.size()[0] == out_features.
# ---------------------------------------------------------------------------
def init_params(key, state_size, action_size, fc_units=(256, 256)):
    f1, f2 = fc_units
    ks = jax.random.split(key, 6)

    def u(k, shape, lim):
        return jax.random.uniform(k, shape, jnp.float32, -lim, lim)

    return {
        "w1": u(ks[0], (state_size, f1), 1.0 / math.sqrt(f1)).astype(jnp.bfloat16),
        "b1": u(ks[1], (1, f1), 1.0 / math.sqrt(state_size)),
        "g1": jnp.ones((1, f1), jnp.float32),
        "be1": jnp.zeros((1, f1), jnp.float32),
        "w2": u(ks[2], (f1, f2), 1.0 / math.sqrt(f2)).astype(jnp.bfloat16),
        "b2": u(ks[3], (1, f2), 1.0 / math.sqrt(f1)),
        "g2": jnp.ones((1, f2), jnp.float32),
        "be2": jnp.zeros((1, f2), jnp.float32),
        "w3": u(ks[4], (f2, action_size), 0.003).astype(jnp.bfloat16),
        "b3": u(ks[5], (1, action_size), 1.0 / math.sqrt(f2)),
    }


if __name__ == "__main__":
    STATE, ACTION, BATCH = 32, 8, 300   # 300 exercises padding + 2 batch tiles

    key = jax.random.PRNGKey(0)
    k_obs, k_params = jax.random.split(key)

    obs = jax.random.normal(k_obs, (BATCH, STATE), jnp.float32)
    params = init_params(k_params, STATE, ACTION)

    out = actor_forward(obs, params)
    jax.block_until_ready(out)

    ref = reference_forward(obs, params)

    assert out.shape == (BATCH, ACTION)
    assert bool(jnp.all(jnp.isfinite(out)))
    assert bool(jnp.all(jnp.abs(out) <= 1.0))            # tanh output range
    assert bool(jnp.allclose(out, ref, atol=2e-2, rtol=2e-2))

    # Small-batch path (single tile, padded to 8 rows) also works.
    out_small = actor_forward(obs[:4], params)
    jax.block_until_ready(out_small)
    assert out_small.shape == (4, ACTION)
    assert bool(jnp.all(jnp.isfinite(out_small)))

    print("KERNEL_OK")
</pallas_src>

<mosaic_0001>
module attributes {stable_mosaic.version = 11 : i64} {
  func.func @actor_kernel(%arg0: i32, %arg1: memref<256x32xf32, #tpu.memory_space<vmem>>, %arg2: memref<1x32xf32, #tpu.memory_space<vmem>>, %arg3: memref<1x32xf32, #tpu.memory_space<vmem>>, %arg4: memref<32x256xbf16, #tpu.memory_space<vmem>>, %arg5: memref<1x256xf32, #tpu.memory_space<vmem>>, %arg6: memref<1x256xf32, #tpu.memory_space<vmem>>, %arg7: memref<1x256xf32, #tpu.memory_space<vmem>>, %arg8: memref<256x256xbf16, #tpu.memory_space<vmem>>, %arg9: memref<1x256xf32, #tpu.memory_space<vmem>>, %arg10: memref<1x256xf32, #tpu.memory_space<vmem>>, %arg11: memref<1x256xf32, #tpu.memory_space<vmem>>, %arg12: memref<256x128xbf16, #tpu.memory_space<vmem>>, %arg13: memref<1x128xf32, #tpu.memory_space<vmem>>, %arg14: memref<256x128xf32, #tpu.memory_space<vmem>>) attributes {dimension_semantics = [#tpu.dimension_semantics<parallel>], iteration_bounds = array<i64: 2>, scalar_prefetch = 0 : i64, scratch_operands = 0 : i64, tpu.core_type = #tpu.core_type<tc>, window_params = [{transform_indices = @transform_0, window_bounds = array<i64: 256, 32>}, {pipeline_mode = #tpu.pipeline_mode<synchronous>, transform_indices = @transform_1, window_bounds = array<i64: 1, 32>}, {pipeline_mode = #tpu.pipeline_mode<synchronous>, transform_indices = @transform_2, window_bounds = array<i64: 1, 32>}, {pipeline_mode = #tpu.pipeline_mode<synchronous>, transform_indices = @transform_3, window_bounds = array<i64: 32, 256>}, {pipeline_mode = #tpu.pipeline_mode<synchronous>, transform_indices = @transform_4, window_bounds = array<i64: 1, 256>}, {pipeline_mode = #tpu.pipeline_mode<synchronous>, transform_indices = @transform_5, window_bounds = array<i64: 1, 256>}, {pipeline_mode = #tpu.pipeline_mode<synchronous>, transform_indices = @transform_6, window_bounds = array<i64: 1, 256>}, {pipeline_mode = #tpu.pipeline_mode<synchronous>, transform_indices = @transform_7, window_bounds = array<i64: 256, 256>}, {pipeline_mode = #tpu.pipeline_mode<synchronous>, transform_indices = @transform_8, window_bounds = array<i64: 1, 256>}, {pipeline_mode = #tpu.pipeline_mode<synchronous>, transform_indices = @transform_9, window_bounds = array<i64: 1, 256>}, {pipeline_mode = #tpu.pipeline_mode<synchronous>, transform_indices = @transform_10, window_bounds = array<i64: 1, 256>}, {pipeline_mode = #tpu.pipeline_mode<synchronous>, transform_indices = @transform_11, window_bounds = array<i64: 256, 128>}, {pipeline_mode = #tpu.pipeline_mode<synchronous>, transform_indices = @transform_12, window_bounds = array<i64: 1, 128>}, {transform_indices = @transform_13, window_bounds = array<i64: 256, 128>}]} {
    %c0 = arith.constant 0 : index
    %c0_0 = arith.constant 0 : index
    %0 = vector.load %arg1[%c0, %c0_0] : memref<256x32xf32, #tpu.memory_space<vmem>>, vector<256x32xf32>
    %c0_1 = arith.constant 0 : index
    %c0_2 = arith.constant 0 : index
    %1 = vector.load %arg2[%c0_1, %c0_2] : memref<1x32xf32, #tpu.memory_space<vmem>>, vector<1x32xf32>
    %2 = vector.broadcast %1 : vector<1x32xf32> to vector<256x32xf32>
    %3 = arith.subf %0, %2 : vector<256x32xf32>
    %c0_3 = arith.constant 0 : index
    %c0_4 = arith.constant 0 : index
    %4 = vector.load %arg3[%c0_3, %c0_4] : memref<1x32xf32, #tpu.memory_space<vmem>>, vector<1x32xf32>
    %5 = vector.broadcast %4 : vector<1x32xf32> to vector<256x32xf32>
    %6 = arith.mulf %3, %5 : vector<256x32xf32>
    %7 = arith.truncf %6 : vector<256x32xf32> to vector<256x32xbf16>
    %c0_5 = arith.constant 0 : index
    %c0_6 = arith.constant 0 : index
    %8 = vector.load %arg4[%c0_5, %c0_6] : memref<32x256xbf16, #tpu.memory_space<vmem>>, vector<32x256xbf16>
    %cst = arith.constant dense<0.000000e+00> : vector<256x256xf32>
    %9 = tpu.matmul %7, %8, %cst {dimension_numbers = #tpu.dot_dimension_numbers<[1], [0], [0], [1], [0, 0, 1, 1], [], []>} : vector<256x32xbf16>, vector<32x256xbf16>, vector<256x256xf32> -> vector<256x256xf32>
    %c0_7 = arith.constant 0 : index
    %c0_8 = arith.constant 0 : index
    %10 = vector.load %arg5[%c0_7, %c0_8] : memref<1x256xf32, #tpu.memory_space<vmem>>, vector<1x256xf32>
    %11 = vector.broadcast %10 : vector<1x256xf32> to vector<256x256xf32>
    %12 = arith.addf %9, %11 : vector<256x256xf32>
    %c0_9 = arith.constant 0 : index
    %c0_10 = arith.constant 0 : index
    %13 = vector.load %arg6[%c0_9, %c0_10] : memref<1x256xf32, #tpu.memory_space<vmem>>, vector<1x256xf32>
    %c0_11 = arith.constant 0 : index
    %c0_12 = arith.constant 0 : index
    %14 = vector.load %arg7[%c0_11, %c0_12] : memref<1x256xf32, #tpu.memory_space<vmem>>, vector<1x256xf32>
    %cst_13 = arith.constant dense<0.000000e+00> : vector<256xf32>
    %15 = vector.multi_reduction <add>, %12, %cst_13 [1] : vector<256x256xf32> to vector<256xf32>
    %16 = vector.shape_cast %15 : vector<256xf32> to vector<256x1xf32>
    %cst_14 = arith.constant 2.560000e+02 : f32
    %17 = vector.broadcast %cst_14 : f32 to vector<256x1xf32>
    %18 = arith.divf %16, %17 : vector<256x1xf32>
    %19 = vector.broadcast %18 : vector<256x1xf32> to vector<256x256xf32>
    %20 = arith.subf %12, %19 : vector<256x256xf32>
    %21 = arith.mulf %20, %20 : vector<256x256xf32>
    %cst_15 = arith.constant dense<0.000000e+00> : vector<256xf32>
    %22 = vector.multi_reduction <add>, %21, %cst_15 [1] : vector<256x256xf32> to vector<256xf32>
    %23 = vector.shape_cast %22 : vector<256xf32> to vector<256x1xf32>
    %cst_16 = arith.constant 2.560000e+02 : f32
    %24 = vector.broadcast %cst_16 : f32 to vector<256x1xf32>
    %25 = arith.divf %23, %24 : vector<256x1xf32>
    %26 = vector.broadcast %18 : vector<256x1xf32> to vector<256x256xf32>
    %27 = arith.subf %12, %26 : vector<256x256xf32>
    %cst_17 = arith.constant 9.99999974E-6 : f32
    %28 = vector.broadcast %cst_17 : f32 to vector<256x1xf32>
    %29 = arith.addf %25, %28 : vector<256x1xf32>
    %30 = math.rsqrt %29 : vector<256x1xf32>
    %31 = vector.broadcast %30 : vector<256x1xf32> to vector<256x256xf32>
    %32 = arith.mulf %27, %31 : vector<256x256xf32>
    %33 = vector.broadcast %13 : vector<1x256xf32> to vector<256x256xf32>
    %34 = arith.mulf %32, %33 : vector<256x256xf32>
    %35 = vector.broadcast %14 : vector<1x256xf32> to vector<256x256xf32>
    %36 = arith.addf %34, %35 : vector<256x256xf32>
    %cst_18 = arith.constant 0.000000e+00 : f32
    %37 = vector.broadcast %cst_18 : f32 to vector<256x256xf32>
    %38 = arith.cmpf oge, %36, %37 : vector<256x256xf32>
    %cst_19 = arith.constant 0.00999999977 : f32
    %39 = vector.broadcast %cst_19 : f32 to vector<256x256xf32>
    %40 = arith.mulf %39, %36 : vector<256x256xf32>
    %41 = arith.select %38, %36, %40 : vector<256x256xi1>, vector<256x256xf32>
    %42 = arith.truncf %41 : vector<256x256xf32> to vector<256x256xbf16>
    %c0_20 = arith.constant 0 : index
    %c0_21 = arith.constant 0 : index
    %43 = vector.load %arg8[%c0_20, %c0_21] : memref<256x256xbf16, #tpu.memory_space<vmem>>, vector<256x256xbf16>
    %cst_22 = arith.constant dense<0.000000e+00> : vector<256x256xf32>
    %44 = tpu.matmul %42, %43, %cst_22 {dimension_numbers = #tpu.dot_dimension_numbers<[1], [0], [0], [1], [0, 0, 1, 1], [], []>} : vector<256x256xbf16>, vector<256x256xbf16>, vector<256x256xf32> -> vector<256x256xf32>
    %c0_23 = arith.constant 0 : index
    %c0_24 = arith.constant 0 : index
    %45 = vector.load %arg9[%c0_23, %c0_24] : memref<1x256xf32, #tpu.memory_space<vmem>>, vector<1x256xf32>
    %46 = vector.broadcast %45 : vector<1x256xf32> to vector<256x256xf32>
    %47 = arith.addf %44, %46 : vector<256x256xf32>
    %c0_25 = arith.constant 0 : index
    %c0_26 = arith.constant 0 : index
    %48 = vector.load %arg10[%c0_25, %c0_26] : memref<1x256xf32, #tpu.memory_space<vmem>>, vector<1x256xf32>
    %c0_27 = arith.constant 0 : index
    %c0_28 = arith.constant 0 : index
    %49 = vector.load %arg11[%c0_27, %c0_28] : memref<1x256xf32, #tpu.memory_space<vmem>>, vector<1x256xf32>
    %cst_29 = arith.constant dense<0.000000e+00> : vector<256xf32>
    %50 = vector.multi_reduction <add>, %47, %cst_29 [1] : vector<256x256xf32> to vector<256xf32>
    %51 = vector.shape_cast %50 : vector<256xf32> to vector<256x1xf32>
    %cst_30 = arith.constant 2.560000e+02 : f32
    %52 = vector.broadcast %cst_30 : f32 to vector<256x1xf32>
    %53 = arith.divf %51, %52 : vector<256x1xf32>
    %54 = vector.broadcast %53 : vector<256x1xf32> to vector<256x256xf32>
    %55 = arith.subf %47, %54 : vector<256x256xf32>
    %56 = arith.mulf %55, %55 : vector<256x256xf32>
    %cst_31 = arith.constant dense<0.000000e+00> : vector<256xf32>
    %57 = vector.multi_reduction <add>, %56, %cst_31 [1] : vector<256x256xf32> to vector<256xf32>
    %58 = vector.shape_cast %57 : vector<256xf32> to vector<256x1xf32>
    %cst_32 = arith.constant 2.560000e+02 : f32
    %59 = vector.broadcast %cst_32 : f32 to vector<256x1xf32>
    %60 = arith.divf %58, %59 : vector<256x1xf32>
    %61 = vector.broadcast %53 : vector<256x1xf32> to vector<256x256xf32>
    %62 = arith.subf %47, %61 : vector<256x256xf32>
    %cst_33 = arith.constant 9.99999974E-6 : f32
    %63 = vector.broadcast %cst_33 : f32 to vector<256x1xf32>
    %64 = arith.addf %60, %63 : vector<256x1xf32>
    %65 = math.rsqrt %64 : vector<256x1xf32>
    %66 = vector.broadcast %65 : vector<256x1xf32> to vector<256x256xf32>
    %67 = arith.mulf %62, %66 : vector<256x256xf32>
    %68 = vector.broadcast %48 : vector<1x256xf32> to vector<256x256xf32>
    %69 = arith.mulf %67, %68 : vector<256x256xf32>
    %70 = vector.broadcast %49 : vector<1x256xf32> to vector<256x256xf32>
    %71 = arith.addf %69, %70 : vector<256x256xf32>
    %cst_34 = arith.constant 0.000000e+00 : f32
    %72 = vector.broadcast %cst_34 : f32 to vector<256x256xf32>
    %73 = arith.cmpf oge, %71, %72 : vector<256x256xf32>
    %cst_35 = arith.constant 0.00999999977 : f32
    %74 = vector.broadcast %cst_35 : f32 to vector<256x256xf32>
    %75 = arith.mulf %74, %71 : vector<256x256xf32>
    %76 = arith.select %73, %71, %75 : vector<256x256xi1>, vector<256x256xf32>
    %77 = arith.truncf %76 : vector<256x256xf32> to vector<256x256xbf16>
    %c0_36 = arith.constant 0 : index
    %c0_37 = arith.constant 0 : index
    %78 = vector.load %arg12[%c0_36, %c0_37] : memref<256x128xbf16, #tpu.memory_space<vmem>>, vector<256x128xbf16>
    %cst_38 = arith.constant dense<0.000000e+00> : vector<256x128xf32>
    %79 = tpu.matmul %77, %78, %cst_38 {dimension_numbers = #tpu.dot_dimension_numbers<[1], [0], [0], [1], [0, 0, 1, 1], [], []>} : vector<256x256xbf16>, vector<256x128xbf16>, vector<256x128xf32> -> vector<256x128xf32>
    %c0_39 = arith.constant 0 : index
    %c0_40 = arith.constant 0 : index
    %80 = vector.load %arg13[%c0_39, %c0_40] : memref<1x128xf32, #tpu.memory_space<vmem>>, vector<1x128xf32>
    %81 = vector.broadcast %80 : vector<1x128xf32> to vector<256x128xf32>
    %82 = arith.addf %79, %81 : vector<256x128xf32>
    %83 = math.tanh %82 : vector<256x128xf32>
    %c0_41 = arith.constant 0 : index
    %c0_42 = arith.constant 0 : index
    %84 = vector.load %arg14[%c0_41, %c0_42] : memref<256x128xf32, #tpu.memory_space<vmem>>, vector<256x128xf32>
    tpu.vector_store %arg14[%c0_41, %c0_42], %83 {strides = array<i32>} : memref<256x128xf32, #tpu.memory_space<vmem>>, vector<256x128xf32>,
    return
  }
  func.func @transform_0(%arg0: i32) -> (i32, i32) {
    %c0_i32 = arith.constant 0 : i32
    %c0_i32_0 = arith.constant 0 : i32
    return %arg0, %c0_i32 : i32, i32
  }
  func.func @transform_1(%arg0: i32) -> (i32, i32) {
    %c0_i32 = arith.constant 0 : i32
    %c0_i32_0 = arith.constant 0 : i32
    %c0_i32_1 = arith.constant 0 : i32
    return %c0_i32, %c0_i32_0 : i32, i32
  }
  func.func @transform_2(%arg0: i32) -> (i32, i32) {
    %c0_i32 = arith.constant 0 : i32
    %c0_i32_0 = arith.constant 0 : i32
    %c0_i32_1 = arith.constant 0 : i32
    return %c0_i32, %c0_i32_0 : i32, i32
  }
  func.func @transform_3(%arg0: i32) -> (i32, i32) {
    %c0_i32 = arith.constant 0 : i32
    %c0_i32_0 = arith.constant 0 : i32
    %c0_i32_1 = arith.constant 0 : i32
    return %c0_i32, %c0_i32_0 : i32, i32
  }
  func.func @transform_4(%arg0: i32) -> (i32, i32) {
    %c0_i32 = arith.constant 0 : i32
    %c0_i32_0 = arith.constant 0 : i32
    %c0_i32_1 = arith.constant 0 : i32
    return %c0_i32, %c0_i32_0 : i32, i32
  }
  func.func @transform_5(%arg0: i32) -> (i32, i32) {
    %c0_i32 = arith.constant 0 : i32
    %c0_i32_0 = arith.constant 0 : i32
    %c0_i32_1 = arith.constant 0 : i32
    return %c0_i32, %c0_i32_0 : i32, i32
  }
  func.func @transform_6(%arg0: i32) -> (i32, i32) {
    %c0_i32 = arith.constant 0 : i32
    %c0_i32_0 = arith.constant 0 : i32
    %c0_i32_1 = arith.constant 0 : i32
    return %c0_i32, %c0_i32_0 : i32, i32
  }
  func.func @transform_7(%arg0: i32) -> (i32, i32) {
    %c0_i32 = arith.constant 0 : i32
    %c0_i32_0 = arith.constant 0 : i32
    %c0_i32_1 = arith.constant 0 : i32
    return %c0_i32, %c0_i32_0 : i32, i32
  }
  func.func @transform_8(%arg0: i32) -> (i32, i32) {
    %c0_i32 = arith.constant 0 : i32
    %c0_i32_0 = arith.constant 0 : i32
    %c0_i32_1 = arith.constant 0 : i32
    return %c0_i32, %c0_i32_0 : i32, i32
  }
  func.func @transform_9(%arg0: i32) -> (i32, i32) {
    %c0_i32 = arith.constant 0 : i32
    %c0_i32_0 = arith.constant 0 : i32
    %c0_i32_1 = arith.constant 0 : i32
    return %c0_i32, %c0_i32_0 : i32, i32
  }
  func.func @transform_10(%arg0: i32) -> (i32, i32) {
    %c0_i32 = arith.constant 0 : i32
    %c0_i32_0 = arith.constant 0 : i32
    %c0_i32_1 = arith.constant 0 : i32
    return %c0_i32, %c0_i32_0 : i32, i32
  }
  func.func @transform_11(%arg0: i32) -> (i32, i32) {
    %c0_i32 = arith.constant 0 : i32
    %c0_i32_0 = arith.constant 0 : i32
    %c0_i32_1 = arith.constant 0 : i32
    return %c0_i32, %c0_i32_0 : i32, i32
  }
  func.func @transform_12(%arg0: i32) -> (i32, i32) {
    %c0_i32 = arith.constant 0 : i32
    %c0_i32_0 = arith.constant 0 : i32
    %c0_i32_1 = arith.constant 0 : i32
    return %c0_i32, %c0_i32_0 : i32, i32
  }
  func.func @transform_13(%arg0: i32) -> (i32, i32) {
    %c0_i32 = arith.constant 0 : i32
    %c0_i32_0 = arith.constant 0 : i32
    return %arg0, %c0_i32 : i32, i32
  }
}

</mosaic_0001>

<bundles_post_ra>
// kernel: _actor_forward_impl.1
= control target key start
LH: loop header
LB: loop body
LE: loop exit
PB: predicated region body
PF: predicated region fallthrough
CT: control target
= control target key end

     0   :  { %s3987_s25 = smov 0   ;;  %s6101_s0 = inlined_call_operand.vmem [shape: f32[512,32], index: 0, kind: input, shape index: {}]   ;;  %s6102_s1 = inlined_call_operand.vmem [shape: f32[1,32], index: 1, kind: input, shape index: {}]   ;;  %s6103_s2 = inlined_call_operand.vmem [shape: f32[1,32], index: 2, kind: input, shape index: {}]   ;;  %s6104_s3 = inlined_call_operand.vmem [shape: bf16[32,256], index: 3, kind: input, shape index: {}]   ;;  %s6105_s4 = inlined_call_operand.vmem [shape: f32[1,256], index: 4, kind: input, shape index: {}]   ;;  %s6106_s5 = inlined_call_operand.vmem [shape: f32[1,256], index: 5, kind: input, shape index: {}]   ;;  %s6107_s6 = inlined_call_operand.vmem [shape: f32[1,256], index: 6, kind: input, shape index: {}]   ;;  %s6108_s7 = inlined_call_operand.vmem [shape: bf16[256,256], index: 7, kind: input, shape index: {}]   ;;  %s6109_s8 = inlined_call_operand.vmem [shape: f32[1,256], index: 8, kind: input, shape index: {}]   ;;  %s6110_s9 = inlined_call_operand.vmem [shape: f32[1,256], index: 9, kind: input, shape index: {}]   ;;  %s6111_s10 = inlined_call_operand.vmem [shape: f32[1,256], index: 10, kind: input, shape index: {}]   ;;  %s6112_s11 = inlined_call_operand.vmem [shape: bf16[256,128], index: 11, kind: input, shape index: {}]   ;;  %s6113_s12 = inlined_call_operand.vmem [shape: f32[1,128], index: 12, kind: input, shape index: {}]   ;;  %s6114_s13 = inlined_call_operand.vmem [shape: f32[512,128], index: 13, kind: output, shape index: {}]  }
   0x1 LB: > { %s3439_s26 = sadd.s32 4294967295, %s3914_s25   ;;  %p3443_p0 = scmp.ge.s32.totalorder %s3914_s25, 1  ;;  %s3914_s25 = sphi %s3987_s25, %s23_s25  }
   0x2   : > { %p388_p1 = scmp.lt.s32.totalorder %s3914_s25, 3 }
   0x4   : > { %p389_p2 = pnand %p3443_p0, %p388_p1 }
   0x6   : > { %392 = sbr.rel (%p389_p2) target bundleno = 1536 (0x600), region = 72 }
   0xd   : > { %v3646_v0 = vld [vmem:[%s6104_s3 + $0x4] ss:$8 sps:$4 sm:$0xff]   ;;  %s3444_s29 = sshll.u32 %s3439_s26, 5  ;;  %v3648_v1 = vld [vmem:[%s6104_s3] ss:$8 sps:$4 sm:$0xff]   ;;  %v3916_v2 = vmov 0  }
   0xe   : > { %688 = vmatprep.mubr.bf16.mxu0 %v3916_v2  ;;  %p433_p3 = scmp.lt.s32.totalorder %s3444_s29, 63  ;;  %768 = vmatprep.mubr.bf16.mxu1 %v3916_v2  ;;  %v3649_v3 = vld [vmem:[%s6104_s3 + $0x14] ss:$8 sps:$4 sm:$0xff]   ;;  %v3651_v4 = vld [vmem:[%s6104_s3 + $0x10] ss:$8 sps:$4 sm:$0xff]   ;;  %vm607_vm0 = vcmask 261120  }
   0xf   : > { %656 = vmatprep.subr.bf16.mxu0 %v3646_v0  ;;  %3633 = vmatprep.subr.bf16.mxu1 %v3646_v0  ;;  %v4014_v5 = vld [vmem:[%s6102_s1] ss:$0 sm:$0xff] }
  0x10   : > { %657 = vmatpush1.bf16.msra.mxu0 %v3648_v1  ;;  %s6326_s29 = smov (!%p433_p3, %s3444_s29), 63  ;;  %3635 = vmatpush1.bf16.msra.mxu1 %v3648_v1  ;;  %v4020_v6 = vld [vmem:[%s6103_s2] ss:$0 sm:$0xff] }
  0x11   : > { %658 = vmatprep.subr.bf16.mxu0 %v3649_v3  ;;  %3634 = vmatprep.subr.bf16.mxu1 %v3649_v3  ;;  %s3445_s21 = sshll.u32 %s6326_s29, 3 }
  0x12   : > { %s4027_s27 = scalar_lea.vmem %s6101_s0, %s3445_s21  ;;  %s6034_s28 = scalar_lea.vmem %s6114_s13, %s3445_s21 }
  0x13   : > { %v445_v7 = vld [vmem:[%s4027_s27] sm:$0xff]  ;;  %v446_v8 = vld [vmem:[%s4027_s27 + $0x8] sm:$0xff]  ;;  %v447_v9 = vld [vmem:[%s4027_s27 + $0x10] sm:$0xff] }
  0x14   : > { %659 = vmatpush1.bf16.msra.mxu0 %v3651_v4  ;;  %3636 = vmatpush1.bf16.msra.mxu1 %v3651_v4  ;;  %v484_v10 = vsub.f32 %v445_v7, %v4014_v5  ;;  %v485_v11 = vsub.f32 %v446_v8, %v4014_v5  ;;  %v448_v12 = vld [vmem:[%s4027_s27 + $0x18] sm:$0xff]  ;;  %v486_v15 = vsub.f32 %v447_v9, %v4014_v5  ;;  %v461_v18 = vld [vmem:[%s4027_s27 + $0x80] sm:$0xff]  ;;  %v462_v19 = vld [vmem:[%s4027_s27 + $0x88] sm:$0xff] }
  0x15   : > { %v487_v16 = vsub.f32 %v448_v12, %v4014_v5  ;;  %v449_v22 = vld [vmem:[%s4027_s27 + $0x20] sm:$0xff]  ;;  %v450_v23 = vld [vmem:[%s4027_s27 + $0x28] sm:$0xff]  ;;  %v500_v24 = vsub.f32 %v461_v18, %v4014_v5  ;;  %v463_v25 = vld [vmem:[%s4027_s27 + $0x90] sm:$0xff]  ;;  %v501_v27 = vsub.f32 %v462_v19, %v4014_v5 }
  0x16   : > { %v523_v13 = vmul.f32 %v4020_v6, %v484_v10  ;;  %v524_v14 = vmul.f32 %v4020_v6, %v485_v11  ;;  %v525_v20 = vmul.f32 %v4020_v6, %v486_v15  ;;  %v464_v26 = vld [vmem:[%s4027_s27 + $0x98] sm:$0xff]  ;;  %v488_v28 = vsub.f32 %v449_v22, %v4014_v5  ;;  %v451_v35 = vld [vmem:[%s4027_s27 + $0x30] sm:$0xff]  ;;  %v465_v38 = vld [vmem:[%s4027_s27 + $0xa0] sm:$0xff] }
  0x17   : > { %v526_v21 = vmul.f32 %v4020_v6, %v487_v16  ;;  %v489_v29 = vsub.f32 %v450_v23, %v4014_v5  ;;  %v539_v30 = vmul.f32 %v4020_v6, %v500_v24  ;;  %v540_v32 = vmul.f32 %v4020_v6, %v501_v27  ;;  %v452_v36 = vld [vmem:[%s4027_s27 + $0x38] sm:$0xff]  ;;  %v466_v41 = vld [vmem:[%s4027_s27 + $0xa8] sm:$0xff]  ;;  %v475_v42 = vld [vmem:[%s4027_s27 + $0xf0] sm:$0xff] }
  0x18   : > { %v555_v17 = vpack.c.bf16 %v524_v14, %v523_v13  ;;  %v502_v33 = vsub.f32 %v463_v25, %v4014_v5  ;;  %v503_v34 = vsub.f32 %v464_v26, %v4014_v5  ;;  %v527_v39 = vmul.f32 %v4020_v6, %v488_v28  ;;  %v476_v43 = vld [vmem:[%s4027_s27 + $0xf8] sm:$0xff]  ;;  %v453_v54 = vld [vmem:[%s4027_s27 + $0x40] sm:$0xff]  ;;  %v454_v55 = vld [vmem:[%s4027_s27 + $0x48] sm:$0xff] }
  0x19   : > { %v556_v31 = vpack.c.bf16 %v526_v21, %v525_v20  ;;  %v563_v37 = vpack.c.bf16 %v540_v32, %v539_v30  ;;  %v528_v40 = vmul.f32 %v4020_v6, %v489_v29  ;;  %v490_v47 = vsub.f32 %v451_v35, %v4014_v5  ;;  %v467_v60 = vld [vmem:[%s4027_s27 + $0xb0] sm:$0xff]  ;;  %v468_v61 = vld [vmem:[%s4027_s27 + $0xb8] sm:$0xff]  ;;  %v469_v16 = vld [vmem:[%s4027_s27 + $0xc0] sm:$0xff] }
  0x1a   : > { %3454 = vmatmul.mubr.msk.bf16.vlgmr.msra.gmra.mrb[0].mxu0 %vm607_vm0, %v555_v17  ;;  %v541_v44 = vmul.f32 %v4020_v6, %v502_v33  ;;  %v542_v45 = vmul.f32 %v4020_v6, %v503_v34  ;;  %v491_v48 = vsub.f32 %v452_v36, %v4014_v5  ;;  %v504_v49 = vsub.f32 %v465_v38, %v4014_v5  ;;  %v455_v12 = vld [vmem:[%s4027_s27 + $0x50] sm:$0xff]  ;;  %v456_v13 = vld [vmem:[%s4027_s27 + $0x58] sm:$0xff]  ;;  %v470_v17 = vld [vmem:[%s4027_s27 + $0xc8] sm:$0xff] }
  0x1b   : > { %698 = vmatprep.mubr.bf16.mxu0 %v3916_v2  ;;  %3462 = vmatmul.mubr.msk.bf16.vlgmr.msra.gmra.mrb[0].mxu1 %vm607_vm0, %v563_v37  ;;  %v557_v46 = vpack.c.bf16 %v528_v40, %v527_v39  ;;  %v505_v51 = vsub.f32 %v466_v41, %v4014_v5  ;;  %v514_v52 = vsub.f32 %v475_v42, %v4014_v5  ;;  %v457_v26 = vld [vmem:[%s4027_s27 + $0x60] sm:$0xff]  ;;  %v458_v27 = vld [vmem:[%s4027_s27 + $0x68] sm:$0xff]  ;;  %v471_v30 = vld [vmem:[%s4027_s27 + $0xd0] sm:$0xff] }
  0x1c   : > { %778 = vmatprep.mubr.bf16.mxu1 %v3916_v2  ;;  %v564_v50 = vpack.c.bf16 %v542_v45, %v541_v44  ;;  %v515_v53 = vsub.f32 %v476_v43, %v4014_v5  ;;  %v529_v58 = vmul.f32 %v4020_v6, %v490_v47  ;;  %v530_v59 = vmul.f32 %v4020_v6, %v491_v48  ;;  %v459_v40 = vld [vmem:[%s4027_s27 + $0x70] sm:$0xff]  ;;  %v460_v41 = vld [vmem:[%s4027_s27 + $0x78] sm:$0xff]  ;;  %v473_v44 = vld [vmem:[%s4027_s27 + $0xe0] sm:$0xff] }
  0x1d   : > { %v4080_v56 = vmul.f32 %v4020_v6, %v514_v52  ;;  %v543_v62 = vmul.f32 %v4020_v6, %v504_v49  ;;  %v544_v63 = vmul.f32 %v4020_v6, %v505_v51  ;;  %v492_v1 = vsub.f32 %v453_v54, %v4014_v5  ;;  %v474_v45 = vld [vmem:[%s4027_s27 + $0xe8] sm:$0xff] }
  0x1e   : > { %v4083_v57 = vmul.f32 %v4020_v6, %v515_v53  ;;  %v493_v3 = vsub.f32 %v454_v55, %v4014_v5  ;;  %v558_v4 = vpack.c.bf16 %v530_v59, %v529_v58  ;;  %v506_v8 = vsub.f32 %v467_v60, %v4014_v5 }
  0x1f   : > { %v565_v7 = vpack.c.bf16 %v544_v63, %v543_v62  ;;  %v507_v9 = vsub.f32 %v468_v61, %v4014_v5  ;;  %v531_v10 = vmul.f32 %v4020_v6, %v492_v1  ;;  %v494_v18 = vsub.f32 %v455_v12, %v4014_v5  ;;  %v575_v61 = vld [vmem:[%s6105_s4] sm:$0x3] }
  0x20   : > { %v570_v0 = vpack.c.bf16 %v4083_v57, %v4080_v56  ;;  %v532_v11 = vmul.f32 %v4020_v6, %v493_v3  ;;  %v545_v14 = vmul.f32 %v4020_v6, %v506_v8  ;;  %v495_v19 = vsub.f32 %v456_v13, %v4014_v5 }
  0x21   : > { %v546_v15 = vmul.f32 %v4020_v6, %v507_v9  ;;  %v508_v22 = vsub.f32 %v469_v16, %v4014_v5  ;;  %v509_v23 = vsub.f32 %v470_v17, %v4014_v5  ;;  %v533_v24 = vmul.f32 %v4020_v6, %v494_v18 }
  0x22   : > { %3455 = vmatmul.mubr.msk.bf16.gmra.mrb[4].mxu0 %vm607_vm0, %v556_v31  ;;  %v559_v20 = vpack.c.bf16 %v532_v11, %v531_v10  ;;  %v534_v25 = vmul.f32 %v4020_v6, %v495_v19  ;;  %v472_v31 = vld [vmem:[%s4027_s27 + $0xd8] sm:$0xff]  ;;  %v496_v32 = vsub.f32 %v457_v26, %v4014_v5  ;;  %v497_v33 = vsub.f32 %v458_v27, %v4014_v5 }
  0x23   : > { %708 = vmatprep.mubr.bf16.mxu0 %v3916_v2  ;;  %3463 = vmatmul.mubr.msk.bf16.gmra.mrb[4].mxu1 %vm607_vm0, %v564_v50  ;;  %v566_v21 = vpack.c.bf16 %v546_v15, %v545_v14  ;;  %v547_v28 = vmul.f32 %v4020_v6, %v508_v22  ;;  %v548_v29 = vmul.f32 %v4020_v6, %v509_v23 }
  0x24   : > { %788 = vmatprep.mubr.bf16.mxu1 %v3916_v2  ;;  %v560_v34 = vpack.c.bf16 %v534_v25, %v533_v24  ;;  %v510_v36 = vsub.f32 %v471_v30, %v4014_v5  ;;  %v511_v37 = vsub.f32 %v472_v31, %v4014_v5  ;;  %v535_v38 = vmul.f32 %v4020_v6, %v496_v32 }
  0x25   : > { %v567_v35 = vpack.c.bf16 %v548_v29, %v547_v28  ;;  %v536_v39 = vmul.f32 %v4020_v6, %v497_v33  ;;  %v499_v47 = vsub.f32 %v460_v41, %v4014_v5  ;;  %v512_v50 = vsub.f32 %v473_v44, %v4014_v5 }
  0x26   : > { %v549_v42 = vmul.f32 %v4020_v6, %v510_v36  ;;  %v550_v43 = vmul.f32 %v4020_v6, %v511_v37  ;;  %v513_v51 = vsub.f32 %v474_v45, %v4014_v5 }
  0x27   : > { %v561_v48 = vpack.c.bf16 %v536_v39, %v535_v38  ;;  %v538_v53 = vmul.f32 %v4020_v6, %v499_v47  ;;  %v551_v54 = vmul.f32 %v4020_v6, %v512_v50 }
  0x28   : > { %v568_v49 = vpack.c.bf16 %v550_v43, %v549_v42  ;;  %v552_v55 = vmul.f32 %v4020_v6, %v513_v51 }
  0x2a   : > { %3456 = vmatmul.mubr.msk.bf16.gmra.mrb[8].mxu0 %vm607_vm0, %v557_v46  ;;  %v498_v46 = vsub.f32 %v459_v40, %v4014_v5  ;;  %v569_v59 = vpack.c.bf16 %v552_v55, %v551_v54  ;;  %v577_v5 = vlaneseq }
  0x2b   : > { %718 = vmatprep.mubr.bf16.mxu0 %v3916_v2  ;;  %3464 = vmatmul.mubr.msk.bf16.gmra.mrb[8].mxu1 %vm607_vm0, %v565_v7 }
  0x2c   : > { %798 = vmatprep.mubr.bf16.mxu1 %v3916_v2  ;;  %v537_v52 = vmul.f32 %v4020_v6, %v498_v46  ;;  %v578_v60 = vshrl.u32 %v577_v5, 7 }
  0x2e   : > { %v562_v58 = vpack.c.bf16 %v538_v53, %v537_v52  ;;  %v4164_v6 = vsub.s32 0, %v578_v60  ;;  %v4169_v62 = vsub.s32 1, %v578_v60 }
  0x30   : > { %6187 = vst [vmem:[#allocation2_spill] sm:$0xff] %v4164_v6  ;;  %6188 = vst [vmem:[#allocation3_spill] sm:$0xff] %v4169_v62  ;;  %v4172_v63 = vrot.slane %v575_v61, %v4164_v6 }
  0x32   : > { %3457 = vmatmul.mubr.msk.bf16.gmra.mrb[12].mxu0 %vm607_vm0, %v558_v4 }
  0x33   : > { %728 = vmatprep.mubr.bf16.mxu0 %v3916_v2  ;;  %3465 = vmatmul.mubr.msk.bf16.gmra.mrb[12].mxu1 %vm607_vm0, %v566_v21 }
  0x34   : > { %808 = vmatprep.mubr.bf16.mxu1 %v3916_v2 }
  0x3a   : > { %3458 = vmatmul.mubr.msk.bf16.gmra.mrb[16].mxu0 %vm607_vm0, %v559_v20 }
  0x3b   : > { %738 = vmatprep.mubr.bf16.mxu0 %v3916_v2  ;;  %3466 = vmatmul.mubr.msk.bf16.gmra.mrb[16].mxu1 %vm607_vm0, %v567_v35 }
  0x3c   : > { %818 = vmatprep.mubr.bf16.mxu1 %v3916_v2 }
  0x42   : > { %3459 = vmatmul.mubr.msk.bf16.gmra.mrb[20].mxu0 %vm607_vm0, %v560_v34 }
  0x43   : > { %748 = vmatprep.mubr.bf16.mxu0 %v3916_v2  ;;  %3467 = vmatmul.mubr.msk.bf16.gmra.mrb[20].mxu1 %vm607_vm0, %v568_v49 }
  0x44   : > { %828 = vmatprep.mubr.bf16.mxu1 %v3916_v2 }
  0x4a   : > { %3460 = vmatmul.mubr.msk.bf16.gmra.mrb[24].mxu0 %vm607_vm0, %v561_v48 }
  0x4b   : > { %758 = vmatprep.mubr.bf16.mxu0 %v3916_v2  ;;  %3468 = vmatmul.mubr.msk.bf16.gmra.mrb[24].mxu1 %vm607_vm0, %v569_v59 }
  0x4c   : > { %838 = vmatprep.mubr.bf16.mxu1 %v3916_v2  ;;  %v4175_v2 = vrot.slane %v575_v61, %v4169_v62 }
  0x52   : > { %3461 = vmatmul.mubr.msk.bf16.gmra.mrb[28].mxu0 %vm607_vm0, %v562_v58 }
  0x53   : > { %3469 = vmatmul.mubr.msk.bf16.gmra.mrb[28].mxu1 %vm607_vm0, %v570_v0 }
  0xed   : > { %v690_v1 = vpop.f32.mrb[0].mxu0 }
  0xee   : > { %v4178_v56 = vadd.f32 %v690_v1, %v4172_v63  ;;  %v692_v57 = vpop.f32.mrb[1].mxu0  ;;  %v4193_v12 = vpop.f32.mrb[0].mxu1 }
  0xef   : > { %v4181_v0 = vadd.f32 %v692_v57, %v4175_v2  ;;  %v694_v3 = vpop.f32.mrb[2].mxu0  ;;  %v4198_v15 = vpop.f32.mrb[1].mxu1 }
  0xf0   : > { %v696_v4 = vpop.f32.mrb[3].mxu0  ;;  %v4184_v7 = vadd.f32 %v694_v3, %v4172_v63  ;;  %v4203_v18 = vpop.f32.mrb[2].mxu1  ;;  %v4353_v6 = vadd.f32 %v4198_v15, %v4175_v2 }
  0xf1   : > { %v4187_v8 = vadd.f32 %v696_v4, %v4175_v2  ;;  %v851_v9 = vadd.f32 %v4181_v0, %v4178_v56  ;;  %v4205_v20 = vpop.f32.mrb[3].mxu1 }
  0xf2   : > { %6193 = vst [vmem:[#allocation8_spill] sm:$0xff] %v4353_v6  ;;  %v4373_v15 = vadd.f32 %v4205_v20, %v4175_v2 }
  0xf3   : > { %852 = vadd.xlane.f32.xlu0 %v851_v9  ;;  %v854_v11 = vadd.f32 %v4187_v8, %v4184_v7 }
  0xf4   : > { %6196 = vst [vmem:[#allocation11_spill] sm:$0xff] %v4373_v15 }
  0xf5   : > { %v700_v10 = vpop.f32.mrb[4].mxu0 }
  0xf6   : > { %v4196_v13 = vadd.f32 %v700_v10, %v4172_v63  ;;  %v702_v14 = vpop.f32.mrb[5].mxu0  ;;  %v4217_v26 = vpop.f32.mrb[4].mxu1 }
  0xf7   : > { %v4201_v16 = vadd.f32 %v702_v14, %v4175_v2  ;;  %v704_v17 = vpop.f32.mrb[6].mxu0  ;;  %855 = vadd.xlane.f32.xlu0 %v854_v11  ;;  %v4222_v29 = vpop.f32.mrb[5].mxu1 }
  0xf8   : > { %v706_v19 = vpop.f32.mrb[7].mxu0  ;;  %v4208_v21 = vadd.f32 %v704_v17, %v4172_v63  ;;  %v4227_v32 = vpop.f32.mrb[6].mxu1 }
  0xf9   : > { %v4211_v22 = vadd.f32 %v706_v19, %v4175_v2  ;;  %v857_v23 = vadd.f32 %v4201_v16, %v4196_v13  ;;  %v4232_v35 = vpop.f32.mrb[7].mxu1  ;;  %v4389_v20 = vadd.f32 %v4227_v32, %v4172_v63 }
  0xfb   : > { %858 = vadd.xlane.f32.xlu1 %v857_v23  ;;  %v860_v25 = vadd.f32 %v4211_v22, %v4208_v21 }
  0xfd   : > { %v710_v24 = vpop.f32.mrb[8].mxu0 }
  0xfe   : > { %v4220_v27 = vadd.f32 %v710_v24, %v4172_v63  ;;  %v712_v28 = vpop.f32.mrb[9].mxu0  ;;  %v4241_v40 = vpop.f32.mrb[8].mxu1 }
  0xff   : > { %v4225_v30 = vadd.f32 %v712_v28, %v4175_v2  ;;  %v714_v31 = vpop.f32.mrb[10].mxu0  ;;  %861 = vadd.xlane.f32.xlu1 %v860_v25  ;;  %v4246_v43 = vpop.f32.mrb[9].mxu1 }
 0x100   : > { %v4230_v33 = vadd.f32 %v714_v31, %v4172_v63  ;;  %v716_v34 = vpop.f32.mrb[11].mxu0  ;;  %v4251_v46 = vpop.f32.mrb[10].mxu1  ;;  %v4407_v32 = vadd.f32 %v4246_v43, %v4175_v2 }
 0x101   : > { %v4235_v36 = vadd.f32 %v716_v34, %v4175_v2  ;;  %v863_v37 = vadd.f32 %v4225_v30, %v4220_v27  ;;  %v4256_v49 = vpop.f32.mrb[11].mxu1 }
 0x102   : > { %6198 = vst [vmem:[#allocation13_spill] sm:$0xff] %v4407_v32 }
 0x103   : > { %864 = vadd.xlane.f32.xlu0 %v863_v37  ;;  %v866_v38 = vadd.f32 %v4235_v36, %v4230_v33 }
 0x105   : > { %v720_v39 = vpop.f32.mrb[12].mxu0  ;;  %867 = vadd.xlane.f32.xlu1 %v866_v38 }
 0x106   : > { %v4244_v41 = vadd.f32 %v720_v39, %v4172_v63  ;;  %v722_v42 = vpop.f32.mrb[13].mxu0  ;;  %v4265_v54 = vpop.f32.mrb[12].mxu1 }
 0x107   : > { %v4249_v44 = vadd.f32 %v722_v42, %v4175_v2  ;;  %v724_v45 = vpop.f32.mrb[14].mxu0  ;;  %v4270_v59 = vpop.f32.mrb[13].mxu1 }
 0x108   : > { %v4254_v47 = vadd.f32 %v724_v45, %v4172_v63  ;;  %v726_v48 = vpop.f32.mrb[15].mxu0  ;;  %v4275_v61 = vpop.f32.mrb[14].mxu1 }
 0x109   : > { %v4259_v50 = vadd.f32 %v726_v48, %v4175_v2  ;;  %v869_v51 = vadd.f32 %v4249_v44, %v4244_v41  ;;  %v4280_v3 = vpop.f32.mrb[15].mxu1 }
 0x10b   : > { %870 = vadd.xlane.f32.xlu0 %v869_v51  ;;  %v872_v52 = vadd.f32 %v4259_v50, %v4254_v47 }
 0x10d   : > { %v730_v53 = vpop.f32.mrb[16].mxu0  ;;  %873 = vadd.xlane.f32.xlu1 %v872_v52 }
 0x10e   : > { %v4268_v55 = vadd.f32 %v730_v53, %v4172_v63  ;;  %v732_v58 = vpop.f32.mrb[17].mxu0  ;;  %v4289_v14 = vpop.f32.mrb[16].mxu1 }
 0x10f   : > { %v4273_v5 = vadd.f32 %v732_v58, %v4175_v2  ;;  %v734_v60 = vpop.f32.mrb[18].mxu0  ;;  %v4294_v23 = vpop.f32.mrb[17].mxu1 }
 0x110   : > { %v4278_v1 = vadd.f32 %v734_v60, %v4172_v63  ;;  %v736_v57 = vpop.f32.mrb[19].mxu0  ;;  %v4299_v28 = vpop.f32.mrb[18].mxu1 }
 0x111   : > { %v4283_v4 = vadd.f32 %v736_v57, %v4175_v2  ;;  %v875_v9 = vadd.f32 %v4273_v5, %v4268_v55  ;;  %v4304_v37 = vpop.f32.mrb[19].mxu1 }
 0x113   : > { %876 = vadd.xlane.f32.xlu0 %v875_v9  ;;  %v878_v10 = vadd.f32 %v4283_v4, %v4278_v1 }
 0x115   : > { %v740_v11 = vpop.f32.mrb[20].mxu0  ;;  %879 = vadd.xlane.f32.xlu1 %v878_v10 }
 0x116   : > { %v4292_v17 = vadd.f32 %v740_v11, %v4172_v63  ;;  %v742_v19 = vpop.f32.mrb[21].mxu0  ;;  %v4313_v48 = vpop.f32.mrb[20].mxu1 }
 0x117   : > { %v4297_v24 = vadd.f32 %v742_v19, %v4175_v2  ;;  %v744_v25 = vpop.f32.mrb[22].mxu0  ;;  %v4318_v53 = vpop.f32.mrb[21].mxu1 }
 0x118   : > { %v4302_v31 = vadd.f32 %v744_v25, %v4172_v63  ;;  %v746_v34 = vpop.f32.mrb[23].mxu0  ;;  %v4323_v57 = vpop.f32.mrb[22].mxu1 }
 0x119   : > { %v4307_v38 = vadd.f32 %v746_v34, %v4175_v2  ;;  %v881_v39 = vadd.f32 %v4297_v24, %v4292_v17  ;;  %v4328_v11 = vpop.f32.mrb[23].mxu1 }
 0x11b   : > { %882 = vadd.xlane.f32.xlu0 %v881_v39  ;;  %v884_v42 = vadd.f32 %v4307_v38, %v4302_v31 }
 0x11d   : > { %v750_v45 = vpop.f32.mrb[24].mxu0  ;;  %885 = vadd.xlane.f32.xlu1 %v884_v42 }
 0x11e   : > { %v4316_v51 = vadd.f32 %v750_v45, %v4172_v63  ;;  %v752_v52 = vpop.f32.mrb[25].mxu0  ;;  %v4337_v42 = vpop.f32.mrb[24].mxu1 }
 0x11f   : > { %v4321_v58 = vadd.f32 %v752_v52, %v4175_v2  ;;  %v754_v60 = vpop.f32.mrb[26].mxu0 }
 0x120   : > { %6189 = vst [vmem:[#allocation4_spill] sm:$0xff] %v4316_v51  ;;  %v4326_v9 = vadd.f32 %v754_v60, %v4172_v63  ;;  %v756_v10 = vpop.f32.mrb[27].mxu0  ;;  %v4342_v60 = vpop.f32.mrb[25].mxu1 }
 0x121   : > { %6190 = vst [vmem:[#allocation5_spill] sm:$0xff] %v4321_v58  ;;  %v4331_v19 = vadd.f32 %v756_v10, %v4175_v2  ;;  %v887_v25 = vadd.f32 %v4321_v58, %v4316_v51  ;;  %v4367_v58 = vadd.f32 %v4203_v18, %v4172_v63  ;;  %v4383_v51 = vadd.f32 %v4222_v29, %v4175_v2 }
 0x122   : > { %6191 = vst [vmem:[#allocation6_spill] sm:$0xff] %v4326_v9  ;;  %v4403_v29 = vadd.f32 %v4241_v40, %v4172_v63  ;;  %v4421_v40 = vadd.f32 %v4256_v49, %v4175_v2  ;;  %v3654_v49 = vld [vmem:[%s6108_s7 + $0x4] ss:$8 sps:$4 sm:$0xff]  }
 0x123   : > { %6192 = vst [vmem:[#allocation7_spill] sm:$0xff] %v4331_v19  ;;  %888 = vadd.xlane.f32.xlu0 %v887_v25  ;;  %v890_v34 = vadd.f32 %v4331_v19, %v4326_v9  ;;  %v4349_v25 = vadd.f32 %v4193_v12, %v4172_v63  ;;  %6197 = vst [vmem:[#allocation12_spill] sm:$0xff] %v4383_v51  ;;  %1942 = vmatprep.subr.bf16.mxu1 %v3654_v49  ;;  %v3666_v49 = vld [vmem:[%s6108_s7 + $0x44] ss:$8 sps:$4 sm:$0xff]  }
 0x124   : > { %6200 = vst [vmem:[#allocation15_spill] sm:$0xff] %v4421_v40 }
 0x125   : > { %v760_v39 = vpop.f32.mrb[28].mxu0  ;;  %891 = vadd.xlane.f32.xlu1 %v890_v34  ;;  %v4355_v34 = vpop.f32.mrb[26].mxu1  ;;  %v899_v18 = vadd.f32 %v4353_v6, %v4349_v25 }
 0x126   : > { %v4340_v45 = vadd.f32 %v760_v39, %v4172_v63  ;;  %v762_v52 = vpop.f32.mrb[29].mxu0  ;;  %v4360_v9 = vpop.f32.mrb[27].mxu1 }
 0x127   : > { %v4345_v10 = vadd.f32 %v762_v52, %v4175_v2  ;;  %v764_v62 = vpop.f32.mrb[30].mxu0 }
 0x128   : > { %v4358_v39 = vadd.f32 %v764_v62, %v4172_v63  ;;  %v766_v19 = vpop.f32.mrb[31].mxu0  ;;  %v4377_v62 = vadd.f32 %v4217_v26, %v4172_v63  ;;  %v902_v26 = vadd.f32 %v4373_v15, %v4367_v58  ;;  %v4417_v15 = vadd.f32 %v4251_v46, %v4172_v63  ;;  %v3652_v46 = vld [vmem:[%s6108_s7] ss:$8 sps:$4 sm:$0xff]  }
 0x129   : > { %v4363_v52 = vadd.f32 %v766_v19, %v4175_v2  ;;  %v893_v12 = vadd.f32 %v4345_v10, %v4340_v45  ;;  %1943 = vmatpush1.bf16.msra.mxu1 %v3652_v46  ;;  %v3661_v46 = vld [vmem:[%s6108_s7 + $0x30] ss:$8 sps:$4 sm:$0xff]  }
 0x12a   : > { %6194 = vst [vmem:[#allocation9_spill] sm:$0xff] %v4358_v39  ;;  %6199 = vst [vmem:[#allocation14_spill] sm:$0xff] %v4417_v15 }
 0x12b   : > { %6195 = vst [vmem:[#allocation10_spill] sm:$0xff] %v4363_v52  ;;  %894 = vadd.xlane.f32.xlu0 %v893_v12  ;;  %v896_v19 = vadd.f32 %v4363_v52, %v4358_v39  ;;  %v4393_v12 = vadd.f32 %v4232_v35, %v4175_v2  ;;  %v4397_v52 = vpop.f32.mrb[28].mxu1  ;;  %v905_v35 = vadd.f32 %v4383_v51, %v4377_v62 }
 0x12c   : > { %v4399_v39 = vpop.f32.mrb[29].mxu1  ;;  %v914_v51 = vadd.f32 %v4421_v40, %v4417_v15  ;;  %v4491_v15 = vadd.f32 %v4265_v54, %v4172_v63 }
 0x12d   : > { %897 = vadd.xlane.f32.xlu1 %v896_v19  ;;  %v4411_v19 = vpop.f32.mrb[30].mxu1  ;;  %v908_v43 = vadd.f32 %v4393_v12, %v4389_v20 }
 0x12e   : > { %v4413_v6 = vpop.f32.mrb[31].mxu1 }
 0x12f   : > { %900 = vadd.xlane.f32.xlu0 %v899_v18  ;;  %v911_v18 = vadd.f32 %v4407_v32, %v4403_v29  ;;  %v4495_v32 = vadd.f32 %v4270_v59, %v4175_v2 }
 0x131   : > { %903 = vadd.xlane.f32.xlu1 %v902_v26  ;;  %v3657_v26 = vld [vmem:[%s6108_s7 + $0x14] ss:$8 sps:$4 sm:$0xff]   ;;  %v917_v59 = vadd.f32 %v4495_v32, %v4491_v15 }
 0x132   : > { %1944 = vmatprep.subr.bf16.mxu1 %v3657_v26  ;;  %v3664_v26 = vld [vmem:[%s6108_s7 + $0x40] ss:$8 sps:$4 sm:$0xff]  }
 0x133   : > { %906 = vadd.xlane.f32.xlu0 %v905_v35  ;;  %v3655_v35 = vld [vmem:[%s6108_s7 + $0x10] ss:$8 sps:$4 sm:$0xff]  }
 0x134   : > { %1945 = vmatpush1.bf16.msra.mxu1 %v3655_v35  ;;  %v3669_v35 = vld [vmem:[%s6108_s7 + $0x54] ss:$8 sps:$4 sm:$0xff]  }
 0x135   : > { %909 = vadd.xlane.f32.xlu1 %v908_v43  ;;  %v3658_v43 = vld [vmem:[%s6108_s7 + $0x20] ss:$8 sps:$4 sm:$0xff]  }
 0x137   : > { %912 = vadd.xlane.f32.xlu0 %v911_v18  ;;  %v3663_v18 = vld [vmem:[%s6108_s7 + $0x34] ss:$8 sps:$4 sm:$0xff]  }
 0x139   : > { %915 = vadd.xlane.f32.xlu1 %v914_v51  ;;  %v3660_v51 = vld [vmem:[%s6108_s7 + $0x24] ss:$8 sps:$4 sm:$0xff]  }
 0x13a   : > { %1946 = vmatprep.subr.bf16.mxu1 %v3660_v51  ;;  %v3667_v51 = vld [vmem:[%s6108_s7 + $0x50] ss:$8 sps:$4 sm:$0xff]  }
 0x13b   : > { %1947 = vmatpush1.bf16.msra.mxu1 %v3658_v43  ;;  %v3672_v43 = vld [vmem:[%s6108_s7 + $0x64] ss:$8 sps:$4 sm:$0xff]  }
 0x13c   : > { %1948 = vmatprep.subr.bf16.mxu1 %v3663_v18  ;;  %v3670_v18 = vld [vmem:[%s6108_s7 + $0x60] ss:$8 sps:$4 sm:$0xff]  }
 0x13f   : > { %1949 = vmatpush1.bf16.msra.mxu1 %v3661_v46  ;;  %v3675_v46 = vld [vmem:[%s6108_s7 + $0x74] ss:$8 sps:$4 sm:$0xff]  }
 0x140   : > { %1950 = vmatprep.subr.bf16.mxu1 %v3666_v49  ;;  %v3673_v49 = vld [vmem:[%s6108_s7 + $0x70] ss:$8 sps:$4 sm:$0xff]  }
 0x143   : > { %1951 = vmatpush1.bf16.msra.mxu1 %v3664_v26  ;;  %v3678_v26 = vld [vmem:[%s6108_s7 + $0x84] ss:$8 sps:$4 sm:$0xff]  }
 0x144   : > { %1952 = vmatprep.subr.bf16.mxu1 %v3669_v35  ;;  %v3676_v35 = vld [vmem:[%s6108_s7 + $0x80] ss:$8 sps:$4 sm:$0xff]  }
 0x147   : > { %1953 = vmatpush1.bf16.msra.mxu1 %v3667_v51 }
 0x148   : > { %1954 = vmatprep.subr.bf16.mxu1 %v3672_v43 }
 0x14b   : > { %1955 = vmatpush1.bf16.msra.mxu1 %v3670_v18 }
 0x14c   : > { %1956 = vmatprep.subr.bf16.mxu1 %v3675_v46 }
 0x14f   : > { %1957 = vmatpush1.bf16.msra.mxu1 %v3673_v49 }
 0x150   : > { %1958 = vmatprep.subr.bf16.mxu1 %v3678_v26 }
 0x153   : > { %1959 = vmatpush1.bf16.msra.mxu1 %v3676_v35 }
 0x180   : > { %v853_v51 = vpop.xlane.xlu0 %852 }
 0x181   : > { %v948_v43 = vmul.f32 0.00390625, %v853_v51 }
 0x183   : > { %v4484_v18 = vsub.f32 %v4178_v56, %v948_v43  ;;  %v4487_v40 = vsub.f32 %v4181_v0, %v948_v43 }
 0x184   : > { %v856_v46 = vpop.xlane.xlu0 %855 }
 0x185   : > { %6201 = vst [vmem:[#allocation16_spill] sm:$0xff] %v4484_v18  ;;  %v949_v49 = vmul.f32 0.00390625, %v856_v46  ;;  %v1044_v26 = vmul.f32 %v4484_v18, %v4484_v18  ;;  %v1045_v56 = vmul.f32 %v4487_v40, %v4487_v40 }
 0x187   : > { %v4502_v35 = vsub.f32 %v4184_v7, %v949_v49  ;;  %v4505_v0 = vsub.f32 %v4187_v8, %v949_v49  ;;  %v1108_v51 = vadd.f32 %v1045_v56, %v1044_v26  ;;  %v4515_v7 = vadd.f32 %v4275_v61, %v4172_v63 }
 0x188   : > { %v859_v54 = vpop.xlane.xlu1 %858  ;;  %v4525_v26 = vadd.f32 %v4280_v3, %v4175_v2 }
 0x189   : > { %6202 = vst [vmem:[#allocation17_spill] sm:$0xff] %v4505_v0  ;;  %v950_v43 = vmul.f32 0.00390625, %v859_v54  ;;  %1109 = vadd.xlane.f32.xlu0 %v1108_v51  ;;  %v1046_v46 = vmul.f32 %v4502_v35, %v4502_v35  ;;  %v1047_v18 = vmul.f32 %v4505_v0, %v4505_v0  ;;  %v4529_v54 = vadd.f32 %v4289_v14, %v4172_v63 }
 0x18b   : > { %v4518_v8 = vsub.f32 %v4196_v13, %v950_v43  ;;  %v4521_v49 = vsub.f32 %v4201_v16, %v950_v43  ;;  %v1111_v56 = vadd.f32 %v1047_v18, %v1046_v46  ;;  %v4533_v13 = vadd.f32 %v4294_v23, %v4175_v2 }
 0x18c   : > { %v862_v51 = vpop.xlane.xlu1 %861  ;;  %v920_v43 = vadd.f32 %v4525_v26, %v4515_v7 }
 0x18d   : > { %v951_v0 = vmul.f32 0.00390625, %v862_v51  ;;  %918 = vadd.xlane.f32.xlu0 %v917_v59  ;;  %1112 = vadd.xlane.f32.xlu1 %v1111_v56  ;;  %v1048_v16 = vmul.f32 %v4518_v8, %v4518_v8  ;;  %v1049_v61 = vmul.f32 %v4521_v49, %v4521_v49  ;;  %v923_v23 = vadd.f32 %v4533_v13, %v4529_v54 }
 0x18f   : > { %v4540_v3 = vsub.f32 %v4208_v21, %v951_v0  ;;  %v4543_v18 = vsub.f32 %v4211_v22, %v951_v0  ;;  %v1114_v14 = vadd.f32 %v1049_v61, %v1048_v16  ;;  %v4555_v22 = vadd.f32 %v4299_v28, %v4172_v63 }
 0x190   : > { %v865_v59 = vpop.xlane.xlu0 %864  ;;  %v4559_v0 = vadd.f32 %v4304_v37, %v4175_v2 }
 0x191   : > { %6203 = vst [vmem:[#allocation18_spill] sm:$0xff] %v4540_v3  ;;  %v952_v46 = vmul.f32 0.00390625, %v865_v59  ;;  %1115 = vadd.xlane.f32.xlu0 %v1114_v14  ;;  %921 = vadd.xlane.f32.xlu1 %v920_v43  ;;  %v1050_v56 = vmul.f32 %v4540_v3, %v4540_v3  ;;  %v1051_v21 = vmul.f32 %v4543_v18, %v4543_v18 }
 0x192   : > { %v868_v51 = vpop.xlane.xlu1 %867 }
 0x193   : > { %v4562_v16 = vsub.f32 %v4220_v27, %v952_v46  ;;  %v4565_v61 = vsub.f32 %v4225_v30, %v952_v46  ;;  %v953_v14 = vmul.f32 0.00390625, %v868_v51  ;;  %v1117_v43 = vadd.f32 %v1051_v21, %v1050_v56 }
 0x194   : > { %v4577_v27 = vadd.f32 %v4313_v48, %v4172_v63  ;;  %v4581_v30 = vadd.f32 %v4318_v53, %v4175_v2  ;;  %v3681_v53 = vld [vmem:[%s6108_s7 + $0x94] ss:$8 sps:$4 sm:$0xff]   ;;  %v4596_v21 = vadd.f32 %v4323_v57, %v4172_v63  ;;  %v4600_v51 = vadd.f32 %v4328_v11, %v4175_v2 }
 0x195   : > { %v4568_v59 = vsub.f32 %v4230_v33, %v953_v14  ;;  %v4571_v3 = vsub.f32 %v4235_v36, %v953_v14  ;;  %924 = vadd.xlane.f32.xlu0 %v923_v23  ;;  %1118 = vadd.xlane.f32.xlu1 %v1117_v43  ;;  %v1052_v28 = vmul.f32 %v4562_v16, %v4562_v16 }
 0x196   : > { %v1053_v33 = vmul.f32 %v4565_v61, %v4565_v61  ;;  %v926_v36 = vadd.f32 %v4559_v0, %v4555_v22  ;;  %v929_v43 = vadd.f32 %v4581_v30, %v4577_v27  ;;  %1960 = vmatprep.subr.bf16.mxu1 %v3681_v53 }
 0x197   : > { %6204 = vst [vmem:[#allocation19_spill] sm:$0xff] %v4571_v3  ;;  %v1054_v37 = vmul.f32 %v4568_v59, %v4568_v59  ;;  %v1055_v46 = vmul.f32 %v4571_v3, %v4571_v3 }
 0x198   : > { %v871_v23 = vpop.xlane.xlu0 %870  ;;  %v1120_v56 = vadd.f32 %v1053_v33, %v1052_v28  ;;  %v3679_v28 = vld [vmem:[%s6108_s7 + $0x90] ss:$8 sps:$4 sm:$0xff]  }
 0x199   : > { %v954_v48 = vmul.f32 0.00390625, %v871_v23  ;;  %927 = vadd.xlane.f32.xlu1 %v926_v36  ;;  %v1123_v23 = vadd.f32 %v1055_v46, %v1054_v37  ;;  %1961 = vmatpush1.bf16.msra.mxu1 %v3679_v28  ;;  %v4628_v37 = vadd.f32 %v4337_v42, %v4172_v63  ;;  %v932_v46 = vadd.f32 %v4600_v51, %v4596_v21 }
 0x19a   : > { %1121 = vadd.xlane.f32.xlu0 %v1120_v56  ;;  %v874_v14 = vpop.xlane.xlu1 %873  ;;  %v4648_v28 = vadd.f32 %v4355_v34, %v4172_v63 }
 0x19b   : > { %v4608_v33 = vsub.f32 %v4244_v41, %v954_v48  ;;  %v4611_v36 = vsub.f32 %v4249_v44, %v954_v48  ;;  %v955_v57 = vmul.f32 0.00390625, %v874_v14  ;;  %v3684_v44 = vld [vmem:[%s6108_s7 + $0xa4] ss:$8 sps:$4 sm:$0xff]  }
 0x19c   : > { %1962 = vmatprep.subr.bf16.mxu1 %v3684_v44 }
 0x19d   : > { %v4614_v11 = vsub.f32 %v4254_v47, %v955_v57  ;;  %v4617_v56 = vsub.f32 %v4259_v50, %v955_v57  ;;  %1124 = vadd.xlane.f32.xlu1 %v1123_v23  ;;  %v1056_v3 = vmul.f32 %v4608_v33, %v4608_v33  ;;  %v1057_v41 = vmul.f32 %v4611_v36, %v4611_v36  ;;  %v3682_v50 = vld [vmem:[%s6108_s7 + $0xa0] ss:$8 sps:$4 sm:$0xff]  }
 0x19e   : > { %930 = vadd.xlane.f32.xlu0 %v929_v43  ;;  %v4632_v47 = vadd.f32 %v4342_v60, %v4175_v2  ;;  %1963 = vmatpush1.bf16.msra.mxu1 %v3682_v50  ;;  %v3687_v60 = vld [vmem:[%s6108_s7 + $0xb4] ss:$8 sps:$4 sm:$0xff]  }
 0x19f   : > { %v1126_v48 = vadd.f32 %v1057_v41, %v1056_v3  ;;  %v1058_v53 = vmul.f32 %v4614_v11, %v4614_v11  ;;  %v1059_v14 = vmul.f32 %v4617_v56, %v4617_v56  ;;  %v4652_v3 = vadd.f32 %v4360_v9, %v4175_v2  ;;  %v3685_v41 = vld [vmem:[%s6108_s7 + $0xb0] ss:$8 sps:$4 sm:$0xff]   ;;  %1964 = vmatprep.subr.bf16.mxu1 %v3687_v60 }
 0x1a0   : > { %v877_v42 = vpop.xlane.xlu0 %876  ;;  %v935_v23 = vadd.f32 %v4632_v47, %v4628_v37 }
 0x1a1   : > { %v956_v43 = vmul.f32 0.00390625, %v877_v42  ;;  %933 = vadd.xlane.f32.xlu1 %v932_v46  ;;  %v1129_v46 = vadd.f32 %v1059_v14, %v1058_v53  ;;  %v4680_v53 = vadd.f32 %v4397_v52, %v4172_v63  ;;  %v938_v14 = vadd.f32 %v4652_v3, %v4648_v28 }
 0x1a2   : > { %1127 = vadd.xlane.f32.xlu0 %v1126_v48  ;;  %v880_v57 = vpop.xlane.xlu1 %879  ;;  %1965 = vmatpush1.bf16.msra.mxu1 %v3685_v41  ;;  %v4700_v41 = vadd.f32 %v4411_v19, %v4172_v63 }
 0x1a3   : > { %v4660_v44 = vsub.f32 %v4268_v55, %v956_v43  ;;  %v4663_v50 = vsub.f32 %v4273_v5, %v956_v43  ;;  %v957_v34 = vmul.f32 0.00390625, %v880_v57  ;;  %v3690_v5 = vld [vmem:[%s6108_s7 + $0xc4] ss:$8 sps:$4 sm:$0xff]  }
 0x1a4   : > { %1966 = vmatprep.subr.bf16.mxu1 %v3690_v5 }
 0x1a5   : > { %v4666_v9 = vsub.f32 %v4278_v1, %v957_v34  ;;  %v4669_v48 = vsub.f32 %v4283_v4, %v957_v34  ;;  %1130 = vadd.xlane.f32.xlu1 %v1129_v46  ;;  %v1060_v42 = vmul.f32 %v4660_v44, %v4660_v44  ;;  %v1061_v55 = vmul.f32 %v4663_v50, %v4663_v50  ;;  %v3688_v4 = vld [vmem:[%s6108_s7 + $0xc0] ss:$8 sps:$4 sm:$0xff]  }
 0x1a6   : > { %936 = vadd.xlane.f32.xlu0 %v935_v23  ;;  %v4684_v1 = vadd.f32 %v4399_v39, %v4175_v2  ;;  %1967 = vmatpush1.bf16.msra.mxu1 %v3688_v4  ;;  %v3693_v39 = vld [vmem:[%s6108_s7 + $0xd4] ss:$8 sps:$4 sm:$0xff]   ;;  %v4704_v34 = vadd.f32 %v4413_v6, %v4175_v2 }
 0x1a7   : > { %v1132_v43 = vadd.f32 %v1061_v55, %v1060_v42  ;;  %v1062_v60 = vmul.f32 %v4666_v9, %v4666_v9  ;;  %v1063_v57 = vmul.f32 %v4669_v48, %v4669_v48  ;;  %v3691_v55 = vld [vmem:[%s6108_s7 + $0xd0] ss:$8 sps:$4 sm:$0xff]   ;;  %1968 = vmatprep.subr.bf16.mxu1 %v3693_v39  ;;  %v3699_v39 = vld [vmem:[%s6108_s7 + $0xf4] ss:$8 sps:$4 sm:$0xff]  }
 0x1a8   : > { %v883_v52 = vpop.xlane.xlu0 %882  ;;  %v941_v42 = vadd.f32 %v4684_v1, %v4680_v53 }
 0x1a9   : > { %v958_v23 = vmul.f32 0.00390625, %v883_v52  ;;  %939 = vadd.xlane.f32.xlu1 %v938_v14  ;;  %v1135_v19 = vadd.f32 %v1063_v57, %v1062_v60 }
 0x1aa   : > { %1133 = vadd.xlane.f32.xlu0 %v1132_v43  ;;  %v886_v46 = vpop.xlane.xlu1 %885  ;;  %1969 = vmatpush1.bf16.msra.mxu1 %v3691_v55  ;;  %v6207_v55 = vld [vmem:[#allocation4_spill] sm:$0xff] }
 0x1ab   : > { %v4712_v5 = vsub.f32 %v4292_v17, %v958_v23  ;;  %v4715_v4 = vsub.f32 %v4297_v24, %v958_v23  ;;  %v959_v63 = vmul.f32 0.00390625, %v886_v46  ;;  %v3696_v24 = vld [vmem:[%s6108_s7 + $0xe4] ss:$8 sps:$4 sm:$0xff]  }
 0x1ac   : > { %1970 = vmatprep.subr.bf16.mxu1 %v3696_v24 }
 0x1ad   : > { %v4718_v6 = vsub.f32 %v4302_v31, %v959_v63  ;;  %v4721_v2 = vsub.f32 %v4307_v38, %v959_v63  ;;  %1136 = vadd.xlane.f32.xlu1 %v1135_v19  ;;  %v1064_v14 = vmul.f32 %v4712_v5, %v4712_v5  ;;  %v1065_v17 = vmul.f32 %v4715_v4, %v4715_v4  ;;  %v3694_v31 = vld [vmem:[%s6108_s7 + $0xe0] ss:$8 sps:$4 sm:$0xff]   ;;  %v6208_v19 = vld [vmem:[#allocation5_spill] sm:$0xff] }
 0x1ae   : > { %942 = vadd.xlane.f32.xlu0 %v941_v42  ;;  %v944_v38 = vadd.f32 %v4704_v34, %v4700_v41  ;;  %1971 = vmatpush1.bf16.msra.mxu1 %v3694_v31  ;;  %v3697_v42 = vld [vmem:[%s6108_s7 + $0xf0] ss:$8 sps:$4 sm:$0xff]   ;;  %v6209_v31 = vld [vmem:[#allocation6_spill] sm:$0xff] }
 0x1af   : > { %6205 = vst [vmem:[#allocation20_spill] sm:$0xff] %v4718_v6  ;;  %6206 = vst [vmem:[#allocation21_spill] sm:$0xff] %v4721_v2  ;;  %v1138_v43 = vadd.f32 %v1065_v17, %v1064_v14  ;;  %v1066_v60 = vmul.f32 %v4718_v6, %v4718_v6  ;;  %v1067_v57 = vmul.f32 %v4721_v2, %v4721_v2  ;;  %1972 = vmatprep.subr.bf16.mxu1 %v3699_v39 }
 0x1b0   : > { %v889_v52 = vpop.xlane.xlu0 %888 }
 0x1b1   : > { %v960_v23 = vmul.f32 0.00390625, %v889_v52  ;;  %945 = vadd.xlane.f32.xlu1 %v944_v38  ;;  %v1141_v24 = vadd.f32 %v1067_v57, %v1066_v60  ;;  %v6211_v52 = vld [vmem:[#allocation7_spill] sm:$0xff] }
 0x1b2   : > { %1139 = vadd.xlane.f32.xlu0 %v1138_v43  ;;  %v892_v46 = vpop.xlane.xlu1 %891  ;;  %1973 = vmatpush1.bf16.msra.mxu1 %v3697_v42 }
 0x1b3   : > { %v4746_v63 = vsub.f32 %v6207_v55, %v960_v23  ;;  %v4749_v14 = vsub.f32 %v6208_v19, %v960_v23  ;;  %v961_v17 = vmul.f32 0.00390625, %v892_v46 }
 0x1b5   : > { %v4752_v38 = vsub.f32 %v6209_v31, %v961_v17  ;;  %v4755_v43 = vsub.f32 %v6211_v52, %v961_v17  ;;  %1142 = vadd.xlane.f32.xlu1 %v1141_v24  ;;  %v1068_v2 = vmul.f32 %v4746_v63, %v4746_v63  ;;  %v1069_v55 = vmul.f32 %v4749_v14, %v4749_v14  ;;  %v6214_v31 = vld [vmem:[#allocation9_spill] sm:$0xff] }
 0x1b7   : > { %6210 = vst [vmem:[#allocation4_spill] sm:$0xff] %v4752_v38  ;;  %6212 = vst [vmem:[#allocation5_spill] sm:$0xff] %v4755_v43  ;;  %v1144_v6 = vadd.f32 %v1069_v55, %v1068_v2  ;;  %v1070_v23 = vmul.f32 %v4752_v38, %v4752_v38  ;;  %v1071_v60 = vmul.f32 %v4755_v43, %v4755_v43  ;;  %v6216_v55 = vld [vmem:[#allocation10_spill] sm:$0xff] }
 0x1b8   : > { %v895_v57 = vpop.xlane.xlu0 %894 }
 0x1b9   : > { %v962_v39 = vmul.f32 0.00390625, %v895_v57  ;;  %1145 = vadd.xlane.f32.xlu0 %v1144_v6  ;;  %v1147_v46 = vadd.f32 %v1071_v60, %v1070_v23  ;;  %v6218_v60 = vld [vmem:[#allocation8_spill] sm:$0xff] }
 0x1ba   : > { %v898_v42 = vpop.xlane.xlu1 %897 }
 0x1bb   : > { %v4766_v19 = vsub.f32 %v4340_v45, %v962_v39  ;;  %v4769_v17 = vsub.f32 %v4345_v10, %v962_v39  ;;  %v963_v24 = vmul.f32 0.00390625, %v898_v42  ;;  %1148 = vadd.xlane.f32.xlu1 %v1147_v46 }
 0x1bc   : > { %v901_v2 = vpop.xlane.xlu0 %900 }
 0x1bd   : > { %6213 = vst [vmem:[#allocation6_spill] sm:$0xff] %v4769_v17  ;;  %v4772_v52 = vsub.f32 %v6214_v31, %v963_v24  ;;  %v4775_v38 = vsub.f32 %v6216_v55, %v963_v24  ;;  %v964_v43 = vmul.f32 0.00390625, %v901_v2  ;;  %v1072_v6 = vmul.f32 %v4766_v19, %v4766_v19  ;;  %v6220_v55 = vld [vmem:[#allocation11_spill] sm:$0xff] }
 0x1be   : > { %v904_v23 = vpop.xlane.xlu1 %903  ;;  %v1073_v45 = vmul.f32 %v4769_v17, %v4769_v17 }
 0x1bf   : > { %6215 = vst [vmem:[#allocation7_spill] sm:$0xff] %v4772_v52  ;;  %6217 = vst [vmem:[#allocation9_spill] sm:$0xff] %v4775_v38  ;;  %v4782_v10 = vsub.f32 %v4349_v25, %v964_v43  ;;  %v4785_v57 = vsub.f32 %v6218_v60, %v964_v43  ;;  %v965_v39 = vmul.f32 0.00390625, %v904_v23  ;;  %v1074_v46 = vmul.f32 %v4772_v52, %v4772_v52 }
 0x1c0   : > { %v907_v42 = vpop.xlane.xlu0 %906  ;;  %v1150_v24 = vadd.f32 %v1073_v45, %v1072_v6  ;;  %v1075_v2 = vmul.f32 %v4775_v38, %v4775_v38  ;;  %v6222_v45 = vld [vmem:[#allocation12_spill] sm:$0xff] }
 0x1c1   : > { %v4792_v31 = vsub.f32 %v4367_v58, %v965_v39  ;;  %v4795_v17 = vsub.f32 %v6220_v55, %v965_v39  ;;  %v966_v25 = vmul.f32 0.00390625, %v907_v42  ;;  %v1076_v43 = vmul.f32 %v4782_v10, %v4782_v10 }
 0x1c2   : > { %1151 = vadd.xlane.f32.xlu0 %v1150_v24  ;;  %v910_v23 = vpop.xlane.xlu1 %909  ;;  %v1153_v60 = vadd.f32 %v1075_v2, %v1074_v46  ;;  %v1077_v52 = vmul.f32 %v4785_v57, %v4785_v57 }
 0x1c3   : > { %6219 = vst [vmem:[#allocation10_spill] sm:$0xff] %v4792_v31  ;;  %v4802_v6 = vsub.f32 %v4377_v62, %v966_v25  ;;  %v4805_v38 = vsub.f32 %v6222_v45, %v966_v25  ;;  %v967_v58 = vmul.f32 0.00390625, %v910_v23  ;;  %v1078_v39 = vmul.f32 %v4792_v31, %v4792_v31 }
 0x1c4   : > { %1154 = vadd.xlane.f32.xlu1 %v1153_v60  ;;  %v913_v42 = vpop.xlane.xlu0 %912  ;;  %v1156_v55 = vadd.f32 %v1077_v52, %v1076_v43  ;;  %v1079_v24 = vmul.f32 %v4795_v17, %v4795_v17  ;;  %v6225_v43 = vld [vmem:[#allocation13_spill] sm:$0xff] }
 0x1c5   : > { %6221 = vst [vmem:[#allocation8_spill] sm:$0xff] %v4802_v6  ;;  %v4812_v46 = vsub.f32 %v4389_v20, %v967_v58  ;;  %v4815_v2 = vsub.f32 %v4393_v12, %v967_v58  ;;  %v968_v62 = vmul.f32 0.00390625, %v913_v42  ;;  %v1080_v25 = vmul.f32 %v4802_v6, %v4802_v6 }
 0x1c6   : > { %1157 = vadd.xlane.f32.xlu0 %v1156_v55  ;;  %v916_v23 = vpop.xlane.xlu1 %915  ;;  %v1159_v45 = vadd.f32 %v1079_v24, %v1078_v39  ;;  %v1081_v60 = vmul.f32 %v4805_v38, %v4805_v38  ;;  %v6227_v55 = vld [vmem:[#allocation14_spill] sm:$0xff]  ;;  %v6229_v24 = vld [vmem:[#allocation15_spill] sm:$0xff] }
 0x1c7   : > { %6223 = vst [vmem:[#allocation11_spill] sm:$0xff] %v4812_v46  ;;  %v4822_v52 = vsub.f32 %v4403_v29, %v968_v62  ;;  %v4825_v31 = vsub.f32 %v6225_v43, %v968_v62  ;;  %v969_v20 = vmul.f32 0.00390625, %v916_v23  ;;  %v1082_v12 = vmul.f32 %v4812_v46, %v4812_v46 }
 0x1c8   : > { %1160 = vadd.xlane.f32.xlu1 %v1159_v45  ;;  %v1162_v58 = vadd.f32 %v1081_v60, %v1080_v25  ;;  %v1083_v42 = vmul.f32 %v4815_v2, %v4815_v2 }
 0x1c9   : > { %6224 = vst [vmem:[#allocation12_spill] sm:$0xff] %v4822_v52  ;;  %6226 = vst [vmem:[#allocation13_spill] sm:$0xff] %v4825_v31  ;;  %v4832_v39 = vsub.f32 %v6227_v55, %v969_v20  ;;  %v4835_v6 = vsub.f32 %v6229_v24, %v969_v20  ;;  %v1084_v29 = vmul.f32 %v4822_v52, %v4822_v52 }
 0x1ca   : > { %v1085_v62 = vmul.f32 %v4825_v31, %v4825_v31  ;;  %1163 = vadd.xlane.f32.xlu0 %v1162_v58  ;;  %v1165_v23 = vadd.f32 %v1083_v42, %v1082_v12 }
 0x1cb   : > { %6228 = vst [vmem:[#allocation14_spill] sm:$0xff] %v4832_v39  ;;  %6230 = vst [vmem:[#allocation15_spill] sm:$0xff] %v4835_v6  ;;  %v1086_v25 = vmul.f32 %v4832_v39, %v4832_v39  ;;  %v1087_v45 = vmul.f32 %v4835_v6, %v4835_v6 }
 0x1cc   : > { %v1168_v43 = vadd.f32 %v1085_v62, %v1084_v29  ;;  %1166 = vadd.xlane.f32.xlu1 %v1165_v23 }
 0x1cd   : > { %v1171_v60 = vadd.f32 %v1087_v45, %v1086_v25 }
 0x1ce   : > { %1169 = vadd.xlane.f32.xlu0 %v1168_v43 }
 0x1d0   : > { %1172 = vadd.xlane.f32.xlu1 %v1171_v60 }
 0x216   : > { %v1110_v20 = vpop.xlane.xlu0 %1109 }
 0x217   : > { %v1204_v55 = vmul.f32 0.00390625, %v1110_v20 }
 0x219   : > { %v1236_v24 = vadd.f32 1e-05, %v1204_v55 }
 0x21a   : > { %v1113_v52 = vpop.xlane.xlu1 %1112  ;;  %v919_v46 = vpop.xlane.xlu0 %918 }
 0x21b   : > { %3716 = vrsqrt.f32 %v1236_v24  ;;  %v1205_v31 = vmul.f32 0.00390625, %v1113_v52  ;;  %v970_v58 = vmul.f32 0.00390625, %v919_v46 }
 0x21d   : > { %v1237_v12 = vadd.f32 1e-05, %v1205_v31  ;;  %v4846_v42 = vsub.f32 %v4491_v15, %v970_v58  ;;  %v4849_v29 = vsub.f32 %v4495_v32, %v970_v58  ;;  %v849_v31 = vld [vmem:[%s6106_s5] sm:$0x3] }
 0x21e   : > { %v922_v62 = vpop.xlane.xlu1 %921  ;;  %v1116_v23 = vpop.xlane.xlu0 %1115 }
 0x21f   : > { %6231 = vst [vmem:[#allocation22_spill] sm:$0xff] %v4846_v42  ;;  %6232 = vst [vmem:[#allocation23_spill] sm:$0xff] %v4849_v29  ;;  %3718 = vrsqrt.f32 %v1237_v12  ;;  %v971_v43 = vmul.f32 0.00390625, %v922_v62  ;;  %v1088_v25 = vmul.f32 %v4846_v42, %v4846_v42  ;;  %v1206_v45 = vmul.f32 0.00390625, %v1116_v23  ;;  %v850_v12 = vld [vmem:[%s6107_s6] sm:$0x3] }
 0x220   : > { %v1089_v60 = vmul.f32 %v4849_v29, %v4849_v29  ;;  %v6235_v62 = vld [vmem:[#allocation2_spill] sm:$0xff] }
 0x221   : > { %v4859_v15 = vsub.f32 %v4515_v7, %v971_v43  ;;  %v4862_v32 = vsub.f32 %v4525_v26, %v971_v43  ;;  %v4870_v23 = vrot.slane %v849_v31, %v6235_v62  ;;  %v1238_v7 = vadd.f32 1e-05, %v1206_v45  ;;  %v6236_v43 = vld [vmem:[#allocation3_spill] sm:$0xff] }
 0x222   : > { %v1119_v46 = vpop.xlane.xlu1 %1118  ;;  %v925_v52 = vpop.xlane.xlu0 %924  ;;  %v1174_v20 = vadd.f32 %v1089_v60, %v1088_v25  ;;  %v4875_v29 = vrot.slane %v849_v31, %v6236_v43 }
 0x223   : > { %6233 = vst [vmem:[#allocation24_spill] sm:$0xff] %v4859_v15  ;;  %6234 = vst [vmem:[#allocation25_spill] sm:$0xff] %v4862_v32  ;;  %v1207_v55 = vmul.f32 0.00390625, %v1119_v46  ;;  %v972_v24 = vmul.f32 0.00390625, %v925_v52  ;;  %v1090_v58 = vmul.f32 %v4859_v15, %v4859_v15  ;;  %v1091_v26 = vmul.f32 %v4862_v32, %v4862_v32  ;;  %v6238_v15 = vld [vmem:[#allocation16_spill] sm:$0xff] }
 0x224   : > { %1175 = vadd.xlane.f32.xlu0 %v1174_v20  ;;  %v4886_v20 = vrot.slane %v850_v12, %v6236_v43  ;;  %3720 = vrsqrt.f32 %v1238_v7 }
 0x225   : > { %v3717_v25 = vpop.eup %3716  ;;  %v1239_v60 = vadd.f32 1e-05, %v1207_v55  ;;  %v4878_v46 = vsub.f32 %v4529_v54, %v972_v24  ;;  %v4881_v52 = vsub.f32 %v4533_v13, %v972_v24  ;;  %v1177_v6 = vadd.f32 %v1091_v26, %v1090_v58 }
 0x226   : > { %v1300_v42 = vmul.f32 %v3717_v25, %v6238_v15  ;;  %v928_v39 = vpop.xlane.xlu1 %927  ;;  %v1301_v45 = vmul.f32 %v3717_v25, %v4487_v40  ;;  %v4893_v13 = vrot.slane %v850_v12, %v6235_v62 }
 0x227   : > { %6237 = vst [vmem:[#allocation26_spill] sm:$0xff] %v4881_v52  ;;  %v973_v32 = vmul.f32 0.00390625, %v928_v39  ;;  %v1122_v31 = vpop.xlane.xlu0 %1121  ;;  %v1092_v55 = vmul.f32 %v4878_v46, %v4878_v46  ;;  %v1093_v54 = vmul.f32 %v4881_v52, %v4881_v52  ;;  %1178 = vadd.xlane.f32.xlu1 %v1177_v6  ;;  %3722 = vrsqrt.f32 %v1239_v60  ;;  %v6240_v52 = vld [vmem:[#allocation17_spill] sm:$0xff] }
 0x228   : > { %v1375_v15 = vmul.f32 %v4870_v23, %v1300_v42  ;;  %v1208_v24 = vmul.f32 0.00390625, %v1122_v31  ;;  %v1376_v40 = vmul.f32 %v4875_v29, %v1301_v45 }
 0x229   : > { %v3719_v58 = vpop.eup %3718  ;;  %v4898_v39 = vsub.f32 %v4555_v22, %v973_v32  ;;  %v4901_v26 = vsub.f32 %v4559_v0, %v973_v32  ;;  %v1180_v25 = vadd.f32 %v1093_v54, %v1092_v55 }
 0x22a   : > { %v1302_v43 = vmul.f32 %v3719_v58, %v4502_v35  ;;  %v1240_v12 = vadd.f32 1e-05, %v1208_v24  ;;  %v1125_v62 = vpop.xlane.xlu1 %1124  ;;  %v1303_v42 = vmul.f32 %v3719_v58, %v6240_v52  ;;  %v1451_v7 = vadd.f32 %v4886_v20, %v1376_v40 }
 0x22b   : > { %6239 = vst [vmem:[#allocation16_spill] sm:$0xff] %v4901_v26  ;;  %v1209_v6 = vmul.f32 0.00390625, %v1125_v62  ;;  %v931_v31 = vpop.xlane.xlu0 %930  ;;  %1181 = vadd.xlane.f32.xlu0 %v1180_v25  ;;  %v1094_v60 = vmul.f32 %v4898_v39, %v4898_v39  ;;  %v1095_v22 = vmul.f32 %v4901_v26, %v4901_v26  ;;  %v1450_v0 = vadd.f32 %v4893_v13, %v1375_v15 }
 0x22c   : > { %v1377_v32 = vmul.f32 %v4870_v23, %v1302_v43  ;;  %3724 = vrsqrt.f32 %v1240_v12  ;;  %v974_v35 = vmul.f32 0.00390625, %v931_v31  ;;  %v1378_v45 = vmul.f32 %v4875_v29, %v1303_v42 }
 0x22d   : > { %v1241_v52 = vadd.f32 1e-05, %v1209_v6  ;;  %v1183_v55 = vadd.f32 %v1095_v22, %v1094_v60  ;;  %vm1515_vm1 = vcmp.ge.f32.partialorder %v1451_v7, 0.0  ;;  %v1579_v62 = vmul.f32 0.01, %v1451_v7 }
 0x22e   : > { %v4914_v54 = vsub.f32 %v4577_v27, %v974_v35  ;;  %v4917_v24 = vsub.f32 %v4581_v30, %v974_v35  ;;  %v934_v40 = vpop.xlane.xlu1 %933  ;;  %v1453_v58 = vadd.f32 %v4886_v20, %v1378_v45  ;;  %v1452_v15 = vadd.f32 %v4893_v13, %v1377_v32  ;;  %v3721_v22 = vpop.eup %3720 }
 0x22f   : > { %3726 = vrsqrt.f32 %v1241_v52  ;;  %v975_v43 = vmul.f32 0.00390625, %v934_v40  ;;  %v1128_v25 = vpop.xlane.xlu0 %1127  ;;  %1184 = vadd.xlane.f32.xlu1 %v1183_v55  ;;  %v1643_v12 = vsel %vm1515_vm1, %v1451_v7, %v1579_v62  ;;  %vm1514_vm2 = vcmp.ge.f32.partialorder %v1450_v0, 0.0 }
 0x230   : > { %6241 = vst [vmem:[#allocation17_spill] sm:$0xff] %v4914_v54  ;;  %6242 = vst [vmem:[#allocation27_spill] sm:$0xff] %v4917_v24  ;;  %v1210_v42 = vmul.f32 0.00390625, %v1128_v25  ;;  %v1096_v6 = vmul.f32 %v4914_v54, %v4914_v54  ;;  %v1097_v27 = vmul.f32 %v4917_v24, %v4917_v24  ;;  %vm1517_vm3 = vcmp.ge.f32.partialorder %v1453_v58, 0.0 }
 0x231   : > { %v4926_v30 = vsub.f32 %v4596_v21, %v975_v43  ;;  %v4929_v31 = vsub.f32 %v4600_v51, %v975_v43  ;;  %v1581_v60 = vmul.f32 0.01, %v1453_v58  ;;  %vm1516_vm4 = vcmp.ge.f32.partialorder %v1452_v15, 0.0  ;;  %v3723_v55 = vpop.eup %3722 }
 0x232   : > { %v1242_v32 = vadd.f32 1e-05, %v1210_v42  ;;  %v1131_v7 = vpop.xlane.xlu1 %1130  ;;  %v1186_v35 = vadd.f32 %v1097_v27, %v1096_v6  ;;  %v1578_v45 = vmul.f32 0.01, %v1450_v0  ;;  %v1580_v52 = vmul.f32 0.01, %v1452_v15 }
 0x233   : > { %v1211_v62 = vmul.f32 0.00390625, %v1131_v7  ;;  %v937_v40 = vpop.xlane.xlu0 %936  ;;  %v1645_v25 = vsel %vm1517_vm3, %v1453_v58, %v1581_v60  ;;  %v1098_v24 = vmul.f32 %v4926_v30, %v4926_v30  ;;  %v1099_v21 = vmul.f32 %v4929_v31, %v4929_v31 }
 0x234   : > { %3728 = vrsqrt.f32 %v1242_v32  ;;  %v976_v51 = vmul.f32 0.00390625, %v937_v40  ;;  %1187 = vadd.xlane.f32.xlu0 %v1186_v35  ;;  %v1707_v43 = vpack.c.bf16 %v1645_v25, %v1643_v12  ;;  %v1642_v42 = vsel %vm1514_vm2, %v1450_v0, %v1578_v45 }
 0x235   : > { %v1243_v54 = vadd.f32 1e-05, %v1211_v62  ;;  %v1644_v6 = vsel %vm1516_vm4, %v1452_v15, %v1580_v52  ;;  %v1189_v27 = vadd.f32 %v1099_v21, %v1098_v24  ;;  %v1305_v7 = vmul.f32 %v3721_v22, %v4521_v49 }
 0x236   : > { %v3725_v26 = vpop.eup %3724  ;;  %v4939_v58 = vsub.f32 %v4628_v37, %v976_v51  ;;  %v4942_v60 = vsub.f32 %v4632_v47, %v976_v51  ;;  %1974 = vmatprep.mubr.bf16.mxu1 %v1707_v43  ;;  %v940_v32 = vpop.xlane.xlu1 %939  ;;  %v1706_v40 = vpack.c.bf16 %v1644_v6, %v1642_v42  ;;  %v1307_v12 = vmul.f32 %v3723_v55, %v4543_v18 }
 0x237   : > { %v977_v35 = vmul.f32 0.00390625, %v940_v32  ;;  %v1134_v0 = vpop.xlane.xlu0 %1133  ;;  %1190 = vadd.xlane.f32.xlu1 %v1189_v27  ;;  %v1380_v24 = vmul.f32 %v4875_v29, %v1305_v7  ;;  %3730 = vrsqrt.f32 %v1243_v54  ;;  %v1304_v52 = vmul.f32 %v3721_v22, %v4518_v8  ;;  %v6243_v54 = vld [vmem:[#allocation18_spill] sm:$0xff] }
 0x238   : > { %1975 = vmatmul.mubr.bf16.vlgmr.msra.gmra.mrb[32].mxu1 %v1706_v40  ;;  %v1212_v15 = vmul.f32 0.00390625, %v1134_v0  ;;  %v1100_v49 = vmul.f32 %v4939_v58, %v4939_v58  ;;  %v1101_v37 = vmul.f32 %v4942_v60, %v4942_v60  ;;  %v1382_v45 = vmul.f32 %v4875_v29, %v1307_v12 }
 0x239   : > { %v3727_v47 = vpop.eup %3726  ;;  %v4953_v18 = vmul.f32 %v3725_v26, %v4562_v16  ;;  %v4956_v62 = vsub.f32 %v4648_v28, %v977_v35  ;;  %v1455_v6 = vadd.f32 %v4886_v20, %v1380_v24  ;;  %v1306_v7 = vmul.f32 %v3723_v55, %v6243_v54 }
 0x23a   : > { %v1244_v25 = vadd.f32 1e-05, %v1212_v15  ;;  %v1137_v21 = vpop.xlane.xlu1 %1136  ;;  %v1192_v51 = vadd.f32 %v1101_v37, %v1100_v49  ;;  %v1457_v27 = vadd.f32 %v4886_v20, %v1382_v45  ;;  %v1309_v32 = vmul.f32 %v3725_v26, %v4565_v61 }
 0x23b   : > { %v1213_v43 = vmul.f32 0.00390625, %v1137_v21  ;;  %v943_v42 = vpop.xlane.xlu0 %942  ;;  %v4963_v8 = vsub.f32 %v4652_v3, %v977_v35  ;;  %v1379_v28 = vmul.f32 %v4870_v23, %v1304_v52  ;;  %v1310_v22 = vmul.f32 %v3727_v47, %v4568_v59  ;;  %v6244_v3 = vld [vmem:[#allocation19_spill] sm:$0xff] }
 0x23c   : > { %v978_v16 = vmul.f32 0.00390625, %v943_v42  ;;  %1193 = vadd.xlane.f32.xlu0 %v1192_v51  ;;  %vm1519_vm5 = vcmp.ge.f32.partialorder %v1455_v6, 0.0  ;;  %vm1521_vm6 = vcmp.ge.f32.partialorder %v1457_v27, 0.0  ;;  %v1583_v40 = vmul.f32 0.01, %v1455_v6 }
 0x23d   : > { %v1245_v0 = vadd.f32 1e-05, %v1213_v43  ;;  %v1585_v55 = vmul.f32 0.01, %v1457_v27  ;;  %v1381_v61 = vmul.f32 %v4870_v23, %v1306_v7  ;;  %v1311_v26 = vmul.f32 %v3727_v47, %v6244_v3 }
 0x23e   : > { %v3729_v12 = vpop.eup %3728  ;;  %v4968_v15 = vsub.f32 %v4680_v53, %v978_v16  ;;  %v946_v49 = vpop.xlane.xlu1 %945  ;;  %3732 = vrsqrt.f32 %v1244_v25  ;;  %v4973_v35 = vsub.f32 %v4684_v1, %v978_v16  ;;  %v1102_v59 = vmul.f32 %v4956_v62, %v4956_v62 }
 0x23f   : > { %v1140_v37 = vpop.xlane.xlu0 %1139  ;;  %v1647_v24 = vsel %vm1519_vm5, %v1455_v6, %v1583_v40  ;;  %v1649_v45 = vsel %vm1521_vm6, %v1457_v27, %v1585_v55  ;;  %v1454_v52 = vadd.f32 %v4893_v13, %v1379_v28  ;;  %v1456_v53 = vadd.f32 %v4893_v13, %v1381_v61 }
 0x240   : > { %v4980_v21 = vmul.f32 %v3729_v12, %v4608_v33  ;;  %v1709_v51 = vpack.c.bf16 %v1649_v45, %v1647_v24  ;;  %v1214_v43 = vmul.f32 0.00390625, %v1140_v37  ;;  %v1103_v47 = vmul.f32 %v4963_v8, %v4963_v8 }
 0x241   : > { %v1313_v1 = vmul.f32 %v3729_v12, %v4611_v36  ;;  %3734 = vrsqrt.f32 %v1245_v0  ;;  %v979_v25 = vmul.f32 0.00390625, %v946_v49  ;;  %v1104_v6 = vmul.f32 %v4968_v15, %v4968_v15  ;;  %v3731_v27 = vpop.eup %3730 }
 0x242   : > { %v1143_v42 = vpop.xlane.xlu1 %1142  ;;  %1984 = vmatprep.mubr.bf16.mxu1 %v1709_v51  ;;  %vm1518_vm7 = vcmp.ge.f32.partialorder %v1454_v52, 0.0  ;;  %vm1520_vm8 = vcmp.ge.f32.partialorder %v1456_v53, 0.0  ;;  %v1582_v54 = vmul.f32 0.01, %v1454_v52  ;;  %v1584_v33 = vmul.f32 0.01, %v1456_v53 }
 0x243   : > { %v1246_v7 = vadd.f32 1e-05, %v1214_v43  ;;  %v1195_v16 = vadd.f32 %v1103_v47, %v1102_v59  ;;  %v1215_v28 = vmul.f32 0.00390625, %v1143_v42  ;;  %v1105_v40 = vmul.f32 %v4973_v35, %v4973_v35 }
 0x244   : > { %v1646_v55 = vsel %vm1518_vm7, %v1454_v52, %v1582_v54  ;;  %v1648_v36 = vsel %vm1520_vm8, %v1456_v53, %v1584_v33  ;;  %v1384_v12 = vmul.f32 %v4875_v29, %v1309_v32  ;;  %v1386_v0 = vmul.f32 %v4875_v29, %v1311_v26 }
 0x245   : > { %v1314_v49 = vmul.f32 %v3731_v27, %v4614_v11  ;;  %v1708_v61 = vpack.c.bf16 %v1648_v36, %v1646_v55  ;;  %1196 = vadd.xlane.f32.xlu1 %v1195_v16  ;;  %v1247_v3 = vadd.f32 1e-05, %v1215_v28  ;;  %v1198_v37 = vadd.f32 %v1105_v40, %v1104_v6 }
 0x246   : > { %v1146_v24 = vpop.xlane.xlu0 %1145  ;;  %v4993_v45 = vsub.f32 %v4700_v41, %v979_v25  ;;  %v4996_v59 = vsub.f32 %v4704_v34, %v979_v25  ;;  %v1459_v52 = vadd.f32 %v4886_v20, %v1384_v12  ;;  %v1461_v53 = vadd.f32 %v4886_v20, %v1386_v0 }
 0x247   : > { %1985 = vmatmul.mubr.bf16.gmra.mrb[36].mxu1 %v1708_v61  ;;  %3736 = vrsqrt.f32 %v1246_v7  ;;  %1199 = vadd.xlane.f32.xlu0 %v1198_v37  ;;  %v1383_v11 = vmul.f32 %v4870_v23, %v4953_v18  ;;  %v1385_v32 = vmul.f32 %v4870_v23, %v1310_v22  ;;  %v1216_v26 = vmul.f32 0.00390625, %v1146_v24 }
 0x248   : > { %v3733_v51 = vpop.eup %3732  ;;  %vm1523_vm9 = vcmp.ge.f32.partialorder %v1459_v52, 0.0  ;;  %vm1525_vm10 = vcmp.ge.f32.partialorder %v1461_v53, 0.0  ;;  %v1587_v41 = vmul.f32 0.01, %v1459_v52  ;;  %v1589_v43 = vmul.f32 0.01, %v1461_v53  ;;  %v1149_v22 = vpop.xlane.xlu1 %1148 }
 0x249   : > { %v1315_v34 = vmul.f32 %v3731_v27, %v4617_v56  ;;  %3738 = vrsqrt.f32 %v1247_v3  ;;  %v1458_v47 = vadd.f32 %v4893_v13, %v1383_v11  ;;  %v1460_v25 = vadd.f32 %v4893_v13, %v1385_v32 }
 0x24a   : > { %v1651_v42 = vsel %vm1523_vm9, %v1459_v52, %v1587_v41  ;;  %v1653_v6 = vsel %vm1525_vm10, %v1461_v53, %v1589_v43  ;;  %v1248_v54 = vadd.f32 1e-05, %v1216_v26  ;;  %v1106_v18 = vmul.f32 %v4993_v45, %v4993_v45 }
 0x24b   : > { %v3735_v33 = vpop.eup %3734  ;;  %v1711_v7 = vpack.c.bf16 %v1653_v6, %v1651_v42  ;;  %vm1522_vm11 = vcmp.ge.f32.partialorder %v1458_v47, 0.0  ;;  %vm1524_vm12 = vcmp.ge.f32.partialorder %v1460_v25, 0.0  ;;  %v1586_v16 = vmul.f32 0.01, %v1458_v47 }
 0x24c   : > { %v1588_v28 = vmul.f32 0.01, %v1460_v25  ;;  %3740 = vrsqrt.f32 %v1248_v54  ;;  %v1107_v56 = vmul.f32 %v4996_v59, %v4996_v59  ;;  %v1217_v27 = vmul.f32 0.00390625, %v1149_v22 }
 0x24d   : > { %1994 = vmatprep.mubr.bf16.mxu1 %v1711_v7  ;;  %v1388_v40 = vmul.f32 %v4875_v29, %v1313_v1  ;;  %v1390_v55 = vmul.f32 %v4875_v29, %v1315_v34  ;;  %v1387_v36 = vmul.f32 %v4870_v23, %v4980_v21  ;;  %v1650_v12 = vsel %vm1522_vm11, %v1458_v47, %v1586_v16 }
 0x24e   : > { %v1652_v0 = vsel %vm1524_vm12, %v1460_v25, %v1588_v28  ;;  %v1201_v61 = vadd.f32 %v1107_v56, %v1106_v18  ;;  %v1389_v3 = vmul.f32 %v4870_v23, %v1314_v49  ;;  %v1316_v1 = vmul.f32 %v3733_v51, %v4660_v44 }
 0x24f   : > { %v1152_v37 = vpop.xlane.xlu0 %1151  ;;  %v1710_v24 = vpack.c.bf16 %v1652_v0, %v1650_v12  ;;  %v1463_v52 = vadd.f32 %v4886_v20, %v1388_v40  ;;  %v1465_v53 = vadd.f32 %v4886_v20, %v1390_v55  ;;  %v1462_v11 = vadd.f32 %v4893_v13, %v1387_v36  ;;  %v6245_v0 = vld [vmem:[#allocation20_spill] sm:$0xff] }
 0x250   : > { %v1317_v32 = vmul.f32 %v3733_v51, %v4663_v50  ;;  %v1318_v26 = vmul.f32 %v3735_v33, %v4666_v9  ;;  %1202 = vadd.xlane.f32.xlu1 %v1201_v61  ;;  %v1464_v21 = vadd.f32 %v4893_v13, %v1389_v3  ;;  %v1319_v47 = vmul.f32 %v3735_v33, %v4669_v48 }
 0x251   : > { %v1155_v41 = vpop.xlane.xlu1 %1154  ;;  %v3737_v43 = vpop.eup %3736  ;;  %1995 = vmatmul.mubr.bf16.gmra.mrb[40].mxu1 %v1710_v24  ;;  %vm1527_vm13 = vcmp.ge.f32.partialorder %v1463_v52, 0.0  ;;  %vm1529_vm14 = vcmp.ge.f32.partialorder %v1465_v53, 0.0  ;;  %v1591_v49 = vmul.f32 0.01, %v1463_v52  ;;  %v1593_v34 = vmul.f32 0.01, %v1465_v53 }
 0x252   : > { %v1249_v25 = vadd.f32 1e-05, %v1217_v27  ;;  %vm1526_vm15 = vcmp.ge.f32.partialorder %v1462_v11, 0.0  ;;  %vm1528_vm0 = vcmp.ge.f32.partialorder %v1464_v21, 0.0  ;;  %v1590_v9 = vmul.f32 0.01, %v1462_v11 }
 0x253   : > { %v1158_v44 = vpop.xlane.xlu0 %1157  ;;  %v3739_v42 = vpop.eup %3738  ;;  %v1655_v50 = vsel %vm1527_vm13, %v1463_v52, %v1591_v49  ;;  %v1657_v51 = vsel %vm1529_vm14, %v1465_v53, %v1593_v34  ;;  %v1592_v6 = vmul.f32 0.01, %v1464_v21  ;;  %v1218_v18 = vmul.f32 0.00390625, %v1152_v37 }
 0x254   : > { %v1713_v54 = vpack.c.bf16 %v1657_v51, %v1655_v50  ;;  %v1219_v22 = vmul.f32 0.00390625, %v1155_v41  ;;  %v1220_v7 = vmul.f32 0.00390625, %v1158_v44  ;;  %v1320_v28 = vmul.f32 %v3737_v43, %v4712_v5 }
 0x255   : > { %v1161_v16 = vpop.xlane.xlu1 %1160  ;;  %v1654_v56 = vsel %vm1526_vm15, %v1462_v11, %v1590_v9  ;;  %v1656_v40 = vsel %vm1528_vm0, %v1464_v21, %v1592_v6  ;;  %v1392_v48 = vmul.f32 %v4875_v29, %v1317_v32  ;;  %v1321_v27 = vmul.f32 %v3737_v43, %v4715_v4  ;;  %v6246_v4 = vld [vmem:[#allocation21_spill] sm:$0xff] }
 0x256   : > { %v3741_v33 = vpop.eup %3740  ;;  %3742 = vrsqrt.f32 %v1249_v25  ;;  %2004 = vmatprep.mubr.bf16.mxu1 %v1713_v54  ;;  %v1712_v55 = vpack.c.bf16 %v1656_v40, %v1654_v56  ;;  %v1250_v36 = vadd.f32 1e-05, %v1218_v18  ;;  %v1322_v61 = vmul.f32 %v3739_v42, %v6245_v0 }
 0x257   : > { %v1164_v12 = vpop.xlane.xlu0 %1163  ;;  %v1251_v3 = vadd.f32 1e-05, %v1219_v22  ;;  %v1221_v37 = vmul.f32 0.00390625, %v1161_v16  ;;  %v1394_v24 = vmul.f32 %v4875_v29, %v1319_v47  ;;  %v1252_v52 = vadd.f32 1e-05, %v1220_v7 }
 0x258   : > { %v1467_v5 = vadd.f32 %v4886_v20, %v1392_v48  ;;  %v1391_v53 = vmul.f32 %v4870_v23, %v1316_v1  ;;  %v1393_v11 = vmul.f32 %v4870_v23, %v1318_v26  ;;  %v1323_v21 = vmul.f32 %v3739_v42, %v6246_v4 }
 0x259   : > { %v1167_v32 = vpop.xlane.xlu1 %1166  ;;  %2005 = vmatmul.mubr.bf16.gmra.mrb[44].mxu1 %v1712_v55  ;;  %3744 = vrsqrt.f32 %v1250_v36  ;;  %v1469_v41 = vadd.f32 %v4886_v20, %v1394_v24  ;;  %v1222_v43 = vmul.f32 0.00390625, %v1164_v12  ;;  %v1325_v49 = vmul.f32 %v3741_v33, %v4749_v14 }
 0x25a   : > { %vm1531_vm1 = vcmp.ge.f32.partialorder %v1467_v5, 0.0  ;;  %v1595_v34 = vmul.f32 0.01, %v1467_v5  ;;  %v1466_v47 = vadd.f32 %v4893_v13, %v1391_v53  ;;  %3746 = vrsqrt.f32 %v1251_v3  ;;  %v6247_v53 = vld [vmem:[#allocation4_spill] sm:$0xff] }
 0x25b   : > { %v1253_v25 = vadd.f32 1e-05, %v1221_v37  ;;  %vm1533_vm2 = vcmp.ge.f32.partialorder %v1469_v41, 0.0  ;;  %v1223_v1 = vmul.f32 0.00390625, %v1167_v32  ;;  %v1170_v44 = vpop.xlane.xlu0 %1169  ;;  %3748 = vrsqrt.f32 %v1252_v52  ;;  %v6248_v32 = vld [vmem:[#allocation5_spill] sm:$0xff] }
 0x25c   : > { %v1597_v26 = vmul.f32 0.01, %v1469_v41  ;;  %v1468_v42 = vadd.f32 %v4893_v13, %v1393_v11  ;;  %vm1530_vm3 = vcmp.ge.f32.partialorder %v1466_v47, 0.0  ;;  %v1659_v50 = vsel %vm1531_vm1, %v1467_v5, %v1595_v34 }
 0x25d   : > { %v1594_v51 = vmul.f32 0.01, %v1466_v47  ;;  %v1254_v9 = vadd.f32 1e-05, %v1222_v43  ;;  %v1173_v6 = vpop.xlane.xlu1 %1172  ;;  %v1396_v14 = vmul.f32 %v4875_v29, %v1321_v27  ;;  %v1224_v22 = vmul.f32 0.00390625, %v1170_v44 }
 0x25e   : > { %v1661_v54 = vsel %vm1533_vm2, %v1469_v41, %v1597_v26  ;;  %vm1532_vm4 = vcmp.ge.f32.partialorder %v1468_v42, 0.0  ;;  %v1596_v18 = vmul.f32 0.01, %v1468_v42  ;;  %3750 = vrsqrt.f32 %v1253_v25 }
 0x25f   : > { %v1715_v7 = vpack.c.bf16 %v1661_v54, %v1659_v50  ;;  %v1658_v16 = vsel %vm1530_vm3, %v1466_v47, %v1594_v51  ;;  %v1255_v56 = vadd.f32 1e-05, %v1223_v1  ;;  %3752 = vrsqrt.f32 %v1254_v9 }
 0x260   : > { %v3743_v40 = vpop.eup %3742  ;;  %v1660_v48 = vsel %vm1532_vm4, %v1468_v42, %v1596_v18  ;;  %v1225_v55 = vmul.f32 0.00390625, %v1173_v6  ;;  %v1398_v36 = vmul.f32 %v4875_v29, %v1323_v21  ;;  %v1256_v0 = vadd.f32 1e-05, %v1224_v22 }
 0x261   : > { %2014 = vmatprep.mubr.bf16.mxu1 %v1715_v7  ;;  %v1714_v12 = vpack.c.bf16 %v1660_v48, %v1658_v16  ;;  %v1471_v3 = vadd.f32 %v4886_v20, %v1396_v14  ;;  %v1395_v27 = vmul.f32 %v4870_v23, %v1320_v28  ;;  %v1397_v24 = vmul.f32 %v4870_v23, %v1322_v61  ;;  %v6250_v14 = vld [vmem:[#allocation9_spill] sm:$0xff]  ;;  %v6251_v16 = vld [vmem:[#allocation7_spill] sm:$0xff] }
 0x262   : > { %v1473_v37 = vadd.f32 %v4886_v20, %v1398_v36  ;;  %v1324_v5 = vmul.f32 %v3741_v33, %v4746_v63  ;;  %v1326_v11 = vmul.f32 %v3743_v40, %v6247_v53  ;;  %v1327_v4 = vmul.f32 %v3743_v40, %v6248_v32  ;;  %v6249_v33 = vld [vmem:[#allocation6_spill] sm:$0xff] }
 0x263   : > { %v3745_v52 = vpop.eup %3744  ;;  %2015 = vmatmul.mubr.bf16.gmra.mrb[48].mxu1 %v1714_v12  ;;  %vm1535_vm5 = vcmp.ge.f32.partialorder %v1471_v3, 0.0  ;;  %3754 = vrsqrt.f32 %v1255_v56  ;;  %v1599_v21 = vmul.f32 0.01, %v1471_v3  ;;  %v1400_v41 = vmul.f32 %v4875_v29, %v1325_v49 }
 0x264   : > { %vm1537_vm6 = vcmp.ge.f32.partialorder %v1473_v37, 0.0  ;;  %v3747_v43 = vpop.eup %3746  ;;  %3756 = vrsqrt.f32 %v1256_v0  ;;  %v1257_v28 = vadd.f32 1e-05, %v1225_v55  ;;  %v1601_v34 = vmul.f32 0.01, %v1473_v37 }
 0x265   : > { %v1470_v61 = vadd.f32 %v4893_v13, %v1395_v27  ;;  %v3749_v47 = vpop.eup %3748  ;;  %v1328_v63 = vmul.f32 %v3745_v52, %v4766_v19  ;;  %v1329_v25 = vmul.f32 %v3745_v52, %v6249_v33  ;;  %v1663_v1 = vsel %vm1535_vm5, %v1471_v3, %v1599_v21 }
 0x266   : > { %v1472_v44 = vadd.f32 %v4893_v13, %v1397_v24  ;;  %v1665_v26 = vsel %vm1537_vm6, %v1473_v37, %v1601_v34  ;;  %v1402_v50 = vmul.f32 %v4875_v29, %v1327_v4  ;;  %v1475_v9 = vadd.f32 %v4886_v20, %v1400_v41 }
 0x267   : > { %vm1534_vm7 = vcmp.ge.f32.partialorder %v1470_v61, 0.0  ;;  %v1598_v42 = vmul.f32 0.01, %v1470_v61  ;;  %v1717_v49 = vpack.c.bf16 %v1665_v26, %v1663_v1  ;;  %v1331_v54 = vmul.f32 %v3747_v43, %v6250_v14 }
 0x268   : > { %vm1536_vm8 = vcmp.ge.f32.partialorder %v1472_v44, 0.0  ;;  %v1600_v51 = vmul.f32 0.01, %v1472_v44  ;;  %v3751_v6 = vpop.eup %3750  ;;  %v1477_v19 = vadd.f32 %v4886_v20, %v1402_v50  ;;  %v1399_v18 = vmul.f32 %v4870_v23, %v1324_v5 }
 0x269   : > { %v1401_v22 = vmul.f32 %v4870_v23, %v1326_v11  ;;  %v5056_v7 = vpop.eup %3752  ;;  %v1330_v56 = vmul.f32 %v3747_v43, %v6251_v16  ;;  %3758 = vrsqrt.f32 %v1257_v28  ;;  %2024 = vmatprep.mubr.bf16.mxu1 %v1717_v49  ;;  %v1662_v40 = vsel %vm1534_vm7, %v1470_v61, %v1598_v42 }
 0x26a   : > { %v1664_v48 = vsel %vm1536_vm8, %v1472_v44, %v1600_v51  ;;  %v1332_v55 = vmul.f32 %v3749_v47, %v4782_v10  ;;  %vm1539_vm9 = vcmp.ge.f32.partialorder %v1475_v9, 0.0  ;;  %vm1541_vm10 = vcmp.ge.f32.partialorder %v1477_v19, 0.0  ;;  %v6252_v10 = vld [vmem:[#allocation10_spill] sm:$0xff] }
 0x26b   : > { %v1716_v36 = vpack.c.bf16 %v1664_v48, %v1662_v40  ;;  %v1603_v12 = vmul.f32 0.01, %v1475_v9  ;;  %v1605_v0 = vmul.f32 0.01, %v1477_v19  ;;  %v1474_v3 = vadd.f32 %v4893_v13, %v1399_v18  ;;  %v6253_v48 = vld [vmem:[#allocation11_spill] sm:$0xff] }
 0x26c   : > { %v1476_v27 = vadd.f32 %v4893_v13, %v1401_v22  ;;  %v1333_v37 = vmul.f32 %v3749_v47, %v4785_v57  ;;  %v1335_v24 = vmul.f32 %v3751_v6, %v4795_v17  ;;  %v1404_v52 = vmul.f32 %v4875_v29, %v1329_v25 }
 0x26d   : > { %2025 = vmatmul.mubr.bf16.gmra.mrb[52].mxu1 %v1716_v36  ;;  %v1406_v5 = vmul.f32 %v4875_v29, %v1331_v54  ;;  %v3755_v53 = vpop.eup %3754  ;;  %v1334_v11 = vmul.f32 %v3751_v6, %v6252_v10  ;;  %v1337_v32 = vmul.f32 %v5056_v7, %v4805_v38  ;;  %v1667_v4 = vsel %vm1539_vm9, %v1475_v9, %v1603_v12 }
 0x26e   : > { %v1669_v21 = vsel %vm1541_vm10, %v1477_v19, %v1605_v0  ;;  %v5070_v41 = vpop.eup %3756  ;;  %vm1538_vm11 = vcmp.ge.f32.partialorder %v1474_v3, 0.0  ;;  %vm1540_vm12 = vcmp.ge.f32.partialorder %v1476_v27, 0.0  ;;  %v1602_v57 = vmul.f32 0.01, %v1474_v3 }
 0x26f   : > { %v1719_v43 = vpack.c.bf16 %v1669_v21, %v1667_v4  ;;  %v1604_v17 = vmul.f32 0.01, %v1476_v27  ;;  %v1479_v28 = vadd.f32 %v4886_v20, %v1404_v52  ;;  %v1481_v34 = vadd.f32 %v4886_v20, %v1406_v5  ;;  %v6255_v5 = vld [vmem:[#allocation13_spill] sm:$0xff]  ;;  %v6256_v21 = vld [vmem:[#allocation15_spill] sm:$0xff] }
 0x270   : > { %v1403_v61 = vmul.f32 %v4870_v23, %v1328_v63  ;;  %v1666_v47 = vsel %vm1538_vm11, %v1474_v3, %v1602_v57  ;;  %v1405_v33 = vmul.f32 %v4870_v23, %v1330_v56  ;;  %v1408_v38 = vmul.f32 %v4875_v29, %v1333_v37 }
 0x271   : > { %2034 = vmatprep.mubr.bf16.mxu1 %v1719_v43  ;;  %v1410_v25 = vmul.f32 %v4875_v29, %v1335_v24  ;;  %v1668_v1 = vsel %vm1540_vm12, %v1476_v27, %v1604_v17  ;;  %vm1543_vm13 = vcmp.ge.f32.partialorder %v1479_v28, 0.0  ;;  %vm1545_vm14 = vcmp.ge.f32.partialorder %v1481_v34, 0.0  ;;  %v6254_v27 = vld [vmem:[#allocation8_spill] sm:$0xff] }
 0x272   : > { %v1607_v44 = vmul.f32 0.01, %v1479_v28  ;;  %v1718_v26 = vpack.c.bf16 %v1668_v1, %v1666_v47  ;;  %v1609_v42 = vmul.f32 0.01, %v1481_v34  ;;  %v1478_v50 = vadd.f32 %v4893_v13, %v1403_v61  ;;  %v6257_v1 = vld [vmem:[#allocation14_spill] sm:$0xff] }
 0x273   : > { %v1480_v49 = vadd.f32 %v4893_v13, %v1405_v33  ;;  %v3759_v51 = vpop.eup %3758  ;;  %v1339_v63 = vmul.f32 %v3755_v53, %v4815_v2  ;;  %v1483_v6 = vadd.f32 %v4886_v20, %v1408_v38  ;;  %v1485_v14 = vadd.f32 %v4886_v20, %v1410_v25 }
 0x274   : > { %v1671_v9 = vsel %vm1543_vm13, %v1479_v28, %v1607_v44  ;;  %v1673_v54 = vsel %vm1545_vm14, %v1481_v34, %v1609_v42  ;;  %v1606_v19 = vmul.f32 0.01, %v1478_v50  ;;  %v1407_v18 = vmul.f32 %v4870_v23, %v1332_v55 }
 0x275   : > { %2035 = vmatmul.mubr.bf16.gmra.mrb[56].mxu1 %v1718_v26  ;;  %vm1544_vm15 = vcmp.ge.f32.partialorder %v1480_v49, 0.0  ;;  %v1721_v22 = vpack.c.bf16 %v1673_v54, %v1671_v9  ;;  %v1608_v16 = vmul.f32 0.01, %v1480_v49  ;;  %vm1547_vm0 = vcmp.ge.f32.partialorder %v1483_v6, 0.0 }
 0x276   : > { %vm1549_vm1 = vcmp.ge.f32.partialorder %v1485_v14, 0.0  ;;  %vm1542_vm2 = vcmp.ge.f32.partialorder %v1478_v50, 0.0  ;;  %v1611_v56 = vmul.f32 0.01, %v1483_v6  ;;  %v1613_v40 = vmul.f32 0.01, %v1485_v14 }
 0x277   : > { %v1409_v2 = vmul.f32 %v4870_v23, %v1334_v11  ;;  %v1338_v36 = vmul.f32 %v3755_v53, %v6253_v48  ;;  %2044 = vmatprep.mubr.bf16.mxu1 %v1721_v22  ;;  %v1672_v12 = vsel %vm1544_vm15, %v1480_v49, %v1608_v16  ;;  %v1412_v0 = vmul.f32 %v4875_v29, %v1337_v32 }
 0x278   : > { %v1414_v3 = vmul.f32 %v4875_v29, %v1339_v63  ;;  %v1336_v55 = vmul.f32 %v5056_v7, %v6254_v27  ;;  %v1675_v37 = vsel %vm1547_vm0, %v1483_v6, %v1611_v56  ;;  %v1677_v24 = vsel %vm1549_vm1, %v1485_v14, %v1613_v40  ;;  %v6258_v63 = vld [vmem:[#allocation12_spill] sm:$0xff] }
 0x279   : > { %v1484_v52 = vadd.f32 %v4893_v13, %v1409_v2  ;;  %v1341_v10 = vmul.f32 %v5070_v41, %v6255_v5  ;;  %v1670_v4 = vsel %vm1542_vm2, %v1478_v50, %v1606_v19  ;;  %v1723_v11 = vpack.c.bf16 %v1677_v24, %v1675_v37 }
 0x27a   : > { %v1482_v53 = vadd.f32 %v4893_v13, %v1407_v18  ;;  %v1343_v43 = vmul.f32 %v3759_v51, %v6256_v21  ;;  %v1720_v57 = vpack.c.bf16 %v1672_v12, %v1670_v4  ;;  %v1487_v32 = vadd.f32 %v4886_v20, %v1412_v0 }
 0x27b   : > { %v1489_v17 = vadd.f32 %v4886_v20, %v1414_v3  ;;  %v1612_v28 = vmul.f32 0.01, %v1484_v52  ;;  %v1413_v7 = vmul.f32 %v4870_v23, %v1338_v36  ;;  %vm1548_vm3 = vcmp.ge.f32.partialorder %v1484_v52, 0.0 }
 0x27c   : > { %v1610_v61 = vmul.f32 0.01, %v1482_v53  ;;  %v1411_v47 = vmul.f32 %v4870_v23, %v1336_v55  ;;  %vm1546_vm5 = vcmp.ge.f32.partialorder %v1482_v53, 0.0  ;;  %v1615_v33 = vmul.f32 0.01, %v1487_v32 }
 0x27d   : > { %2045 = vmatmul.mubr.bf16.gmra.mrb[60].mxu1 %v1720_v57  ;;  %v1617_v34 = vmul.f32 0.01, %v1489_v17  ;;  %vm1553_vm4 = vcmp.ge.f32.partialorder %v1489_v17, 0.0  ;;  %v1416_v38 = vmul.f32 %v4875_v29, %v1341_v10  ;;  %v1418_v25 = vmul.f32 %v4875_v29, %v1343_v43 }
 0x27e   : > { %2054 = vmatprep.mubr.bf16.mxu1 %v1723_v11  ;;  %v1342_v44 = vmul.f32 %v3759_v51, %v6257_v1  ;;  %v1676_v26 = vsel %vm1548_vm3, %v1484_v52, %v1612_v28  ;;  %vm1551_vm6 = vcmp.ge.f32.partialorder %v1487_v32, 0.0  ;;  %v1488_v42 = vadd.f32 %v4893_v13, %v1413_v7  ;;  %v6260_v1 = vld [vmem:[#allocation23_spill] sm:$0xff] }
 0x27f   : > { %v1681_v50 = vsel %vm1553_vm4, %v1489_v17, %v1617_v34  ;;  %v1493_v49 = vadd.f32 %v4886_v20, %v1418_v25  ;;  %v1340_v9 = vmul.f32 %v5070_v41, %v6258_v63  ;;  %v1674_v6 = vsel %vm1546_vm5, %v1482_v53, %v1610_v61 }
 0x280   : > { %v1486_v14 = vadd.f32 %v4893_v13, %v1411_v47  ;;  %v1722_v54 = vpack.c.bf16 %v1676_v26, %v1674_v6  ;;  %v1679_v19 = vsel %vm1551_vm6, %v1487_v32, %v1615_v33  ;;  %v1491_v18 = vadd.f32 %v4886_v20, %v1416_v38  ;;  %v6259_v38 = vld [vmem:[#allocation22_spill] sm:$0xff] }
 0x281   : > { %v1725_v22 = vpack.c.bf16 %v1681_v50, %v1679_v19  ;;  %v1616_v16 = vmul.f32 0.01, %v1488_v42  ;;  %v1417_v51 = vmul.f32 %v4870_v23, %v1342_v44  ;;  %vm1552_vm7 = vcmp.ge.f32.partialorder %v1488_v42, 0.0  ;;  %v6262_v19 = vld [vmem:[#allocation25_spill] sm:$0xff] }
 0x282   : > { %v1621_v56 = vmul.f32 0.01, %v1493_v49  ;;  %v1614_v40 = vmul.f32 0.01, %v1486_v14  ;;  %vm1557_vm8 = vcmp.ge.f32.partialorder %v1493_v49, 0.0  ;;  %v1415_v2 = vmul.f32 %v4870_v23, %v1340_v9 }
 0x283   : > { %vm1550_vm9 = vcmp.ge.f32.partialorder %v1486_v14, 0.0  ;;  %v1619_v41 = vmul.f32 0.01, %v1491_v18  ;;  %v1680_v48 = vsel %vm1552_vm7, %v1488_v42, %v1616_v16  ;;  %vm1555_vm10 = vcmp.ge.f32.partialorder %v1491_v18, 0.0 }
 0x284   : > { %v1492_v36 = vadd.f32 %v4893_v13, %v1417_v51  ;;  %v1685_v12 = vsel %vm1557_vm8, %v1493_v49, %v1621_v56  ;;  %v1678_v0 = vsel %vm1550_vm9, %v1486_v14, %v1614_v40  ;;  %v1490_v3 = vadd.f32 %v4893_v13, %v1415_v2  ;;  %v6261_v14 = vld [vmem:[#allocation24_spill] sm:$0xff] }
 0x285   : > { %2055 = vmatmul.mubr.bf16.gmra.mrb[64].mxu1 %v1722_v54  ;;  %v1724_v27 = vpack.c.bf16 %v1680_v48, %v1678_v0  ;;  %v1683_v55 = vsel %vm1555_vm10, %v1491_v18, %v1619_v41 }
 0x286   : > { %2064 = vmatprep.mubr.bf16.mxu1 %v1725_v22  ;;  %v1727_v37 = vpack.c.bf16 %v1685_v12, %v1683_v55  ;;  %v1620_v24 = vmul.f32 0.01, %v1492_v36  ;;  %vm1556_vm11 = vcmp.ge.f32.partialorder %v1492_v36, 0.0  ;;  %v1618_v52 = vmul.f32 0.01, %v1490_v3 }
 0x287   : > { %vm1554_vm12 = vcmp.ge.f32.partialorder %v1490_v3, 0.0 }
 0x288   : > { %v1684_v5 = vsel %vm1556_vm11, %v1492_v36, %v1620_v24  ;;  %v1682_v10 = vsel %vm1554_vm12, %v1490_v3, %v1618_v52  ;;  %v6263_v36 = vld [vmem:[#allocation26_spill] sm:$0xff] }
 0x289   : > { %v1726_v4 = vpack.c.bf16 %v1684_v5, %v1682_v10 }
 0x28d   : > { %2065 = vmatmul.mubr.bf16.gmra.mrb[68].mxu1 %v1724_v27 }
 0x28e   : > { %2074 = vmatprep.mubr.bf16.mxu1 %v1727_v37 }
 0x295   : > { %2075 = vmatmul.mubr.bf16.gmra.mrb[72].mxu1 %v1726_v4 }
 0x2b1   : > { %v1176_v11 = vpop.xlane.xlu0 %1175 }
 0x2b2   : > { %v1226_v53 = vmul.f32 0.00390625, %v1176_v11 }
 0x2b4   : > { %v1258_v21 = vadd.f32 1e-05, %v1226_v53  ;;  %v1179_v43 = vpop.xlane.xlu1 %1178 }
 0x2b5   : > { %v1227_v57 = vmul.f32 0.00390625, %v1179_v43 }
 0x2b6   : > { %3760 = vrsqrt.f32 %v1258_v21  ;;  %v6264_v21 = vld [vmem:[#allocation16_spill] sm:$0xff] }
 0x2b7   : > { %v1259_v32 = vadd.f32 1e-05, %v1227_v57 }
 0x2b8   : > { %v1182_v17 = vpop.xlane.xlu0 %1181 }
 0x2b9   : > { %v1228_v28 = vmul.f32 0.00390625, %v1182_v17  ;;  %3762 = vrsqrt.f32 %v1259_v32 }
 0x2bb   : > { %v1260_v7 = vadd.f32 1e-05, %v1228_v28 }
 0x2bc   : > { %v1185_v34 = vpop.xlane.xlu1 %1184 }
 0x2bd   : > { %3764 = vrsqrt.f32 %v1260_v7  ;;  %v1229_v61 = vmul.f32 0.00390625, %v1185_v34 }
 0x2bf   : > { %v1261_v47 = vadd.f32 1e-05, %v1229_v61 }
 0x2c0   : > { %v3761_v33 = vpop.eup %3760 }
 0x2c1   : > { %v1344_v25 = vmul.f32 %v3761_v33, %v6259_v38  ;;  %v1345_v44 = vmul.f32 %v3761_v33, %v6260_v1  ;;  %3766 = vrsqrt.f32 %v1261_v47  ;;  %v1188_v26 = vpop.xlane.xlu0 %1187 }
 0x2c2   : > { %v1230_v42 = vmul.f32 0.00390625, %v1188_v26 }
 0x2c3   : > { %v1420_v50 = vmul.f32 %v4875_v29, %v1345_v44  ;;  %v1419_v49 = vmul.f32 %v4870_v23, %v1344_v25  ;;  %v3763_v63 = vpop.eup %3762 }
 0x2c4   : > { %v1262_v9 = vadd.f32 1e-05, %v1230_v42  ;;  %v1191_v6 = vpop.xlane.xlu1 %1190  ;;  %v1346_v54 = vmul.f32 %v3763_v63, %v6261_v14  ;;  %v1347_v18 = vmul.f32 %v3763_v63, %v6262_v19  ;;  %v6265_v42 = vld [vmem:[#allocation17_spill] sm:$0xff] }
 0x2c5   : > { %v1231_v22 = vmul.f32 0.00390625, %v1191_v6  ;;  %v1495_v16 = vadd.f32 %v4886_v20, %v1420_v50  ;;  %v1494_v51 = vadd.f32 %v4893_v13, %v1419_v49  ;;  %v6266_v49 = vld [vmem:[#allocation27_spill] sm:$0xff] }
 0x2c6   : > { %3768 = vrsqrt.f32 %v1262_v9  ;;  %v1422_v2 = vmul.f32 %v4875_v29, %v1347_v18  ;;  %v1421_v0 = vmul.f32 %v4870_v23, %v1346_v54 }
 0x2c7   : > { %v3765_v56 = vpop.eup %3764  ;;  %v1263_v40 = vadd.f32 1e-05, %v1231_v22  ;;  %vm1559_vm13 = vcmp.ge.f32.partialorder %v1495_v16, 0.0  ;;  %v1623_v41 = vmul.f32 0.01, %v1495_v16  ;;  %vm1558_vm14 = vcmp.ge.f32.partialorder %v1494_v51, 0.0 }
 0x2c8   : > { %v1348_v48 = vmul.f32 %v3765_v56, %v4878_v46  ;;  %v1349_v12 = vmul.f32 %v3765_v56, %v6263_v36  ;;  %v1497_v27 = vadd.f32 %v4886_v20, %v1422_v2  ;;  %v1622_v55 = vmul.f32 0.01, %v1494_v51 }
 0x2c9   : > { %3770 = vrsqrt.f32 %v1263_v40  ;;  %v1194_v3 = vpop.xlane.xlu0 %1193  ;;  %v1496_v24 = vadd.f32 %v4893_v13, %v1421_v0  ;;  %v1687_v4 = vsel %vm1559_vm13, %v1495_v16, %v1623_v41 }
 0x2ca   : > { %v1232_v37 = vmul.f32 0.00390625, %v1194_v3  ;;  %v1424_v52 = vmul.f32 %v4875_v29, %v1349_v12  ;;  %v1423_v5 = vmul.f32 %v4870_v23, %v1348_v48  ;;  %vm1561_vm15 = vcmp.ge.f32.partialorder %v1497_v27, 0.0 }
 0x2cb   : > { %v3767_v10 = vpop.eup %3766  ;;  %v1625_v46 = vmul.f32 0.01, %v1497_v27  ;;  %v1686_v11 = vsel %vm1558_vm14, %v1494_v51, %v1622_v55  ;;  %vm1560_vm0 = vcmp.ge.f32.partialorder %v1496_v24, 0.0  ;;  %v1624_v17 = vmul.f32 0.01, %v1496_v24 }
 0x2cc   : > { %v1350_v53 = vmul.f32 %v3767_v10, %v4898_v39  ;;  %v1351_v43 = vmul.f32 %v3767_v10, %v6264_v21  ;;  %v1264_v57 = vadd.f32 1e-05, %v1232_v37  ;;  %v1499_v28 = vadd.f32 %v4886_v20, %v1424_v52 }
 0x2cd   : > { %v1689_v32 = vsel %vm1561_vm15, %v1497_v27, %v1625_v46  ;;  %v1498_v7 = vadd.f32 %v4893_v13, %v1423_v5  ;;  %v1688_v33 = vsel %vm1560_vm0, %v1496_v24, %v1624_v17 }
 0x2ce   : > { %3772 = vrsqrt.f32 %v1264_v57  ;;  %v1729_v34 = vpack.c.bf16 %v1689_v32, %v1687_v4  ;;  %v1426_v61 = vmul.f32 %v4875_v29, %v1351_v43  ;;  %v1425_v47 = vmul.f32 %v4870_v23, %v1350_v53 }
 0x2cf   : > { %vm1563_vm1 = vcmp.ge.f32.partialorder %v1499_v28, 0.0  ;;  %v1627_v38 = vmul.f32 0.01, %v1499_v28  ;;  %vm1562_vm2 = vcmp.ge.f32.partialorder %v1498_v7, 0.0  ;;  %v1728_v25 = vpack.c.bf16 %v1688_v33, %v1686_v11 }
 0x2d0   : > { %v3769_v39 = vpop.eup %3768  ;;  %2084 = vmatprep.mubr.bf16.mxu1 %v1729_v34  ;;  %v1501_v1 = vadd.f32 %v4886_v20, %v1426_v61  ;;  %v1500_v44 = vadd.f32 %v4893_v13, %v1425_v47  ;;  %v1626_v26 = vmul.f32 0.01, %v1498_v7 }
 0x2d1   : > { %v1352_v50 = vmul.f32 %v3769_v39, %v6265_v42  ;;  %v1353_v63 = vmul.f32 %v3769_v39, %v6266_v49  ;;  %2085 = vmatmul.mubr.bf16.gmra.mrb[76].mxu1 %v1728_v25  ;;  %v1691_v19 = vsel %vm1563_vm1, %v1499_v28, %v1627_v38 }
 0x2d2   : > { %vm1565_vm3 = vcmp.ge.f32.partialorder %v1501_v1, 0.0  ;;  %v1629_v9 = vmul.f32 0.01, %v1501_v1  ;;  %vm1564_vm4 = vcmp.ge.f32.partialorder %v1500_v44, 0.0  ;;  %v1628_v6 = vmul.f32 0.01, %v1500_v44  ;;  %v1197_v54 = vpop.xlane.xlu1 %1196 }
 0x2d3   : > { %v3771_v14 = vpop.eup %3770  ;;  %v1690_v18 = vsel %vm1562_vm2, %v1498_v7, %v1626_v26  ;;  %v1428_v22 = vmul.f32 %v4875_v29, %v1353_v63  ;;  %v1427_v16 = vmul.f32 %v4870_v23, %v1352_v50  ;;  %v1233_v40 = vmul.f32 0.00390625, %v1197_v54 }
 0x2d4   : > { %v1354_v51 = vmul.f32 %v3771_v14, %v4926_v30  ;;  %v1355_v56 = vmul.f32 %v3771_v14, %v4929_v31  ;;  %v1693_v2 = vsel %vm1565_vm3, %v1501_v1, %v1629_v9  ;;  %v1200_v41 = vpop.xlane.xlu0 %1199  ;;  %v1692_v36 = vsel %vm1564_vm4, %v1500_v44, %v1628_v6 }
 0x2d5   : > { %v1731_v48 = vpack.c.bf16 %v1693_v2, %v1691_v19  ;;  %v1503_v12 = vadd.f32 %v4886_v20, %v1428_v22  ;;  %v1502_v0 = vadd.f32 %v4893_v13, %v1427_v16  ;;  %v1265_v3 = vadd.f32 1e-05, %v1233_v40 }
 0x2d6   : > { %v1234_v27 = vmul.f32 0.00390625, %v1200_v41  ;;  %v1730_v55 = vpack.c.bf16 %v1692_v36, %v1690_v18  ;;  %v1430_v37 = vmul.f32 %v4875_v29, %v1355_v56  ;;  %v1429_v24 = vmul.f32 %v4870_v23, %v1354_v51 }
 0x2d7   : > { %2094 = vmatprep.mubr.bf16.mxu1 %v1731_v48  ;;  %3774 = vrsqrt.f32 %v1265_v3  ;;  %v1631_v5 = vmul.f32 0.01, %v1503_v12  ;;  %vm1567_vm5 = vcmp.ge.f32.partialorder %v1503_v12, 0.0  ;;  %vm1566_vm6 = vcmp.ge.f32.partialorder %v1502_v0, 0.0 }
 0x2d8   : > { %v3773_v30 = vpop.eup %3772  ;;  %v1266_v31 = vadd.f32 1e-05, %v1234_v27  ;;  %v1505_v52 = vadd.f32 %v4886_v20, %v1430_v37  ;;  %v1504_v10 = vadd.f32 %v4893_v13, %v1429_v24  ;;  %v1630_v46 = vmul.f32 0.01, %v1502_v0 }
 0x2d9   : > { %v1357_v4 = vmul.f32 %v3773_v30, %v4942_v60  ;;  %2095 = vmatmul.mubr.bf16.gmra.mrb[80].mxu1 %v1730_v55  ;;  %v1356_v53 = vmul.f32 %v3773_v30, %v4939_v58  ;;  %v1695_v43 = vsel %vm1567_vm5, %v1503_v12, %v1631_v5  ;;  %v6268_v5 = vld [vmem:[#allocation3_spill] sm:$0xff] }
 0x2da   : > { %3776 = vrsqrt.f32 %v1266_v31  ;;  %vm1569_vm7 = vcmp.ge.f32.partialorder %v1505_v52, 0.0  ;;  %v1633_v11 = vmul.f32 0.01, %v1505_v52  ;;  %vm1568_vm8 = vcmp.ge.f32.partialorder %v1504_v10, 0.0 }
 0x2db   : > { %v1632_v21 = vmul.f32 0.01, %v1504_v10  ;;  %v1694_v17 = vsel %vm1566_vm6, %v1502_v0, %v1630_v46  ;;  %v1432_v61 = vmul.f32 %v4875_v29, %v1357_v4  ;;  %v1431_v60 = vmul.f32 %v4870_v23, %v1356_v53 }
 0x2dc   : > { %v1697_v57 = vsel %vm1569_vm7, %v1505_v52, %v1633_v11 }
 0x2dd   : > { %v1733_v32 = vpack.c.bf16 %v1697_v57, %v1695_v43  ;;  %v1696_v28 = vsel %vm1568_vm8, %v1504_v10, %v1632_v21  ;;  %v1203_v7 = vpop.xlane.xlu1 %1202  ;;  %v1507_v58 = vadd.f32 %v4886_v20, %v1432_v61  ;;  %v1506_v1 = vadd.f32 %v4893_v13, %v1431_v60 }
 0x2de   : > { %v1732_v34 = vpack.c.bf16 %v1696_v28, %v1694_v17  ;;  %v1235_v47 = vmul.f32 0.00390625, %v1203_v7 }
 0x2df   : > { %2104 = vmatprep.mubr.bf16.mxu1 %v1733_v32  ;;  %v1635_v9 = vmul.f32 0.01, %v1507_v58  ;;  %vm1571_vm9 = vcmp.ge.f32.partialorder %v1507_v58, 0.0  ;;  %vm1570_vm10 = vcmp.ge.f32.partialorder %v1506_v1, 0.0 }
 0x2e0   : > { %v1267_v33 = vadd.f32 1e-05, %v1235_v47 }
 0x2e1   : > { %v3775_v38 = vpop.eup %3774  ;;  %2105 = vmatmul.mubr.bf16.gmra.mrb[84].mxu1 %v1732_v34  ;;  %v1699_v18 = vsel %vm1571_vm9, %v1507_v58, %v1635_v9 }
 0x2e2   : > { %v1358_v39 = vmul.f32 %v3775_v38, %v4956_v62  ;;  %v1359_v25 = vmul.f32 %v3775_v38, %v4963_v8  ;;  %3778 = vrsqrt.f32 %v1267_v33  ;;  %v1634_v62 = vmul.f32 0.01, %v1506_v1 }
 0x2e4   : > { %v3777_v44 = vpop.eup %3776  ;;  %v1434_v26 = vmul.f32 %v4875_v29, %v1359_v25  ;;  %v1433_v42 = vmul.f32 %v4870_v23, %v1358_v39  ;;  %v1698_v22 = vsel %vm1570_vm10, %v1506_v1, %v1634_v62 }
 0x2e5   : > { %v1360_v50 = vmul.f32 %v3777_v44, %v4968_v15  ;;  %v1361_v49 = vmul.f32 %v3777_v44, %v4973_v35 }
 0x2e6   : > { %v1509_v63 = vadd.f32 %v4886_v20, %v1434_v26  ;;  %v1508_v6 = vadd.f32 %v4893_v13, %v1433_v42 }
 0x2e7   : > { %v1436_v54 = vmul.f32 %v4875_v29, %v1361_v49  ;;  %v1435_v19 = vmul.f32 %v4870_v23, %v1360_v50 }
 0x2e8   : > { %vm1573_vm11 = vcmp.ge.f32.partialorder %v1509_v63, 0.0  ;;  %v1637_v8 = vmul.f32 0.01, %v1509_v63  ;;  %vm1572_vm12 = vcmp.ge.f32.partialorder %v1508_v6, 0.0  ;;  %v1636_v14 = vmul.f32 0.01, %v1508_v6 }
 0x2e9   : > { %v1511_v41 = vadd.f32 %v4886_v20, %v1436_v54  ;;  %v1510_v48 = vadd.f32 %v4893_v13, %v1435_v19 }
 0x2ea   : > { %v1701_v15 = vsel %vm1573_vm11, %v1509_v63, %v1637_v8  ;;  %v1700_v35 = vsel %vm1572_vm12, %v1508_v6, %v1636_v14 }
 0x2eb   : > { %v1735_v16 = vpack.c.bf16 %v1701_v15, %v1699_v18  ;;  %v1734_v51 = vpack.c.bf16 %v1700_v35, %v1698_v22  ;;  %v1639_v3 = vmul.f32 0.01, %v1511_v41  ;;  %v1638_v55 = vmul.f32 0.01, %v1510_v48 }
 0x2ec   : > { %v3779_v56 = vpop.eup %3778  ;;  %vm1575_vm13 = vcmp.ge.f32.partialorder %v1511_v41, 0.0  ;;  %vm1574_vm14 = vcmp.ge.f32.partialorder %v1510_v48, 0.0 }
 0x2ed   : > { %v1362_v40 = vmul.f32 %v3779_v56, %v4993_v45  ;;  %v1363_v2 = vmul.f32 %v3779_v56, %v4996_v59  ;;  %2114 = vmatprep.mubr.bf16.mxu1 %v1735_v16  ;;  %v1703_v37 = vsel %vm1575_vm13, %v1511_v41, %v1639_v3  ;;  %v1702_v30 = vsel %vm1574_vm14, %v1510_v48, %v1638_v55 }
 0x2ee   : > { %2115 = vmatmul.mubr.bf16.gmra.mrb[88].mxu1 %v1734_v51 }
 0x2ef   : > { %v1438_v36 = vmul.f32 %v4875_v29, %v1363_v2  ;;  %v1437_v12 = vmul.f32 %v4870_v23, %v1362_v40  ;;  %v1770_v23 = vld [vmem:[%s6109_s8] sm:$0x3] }
 0x2f0   : > { %v5182_v10 = vrot.slane %v1770_v23, %v6268_v5 }
 0x2f1   : > { %v1513_v0 = vadd.f32 %v4886_v20, %v1438_v36  ;;  %v1512_v27 = vadd.f32 %v4893_v13, %v1437_v12  ;;  %v6267_v20 = vld [vmem:[#allocation2_spill] sm:$0xff] }
 0x2f2   : > { %v5179_v13 = vrot.slane %v1770_v23, %v6267_v20 }
 0x2f3   : > { %vm1577_vm15 = vcmp.ge.f32.partialorder %v1513_v0, 0.0  ;;  %v1641_v45 = vmul.f32 0.01, %v1513_v0  ;;  %vm1576_vm0 = vcmp.ge.f32.partialorder %v1512_v27, 0.0  ;;  %v1640_v59 = vmul.f32 0.01, %v1512_v27 }
 0x2f5   : > { %v1705_v24 = vsel %vm1577_vm15, %v1513_v0, %v1641_v45  ;;  %v1704_v31 = vsel %vm1576_vm0, %v1512_v27, %v1640_v59 }
 0x2f6   : > { %v1737_v52 = vpack.c.bf16 %v1705_v24, %v1703_v37  ;;  %v1736_v29 = vpack.c.bf16 %v1704_v31, %v1702_v30 }
 0x2f8   : > { %2124 = vmatprep.mubr.bf16.mxu1 %v1737_v52 }
 0x2f9   : > { %2125 = vmatmul.mubr.bf16.gmra.mrb[92].mxu1 %v1736_v29 }
 0x30b   : > { %v1976_v46 = vpop.f32.mrb[32].mxu1 }
 0x30c   : > { %v5185_v4 = vadd.f32 %v1976_v46, %v5179_v13  ;;  %v1978_v11 = vpop.f32.mrb[33].mxu1 }
 0x30d   : > { %v5188_v53 = vadd.f32 %v1978_v11, %v5182_v10  ;;  %v1980_v21 = vpop.f32.mrb[34].mxu1 }
 0x30e   : > { %v5191_v43 = vadd.f32 %v1980_v21, %v5179_v13  ;;  %v1982_v57 = vpop.f32.mrb[35].mxu1 }
 0x30f   : > { %v5194_v32 = vadd.f32 %v1982_v57, %v5182_v10  ;;  %v2137_v17 = vadd.f32 %v5188_v53, %v5185_v4 }
 0x311   : > { %2138 = vadd.xlane.f32.xlu0 %v2137_v17  ;;  %v2140_v28 = vadd.f32 %v5194_v32, %v5191_v43 }
 0x313   : > { %2141 = vadd.xlane.f32.xlu1 %v2140_v28 }
 0x31a   : > { %v1986_v7 = vpop.f32.mrb[36].mxu1 }
 0x31b   : > { %v5201_v34 = vadd.f32 %v1986_v7, %v5179_v13  ;;  %v1988_v61 = vpop.f32.mrb[37].mxu1 }
 0x31c   : > { %v5204_v47 = vadd.f32 %v1988_v61, %v5182_v10  ;;  %v1990_v60 = vpop.f32.mrb[38].mxu1 }
 0x31d   : > { %v5207_v33 = vadd.f32 %v1990_v60, %v5179_v13  ;;  %v1992_v38 = vpop.f32.mrb[39].mxu1 }
 0x31e   : > { %v5210_v58 = vadd.f32 %v1992_v38, %v5182_v10  ;;  %v2143_v39 = vadd.f32 %v5204_v47, %v5201_v34 }
 0x320   : > { %2144 = vadd.xlane.f32.xlu0 %v2143_v39  ;;  %v2146_v25 = vadd.f32 %v5210_v58, %v5207_v33 }
 0x322   : > { %2147 = vadd.xlane.f32.xlu1 %v2146_v25 }
 0x324   : > { %v1996_v1 = vpop.f32.mrb[40].mxu1 }
 0x325   : > { %v5217_v44 = vadd.f32 %v1996_v1, %v5179_v13  ;;  %v1998_v26 = vpop.f32.mrb[41].mxu1 }
 0x326   : > { %v5220_v42 = vadd.f32 %v1998_v26, %v5182_v10  ;;  %v2000_v50 = vpop.f32.mrb[42].mxu1 }
 0x327   : > { %v5223_v49 = vadd.f32 %v2000_v50, %v5179_v13  ;;  %v2002_v63 = vpop.f32.mrb[43].mxu1 }
 0x328   : > { %v5226_v9 = vadd.f32 %v2002_v63, %v5182_v10  ;;  %v2149_v6 = vadd.f32 %v5220_v42, %v5217_v44 }
 0x32a   : > { %2150 = vadd.xlane.f32.xlu0 %v2149_v6  ;;  %v2152_v62 = vadd.f32 %v5226_v9, %v5223_v49 }
 0x32c   : > { %2153 = vadd.xlane.f32.xlu1 %v2152_v62  ;;  %v2006_v8 = vpop.f32.mrb[44].mxu1 }
 0x32d   : > { %v5233_v14 = vadd.f32 %v2006_v8, %v5179_v13  ;;  %v2008_v54 = vpop.f32.mrb[45].mxu1 }
 0x32e   : > { %v5236_v19 = vadd.f32 %v2008_v54, %v5182_v10  ;;  %v2010_v18 = vpop.f32.mrb[46].mxu1 }
 0x32f   : > { %v5239_v15 = vadd.f32 %v2010_v18, %v5179_v13  ;;  %v2012_v22 = vpop.f32.mrb[47].mxu1 }
 0x330   : > { %v5242_v35 = vadd.f32 %v2012_v22, %v5182_v10  ;;  %v2155_v16 = vadd.f32 %v5236_v19, %v5233_v14 }
 0x332   : > { %2156 = vadd.xlane.f32.xlu0 %v2155_v16  ;;  %v2158_v51 = vadd.f32 %v5242_v35, %v5239_v15 }
 0x334   : > { %2159 = vadd.xlane.f32.xlu1 %v2158_v51 }
 0x336   : > { %v2016_v56 = vpop.f32.mrb[48].mxu1 }
 0x337   : > { %v5249_v40 = vadd.f32 %v2016_v56, %v5179_v13  ;;  %v2018_v2 = vpop.f32.mrb[49].mxu1 }
 0x338   : > { %v5252_v41 = vadd.f32 %v2018_v2, %v5182_v10  ;;  %v2020_v48 = vpop.f32.mrb[50].mxu1 }
 0x339   : > { %v5255_v36 = vadd.f32 %v2020_v48, %v5179_v13  ;;  %v2022_v12 = vpop.f32.mrb[51].mxu1 }
 0x33a   : > { %v5258_v0 = vadd.f32 %v2022_v12, %v5182_v10  ;;  %v2161_v3 = vadd.f32 %v5252_v41, %v5249_v40 }
 0x33c   : > { %2162 = vadd.xlane.f32.xlu0 %v2161_v3  ;;  %v2164_v27 = vadd.f32 %v5258_v0, %v5255_v36 }
 0x33e   : > { %2165 = vadd.xlane.f32.xlu1 %v2164_v27 }
 0x340   : > { %v2026_v55 = vpop.f32.mrb[52].mxu1 }
 0x341   : > { %v5265_v45 = vadd.f32 %v2026_v55, %v5179_v13  ;;  %v2028_v59 = vpop.f32.mrb[53].mxu1 }
 0x342   : > { %v5268_v37 = vadd.f32 %v2028_v59, %v5182_v10  ;;  %v2030_v24 = vpop.f32.mrb[54].mxu1 }
 0x343   : > { %v5271_v30 = vadd.f32 %v2030_v24, %v5179_v13  ;;  %v2032_v31 = vpop.f32.mrb[55].mxu1 }
 0x344   : > { %v5274_v52 = vadd.f32 %v2032_v31, %v5182_v10  ;;  %v2167_v29 = vadd.f32 %v5268_v37, %v5265_v45 }
 0x346   : > { %2168 = vadd.xlane.f32.xlu0 %v2167_v29  ;;  %v2170_v23 = vadd.f32 %v5274_v52, %v5271_v30 }
 0x348   : > { %2171 = vadd.xlane.f32.xlu1 %v2170_v23  ;;  %v2036_v46 = vpop.f32.mrb[56].mxu1 }
 0x349   : > { %v5281_v11 = vadd.f32 %v2036_v46, %v5179_v13  ;;  %v2038_v21 = vpop.f32.mrb[57].mxu1 }
 0x34a   : > { %v5284_v57 = vadd.f32 %v2038_v21, %v5182_v10  ;;  %v2040_v17 = vpop.f32.mrb[58].mxu1 }
 0x34b   : > { %v5287_v28 = vadd.f32 %v2040_v17, %v5179_v13  ;;  %v2042_v7 = vpop.f32.mrb[59].mxu1 }
 0x34c   : > { %v5290_v61 = vadd.f32 %v2042_v7, %v5182_v10  ;;  %v2173_v60 = vadd.f32 %v5284_v57, %v5281_v11 }
 0x34e   : > { %2174 = vadd.xlane.f32.xlu0 %v2173_v60  ;;  %v2176_v38 = vadd.f32 %v5290_v61, %v5287_v28 }
 0x350   : > { %2177 = vadd.xlane.f32.xlu1 %v2176_v38  ;;  %v2046_v39 = vpop.f32.mrb[60].mxu1 }
 0x351   : > { %v5297_v25 = vadd.f32 %v2046_v39, %v5179_v13  ;;  %v2048_v1 = vpop.f32.mrb[61].mxu1 }
 0x352   : > { %v5300_v26 = vadd.f32 %v2048_v1, %v5182_v10  ;;  %v2050_v50 = vpop.f32.mrb[62].mxu1 }
 0x353   : > { %v5303_v63 = vadd.f32 %v2050_v50, %v5179_v13  ;;  %v2052_v6 = vpop.f32.mrb[63].mxu1 }
 0x354   : > { %v5306_v62 = vadd.f32 %v2052_v6, %v5182_v10  ;;  %v2179_v8 = vadd.f32 %v5300_v26, %v5297_v25 }
 0x356   : > { %2180 = vadd.xlane.f32.xlu0 %v2179_v8  ;;  %v2182_v54 = vadd.f32 %v5306_v62, %v5303_v63 }
 0x358   : > { %2183 = vadd.xlane.f32.xlu1 %v2182_v54  ;;  %v2056_v18 = vpop.f32.mrb[64].mxu1 }
 0x359   : > { %v5313_v22 = vadd.f32 %v2056_v18, %v5179_v13  ;;  %v2058_v16 = vpop.f32.mrb[65].mxu1 }
 0x35a   : > { %v5316_v51 = vadd.f32 %v2058_v16, %v5182_v10  ;;  %v2060_v56 = vpop.f32.mrb[66].mxu1 }
 0x35b   : > { %v5319_v2 = vadd.f32 %v2060_v56, %v5179_v13  ;;  %v2062_v48 = vpop.f32.mrb[67].mxu1  ;;  %v3700_v56 = vld [vmem:[%s6112_s11 + $0x40] sm:$0xff]  }
 0x35c   : > { %v5322_v12 = vadd.f32 %v2062_v48, %v5182_v10  ;;  %v2185_v3 = vadd.f32 %v5316_v51, %v5313_v22  ;;  %v3701_v48 = vld [vmem:[%s6112_s11] sm:$0xff]   ;;  %3521 = vmatprep.subr.bf16.mxu0 %v3700_v56 }
 0x35d   : > { %3522 = vmatpush3.bf16.msra.mxu0 %v3701_v48 }
 0x35e   : > { %2186 = vadd.xlane.f32.xlu0 %v2185_v3  ;;  %v2188_v27 = vadd.f32 %v5322_v12, %v5319_v2 }
 0x360   : > { %2189 = vadd.xlane.f32.xlu1 %v2188_v27  ;;  %v2066_v55 = vpop.f32.mrb[68].mxu1 }
 0x361   : > { %v5329_v59 = vadd.f32 %v2066_v55, %v5179_v13  ;;  %v2068_v24 = vpop.f32.mrb[69].mxu1 }
 0x362   : > { %v5332_v31 = vadd.f32 %v2068_v24, %v5182_v10  ;;  %v2070_v29 = vpop.f32.mrb[70].mxu1 }
 0x363   : > { %v5335_v23 = vadd.f32 %v2070_v29, %v5179_v13  ;;  %v2072_v46 = vpop.f32.mrb[71].mxu1 }
 0x364   : > { %v5338_v21 = vadd.f32 %v2072_v46, %v5182_v10  ;;  %v2191_v17 = vadd.f32 %v5332_v31, %v5329_v59 }
 0x366   : > { %2192 = vadd.xlane.f32.xlu0 %v2191_v17  ;;  %v2194_v7 = vadd.f32 %v5338_v21, %v5335_v23 }
 0x368   : > { %2195 = vadd.xlane.f32.xlu1 %v2194_v7  ;;  %v2076_v60 = vpop.f32.mrb[72].mxu1 }
 0x369   : > { %v5345_v38 = vadd.f32 %v2076_v60, %v5179_v13  ;;  %v2078_v39 = vpop.f32.mrb[73].mxu1 }
 0x36a   : > { %v5348_v1 = vadd.f32 %v2078_v39, %v5182_v10  ;;  %v2080_v50 = vpop.f32.mrb[74].mxu1 }
 0x36b   : > { %v5351_v6 = vadd.f32 %v2080_v50, %v5179_v13  ;;  %v2082_v8 = vpop.f32.mrb[75].mxu1 }
 0x36c   : > { %v5354_v54 = vadd.f32 %v2082_v8, %v5182_v10  ;;  %v2197_v18 = vadd.f32 %v5348_v1, %v5345_v38 }
 0x36e   : > { %2198 = vadd.xlane.f32.xlu0 %v2197_v18  ;;  %v2200_v16 = vadd.f32 %v5354_v54, %v5351_v6 }
 0x370   : > { %2201 = vadd.xlane.f32.xlu1 %v2200_v16 }
 0x39e   : > { %v2139_v3 = vpop.xlane.xlu0 %2138 }
 0x39f   : > { %v2233_v27 = vmul.f32 0.00390625, %v2139_v3 }
 0x3a0   : > { %v2142_v55 = vpop.xlane.xlu1 %2141 }
 0x3a1   : > { %v5367_v24 = vsub.f32 %v5185_v4, %v2233_v27  ;;  %v5370_v29 = vsub.f32 %v5188_v53, %v2233_v27  ;;  %v2234_v46 = vmul.f32 0.00390625, %v2142_v55 }
 0x3a3   : > { %6269 = vst [vmem:[#allocation18_spill] sm:$0xff] %v5370_v29  ;;  %v5373_v17 = vsub.f32 %v5191_v43, %v2234_v46  ;;  %v5376_v7 = vsub.f32 %v5194_v32, %v2234_v46  ;;  %v2329_v60 = vmul.f32 %v5367_v24, %v5367_v24  ;;  %v2330_v39 = vmul.f32 %v5370_v29, %v5370_v29 }
 0x3a4   : > { %v2086_v50 = vpop.f32.mrb[76].mxu1 }
 0x3a5   : > { %6270 = vst [vmem:[#allocation19_spill] sm:$0xff] %v5373_v17  ;;  %6271 = vst [vmem:[#allocation20_spill] sm:$0xff] %v5376_v7  ;;  %v2393_v8 = vadd.f32 %v2330_v39, %v2329_v60  ;;  %v2331_v4 = vmul.f32 %v5373_v17, %v5373_v17  ;;  %v2332_v53 = vmul.f32 %v5376_v7, %v5376_v7  ;;  %v2088_v18 = vpop.f32.mrb[77].mxu1 }
 0x3a6   : > { %v5387_v43 = vadd.f32 %v2086_v50, %v5179_v13  ;;  %v5390_v32 = vadd.f32 %v2088_v18, %v5182_v10  ;;  %v2090_v16 = vpop.f32.mrb[78].mxu1 }
 0x3a7   : > { %2394 = vadd.xlane.f32.xlu0 %v2393_v8  ;;  %v2396_v56 = vadd.f32 %v2332_v53, %v2331_v4  ;;  %v5393_v48 = vadd.f32 %v2090_v16, %v5179_v13  ;;  %v2092_v3 = vpop.f32.mrb[79].mxu1 }
 0x3a8   : > { %v5396_v27 = vadd.f32 %v2092_v3, %v5182_v10  ;;  %v2203_v55 = vadd.f32 %v5390_v32, %v5387_v43 }
 0x3a9   : > { %2397 = vadd.xlane.f32.xlu1 %v2396_v56 }
 0x3aa   : > { %v2206_v46 = vadd.f32 %v5396_v27, %v5393_v48 }
 0x3ab   : > { %2204 = vadd.xlane.f32.xlu0 %v2203_v55 }
 0x3ac   : > { %v2096_v60 = vpop.f32.mrb[80].mxu1 }
 0x3ad   : > { %2207 = vadd.xlane.f32.xlu1 %v2206_v46  ;;  %v2145_v39 = vpop.xlane.xlu0 %2144  ;;  %v2098_v50 = vpop.f32.mrb[81].mxu1  ;;  %v5409_v55 = vadd.f32 %v2096_v60, %v5179_v13 }
 0x3ae   : > { %v2235_v8 = vmul.f32 0.00390625, %v2145_v39  ;;  %v2100_v4 = vpop.f32.mrb[82].mxu1  ;;  %v5412_v7 = vadd.f32 %v2098_v50, %v5182_v10 }
 0x3af   : > { %v2148_v53 = vpop.xlane.xlu1 %2147  ;;  %v2102_v18 = vpop.f32.mrb[83].mxu1 }
 0x3b0   : > { %v5403_v16 = vsub.f32 %v5201_v34, %v2235_v8  ;;  %v5406_v56 = vsub.f32 %v5204_v47, %v2235_v8  ;;  %v2236_v3 = vmul.f32 0.00390625, %v2148_v53  ;;  %v5425_v8 = vadd.f32 %v2100_v4, %v5179_v13 }
 0x3b1   : > { %v5428_v53 = vadd.f32 %v2102_v18, %v5182_v10 }
 0x3b2   : > { %6272 = vst [vmem:[#allocation21_spill] sm:$0xff] %v5403_v16  ;;  %6273 = vst [vmem:[#allocation4_spill] sm:$0xff] %v5406_v56  ;;  %v5415_v46 = vsub.f32 %v5207_v33, %v2236_v3  ;;  %v5418_v39 = vsub.f32 %v5210_v58, %v2236_v3  ;;  %v2333_v34 = vmul.f32 %v5403_v16, %v5403_v16 }
 0x3b3   : > { %v2334_v47 = vmul.f32 %v5406_v56, %v5406_v56  ;;  %v2209_v56 = vadd.f32 %v5412_v7, %v5409_v55  ;;  %v2212_v18 = vadd.f32 %v5428_v53, %v5425_v8 }
 0x3b4   : > { %6274 = vst [vmem:[#allocation5_spill] sm:$0xff] %v5415_v46  ;;  %6275 = vst [vmem:[#allocation6_spill] sm:$0xff] %v5418_v39  ;;  %v2335_v33 = vmul.f32 %v5415_v46, %v5415_v46  ;;  %v2336_v58 = vmul.f32 %v5418_v39, %v5418_v39  ;;  %v2106_v50 = vpop.f32.mrb[84].mxu1 }
 0x3b5   : > { %v2399_v60 = vadd.f32 %v2334_v47, %v2333_v34  ;;  %v2108_v3 = vpop.f32.mrb[85].mxu1 }
 0x3b6   : > { %v2402_v16 = vadd.f32 %v2336_v58, %v2335_v33  ;;  %v2110_v17 = vpop.f32.mrb[86].mxu1  ;;  %v5445_v33 = vadd.f32 %v2106_v50, %v5179_v13  ;;  %v5448_v58 = vadd.f32 %v2108_v3, %v5182_v10 }
 0x3b7   : > { %2400 = vadd.xlane.f32.xlu0 %v2399_v60  ;;  %v2151_v4 = vpop.xlane.xlu0 %2150  ;;  %v2112_v29 = vpop.f32.mrb[87].mxu1 }
 0x3b8   : > { %v2237_v34 = vmul.f32 0.00390625, %v2151_v4  ;;  %2403 = vadd.xlane.f32.xlu1 %v2402_v16  ;;  %v5464_v3 = vadd.f32 %v2112_v29, %v5182_v10 }
 0x3b9   : > { %v2154_v47 = vpop.xlane.xlu1 %2153 }
 0x3ba   : > { %v5439_v46 = vsub.f32 %v5217_v44, %v2237_v34  ;;  %v5442_v39 = vsub.f32 %v5220_v42, %v2237_v34  ;;  %v2238_v60 = vmul.f32 0.00390625, %v2154_v47 }
 0x3bb   : > { %2210 = vadd.xlane.f32.xlu0 %v2209_v56  ;;  %v5461_v56 = vadd.f32 %v2110_v17, %v5179_v13 }
 0x3bc   : > { %6276 = vst [vmem:[#allocation9_spill] sm:$0xff] %v5442_v39  ;;  %v5451_v16 = vsub.f32 %v5223_v49, %v2238_v60  ;;  %v5454_v4 = vsub.f32 %v5226_v9, %v2238_v60  ;;  %2213 = vadd.xlane.f32.xlu1 %v2212_v18  ;;  %v2337_v44 = vmul.f32 %v5439_v46, %v5439_v46 }
 0x3bd   : > { %v2338_v42 = vmul.f32 %v5442_v39, %v5442_v39  ;;  %v2215_v60 = vadd.f32 %v5448_v58, %v5445_v33 }
 0x3be   : > { %6277 = vst [vmem:[#allocation7_spill] sm:$0xff] %v5451_v16  ;;  %6278 = vst [vmem:[#allocation10_spill] sm:$0xff] %v5454_v4  ;;  %v2339_v49 = vmul.f32 %v5451_v16, %v5451_v16  ;;  %v2340_v9 = vmul.f32 %v5454_v4, %v5454_v4  ;;  %v2218_v4 = vadd.f32 %v5464_v3, %v5461_v56 }
 0x3bf   : > { %v2405_v50 = vadd.f32 %v2338_v42, %v2337_v44  ;;  %v2157_v34 = vpop.xlane.xlu0 %2156 }
 0x3c0   : > { %v2239_v18 = vmul.f32 0.00390625, %v2157_v34  ;;  %v2408_v47 = vadd.f32 %v2340_v9, %v2339_v49 }
 0x3c1   : > { %2406 = vadd.xlane.f32.xlu0 %v2405_v50  ;;  %v2160_v39 = vpop.xlane.xlu1 %2159  ;;  %v2116_v17 = vpop.f32.mrb[88].mxu1 }
 0x3c2   : > { %v5473_v44 = vsub.f32 %v5233_v14, %v2239_v18  ;;  %v5476_v29 = vsub.f32 %v5236_v19, %v2239_v18  ;;  %v2240_v42 = vmul.f32 0.00390625, %v2160_v39  ;;  %2409 = vadd.xlane.f32.xlu1 %v2408_v47  ;;  %v2118_v16 = vpop.f32.mrb[89].mxu1  ;;  %v5481_v50 = vadd.f32 %v2116_v17, %v5179_v13 }
 0x3c3   : > { %v5484_v49 = vadd.f32 %v2118_v16, %v5182_v10  ;;  %v2120_v9 = vpop.f32.mrb[90].mxu1 }
 0x3c4   : > { %6279 = vst [vmem:[#allocation11_spill] sm:$0xff] %v5473_v44  ;;  %6280 = vst [vmem:[#allocation8_spill] sm:$0xff] %v5476_v29  ;;  %v2341_v14 = vmul.f32 %v5473_v44, %v5473_v44  ;;  %v2342_v19 = vmul.f32 %v5476_v29, %v5476_v29  ;;  %v5491_v39 = vsub.f32 %v5239_v15, %v2240_v42  ;;  %v2122_v18 = vpop.f32.mrb[91].mxu1  ;;  %v3702_v15 = vld [vmem:[%s6112_s11 + $0x48] sm:$0xff]  }
 0x3c5   : > { %v5494_v34 = vsub.f32 %v5242_v35, %v2240_v42  ;;  %2216 = vadd.xlane.f32.xlu0 %v2215_v60  ;;  %v5497_v47 = vadd.f32 %v2120_v9, %v5179_v13  ;;  %v5504_v29 = vadd.f32 %v2122_v18, %v5182_v10  ;;  %v2221_v35 = vadd.f32 %v5484_v49, %v5481_v50  ;;  %v3703_v42 = vld [vmem:[%s6112_s11 + $0x8] sm:$0xff]  }
 0x3c6   : > { %6281 = vst [vmem:[#allocation13_spill] sm:$0xff] %v5491_v39  ;;  %v2343_v16 = vmul.f32 %v5491_v39, %v5491_v39  ;;  %2219 = vadd.xlane.f32.xlu1 %v2218_v4  ;;  %v2411_v44 = vadd.f32 %v2342_v19, %v2341_v14  ;;  %3523 = vmatprep.subr.bf16.mxu0 %v3702_v15  ;;  %v3704_v4 = vld [vmem:[%s6112_s11 + $0x50] sm:$0xff]  }
 0x3c7   : > { %6282 = vst [vmem:[#allocation15_spill] sm:$0xff] %v5494_v34  ;;  %v2344_v17 = vmul.f32 %v5494_v34, %v5494_v34  ;;  %v2224_v19 = vadd.f32 %v5504_v29, %v5497_v47  ;;  %3524 = vmatpush3.bf16.msra.mxu0 %v3703_v42 }
 0x3c8   : > { %3525 = vmatprep.subr.bf16.mxu0 %v3704_v4 }
 0x3c9   : > { %2412 = vadd.xlane.f32.xlu0 %v2411_v44  ;;  %v2414_v60 = vadd.f32 %v2344_v17, %v2343_v16  ;;  %v2163_v9 = vpop.xlane.xlu0 %2162  ;;  %v3705_v44 = vld [vmem:[%s6112_s11 + $0x10] sm:$0xff]  }
 0x3ca   : > { %v2241_v14 = vmul.f32 0.00390625, %v2163_v9 }
 0x3cb   : > { %2415 = vadd.xlane.f32.xlu1 %v2414_v60  ;;  %v2166_v18 = vpop.xlane.xlu1 %2165  ;;  %3526 = vmatpush3.bf16.msra.mxu0 %v3705_v44 }
 0x3cc   : > { %v5523_v16 = vsub.f32 %v5249_v40, %v2241_v14  ;;  %v5526_v17 = vsub.f32 %v5252_v41, %v2241_v14  ;;  %v2242_v15 = vmul.f32 0.00390625, %v2166_v18  ;;  %v2126_v9 = vpop.f32.mrb[92].mxu1 }
 0x3cd   : > { %2222 = vadd.xlane.f32.xlu0 %v2221_v35  ;;  %v5529_v34 = vadd.f32 %v2126_v9, %v5179_v13  ;;  %v2128_v60 = vpop.f32.mrb[93].mxu1  ;;  %v3706_v9 = vld [vmem:[%s6112_s11 + $0x58] sm:$0xff]  }
 0x3ce   : > { %v2345_v42 = vmul.f32 %v5523_v16, %v5523_v16  ;;  %v2346_v4 = vmul.f32 %v5526_v17, %v5526_v17  ;;  %v5536_v39 = vsub.f32 %v5255_v36, %v2242_v15  ;;  %v5539_v40 = vsub.f32 %v5258_v0, %v2242_v15  ;;  %v2130_v41 = vpop.f32.mrb[94].mxu1  ;;  %3527 = vmatprep.subr.bf16.mxu0 %v3706_v9 }
 0x3cf   : > { %2225 = vadd.xlane.f32.xlu1 %v2224_v19  ;;  %v5542_v35 = vadd.f32 %v2128_v60, %v5182_v10  ;;  %v5545_v14 = vadd.f32 %v2130_v41, %v5179_v13  ;;  %v2132_v18 = vpop.f32.mrb[95].mxu1  ;;  %v3707_v13 = vld [vmem:[%s6112_s11 + $0x18] sm:$0xff]  }
 0x3d0   : > { %6283 = vst [vmem:[#allocation14_spill] sm:$0xff] %v5539_v40  ;;  %v2347_v36 = vmul.f32 %v5536_v39, %v5536_v39  ;;  %v2348_v0 = vmul.f32 %v5539_v40, %v5539_v40  ;;  %v2417_v19 = vadd.f32 %v2346_v4, %v2345_v42  ;;  %v5555_v15 = vadd.f32 %v2132_v18, %v5182_v10  ;;  %v3708_v40 = vld [vmem:[%s6112_s11 + $0x60] sm:$0xff]  }
 0x3d1   : > { %v2227_v44 = vadd.f32 %v5542_v35, %v5529_v34  ;;  %3528 = vmatpush3.bf16.msra.mxu0 %v3707_v13  ;;  %v3709_v4 = vld [vmem:[%s6112_s11 + $0x20] sm:$0xff]  }
 0x3d2   : > { %2418 = vadd.xlane.f32.xlu0 %v2417_v19  ;;  %v2420_v60 = vadd.f32 %v2348_v0, %v2347_v36  ;;  %v2230_v10 = vadd.f32 %v5555_v15, %v5545_v14  ;;  %3529 = vmatprep.subr.bf16.mxu0 %v3708_v40  ;;  %v3710_v19 = vld [vmem:[%s6112_s11 + $0x68] sm:$0xff]  }
 0x3d3   : > { %v2169_v41 = vpop.xlane.xlu0 %2168 }
 0x3d4   : > { %v2243_v42 = vmul.f32 0.00390625, %v2169_v41  ;;  %2421 = vadd.xlane.f32.xlu1 %v2420_v60 }
 0x3d5   : > { %v2172_v18 = vpop.xlane.xlu1 %2171  ;;  %3530 = vmatpush3.bf16.msra.mxu0 %v3709_v4 }
 0x3d6   : > { %v5571_v9 = vsub.f32 %v5265_v45, %v2243_v42  ;;  %v5574_v36 = vsub.f32 %v5268_v37, %v2243_v42  ;;  %v2244_v0 = vmul.f32 0.00390625, %v2172_v18  ;;  %2228 = vadd.xlane.f32.xlu0 %v2227_v44  ;;  %v3711_v37 = vld [vmem:[%s6112_s11 + $0x28] sm:$0xff]   ;;  %3531 = vmatprep.subr.bf16.mxu0 %v3710_v19  ;;  %v3713_v18 = vld [vmem:[%s6112_s11 + $0x30] sm:$0xff]  }
 0x3d8   : > { %v2349_v13 = vmul.f32 %v5571_v9, %v5571_v9  ;;  %v2350_v60 = vmul.f32 %v5574_v36, %v5574_v36  ;;  %v5584_v40 = vsub.f32 %v5271_v30, %v2244_v0  ;;  %v5587_v45 = vsub.f32 %v5274_v52, %v2244_v0  ;;  %2231 = vadd.xlane.f32.xlu1 %v2230_v10  ;;  %v3712_v30 = vld [vmem:[%s6112_s11 + $0x70] sm:$0xff]  }
 0x3d9   : > { %3532 = vmatpush3.bf16.msra.mxu0 %v3711_v37  ;;  %v3714_v37 = vld [vmem:[%s6112_s11 + $0x78] sm:$0xff]  }
 0x3da   : > { %v2351_v44 = vmul.f32 %v5584_v40, %v5584_v40  ;;  %v2352_v41 = vmul.f32 %v5587_v45, %v5587_v45  ;;  %v2423_v42 = vadd.f32 %v2350_v60, %v2349_v13  ;;  %3533 = vmatprep.subr.bf16.mxu0 %v3712_v30 }
 0x3db   : > { %v2175_v4 = vpop.xlane.xlu0 %2174 }
 0x3dc   : > { %v2245_v52 = vmul.f32 0.00390625, %v2175_v4  ;;  %2424 = vadd.xlane.f32.xlu0 %v2423_v42  ;;  %v2426_v10 = vadd.f32 %v2352_v41, %v2351_v44 }
 0x3dd   : > { %v2178_v0 = vpop.xlane.xlu1 %2177  ;;  %3534 = vmatpush3.bf16.msra.mxu0 %v3713_v18 }
 0x3de   : > { %v5603_v19 = vsub.f32 %v5281_v11, %v2245_v52  ;;  %v5606_v13 = vsub.f32 %v5284_v57, %v2245_v52  ;;  %v2246_v60 = vmul.f32 0.00390625, %v2178_v0  ;;  %2427 = vadd.xlane.f32.xlu1 %v2426_v10  ;;  %v3715_v57 = vld [vmem:[%s6112_s11 + $0x38] sm:$0xff]   ;;  %3535 = vmatprep.subr.bf16.mxu0 %v3714_v37 }
 0x3e0   : > { %v2353_v44 = vmul.f32 %v5603_v19, %v5603_v19  ;;  %v2354_v41 = vmul.f32 %v5606_v13, %v5606_v13  ;;  %v5616_v42 = vsub.f32 %v5287_v28, %v2246_v60  ;;  %v5619_v11 = vsub.f32 %v5290_v61, %v2246_v60 }
 0x3e1   : > { %3536 = vmatpush3.bf16.msra.mxu0 %v3715_v57 }
 0x3e2   : > { %6284 = vst [vmem:[#allocation12_spill] sm:$0xff] %v5616_v42  ;;  %v2355_v4 = vmul.f32 %v5616_v42, %v5616_v42  ;;  %v2356_v30 = vmul.f32 %v5619_v11, %v5619_v11  ;;  %v2429_v52 = vadd.f32 %v2354_v41, %v2353_v44 }
 0x3e3   : > { %v2181_v10 = vpop.xlane.xlu0 %2180 }
 0x3e4   : > { %v2247_v18 = vmul.f32 0.00390625, %v2181_v10  ;;  %2430 = vadd.xlane.f32.xlu0 %v2429_v52  ;;  %v2432_v28 = vadd.f32 %v2356_v30, %v2355_v4 }
 0x3e5   : > { %v2184_v0 = vpop.xlane.xlu1 %2183 }
 0x3e6   : > { %v5629_v61 = vsub.f32 %v5297_v25, %v2247_v18  ;;  %v5632_v60 = vsub.f32 %v5300_v26, %v2247_v18  ;;  %v2248_v37 = vmul.f32 0.00390625, %v2184_v0  ;;  %2433 = vadd.xlane.f32.xlu1 %v2432_v28 }
 0x3e8   : > { %v2357_v42 = vmul.f32 %v5629_v61, %v5629_v61  ;;  %v2358_v44 = vmul.f32 %v5632_v60, %v5632_v60  ;;  %v5639_v41 = vsub.f32 %v5303_v63, %v2248_v37  ;;  %v5642_v57 = vsub.f32 %v5306_v62, %v2248_v37 }
 0x3ea   : > { %v2359_v25 = vmul.f32 %v5639_v41, %v5639_v41  ;;  %v2360_v26 = vmul.f32 %v5642_v57, %v5642_v57  ;;  %v2435_v4 = vadd.f32 %v2358_v44, %v2357_v42 }
 0x3eb   : > { %v2187_v30 = vpop.xlane.xlu0 %2186 }
 0x3ec   : > { %v2249_v52 = vmul.f32 0.00390625, %v2187_v30  ;;  %2436 = vadd.xlane.f32.xlu0 %v2435_v4  ;;  %v2438_v10 = vadd.f32 %v2360_v26, %v2359_v25 }
 0x3ed   : > { %v2190_v18 = vpop.xlane.xlu1 %2189 }
 0x3ee   : > { %v5649_v28 = vsub.f32 %v5313_v22, %v2249_v52  ;;  %v5652_v63 = vsub.f32 %v5316_v51, %v2249_v52  ;;  %v2250_v62 = vmul.f32 0.00390625, %v2190_v18  ;;  %2439 = vadd.xlane.f32.xlu1 %v2438_v10 }
 0x3f0   : > { %v2361_v0 = vmul.f32 %v5649_v28, %v5649_v28  ;;  %v2362_v37 = vmul.f32 %v5652_v63, %v5652_v63  ;;  %v5659_v42 = vsub.f32 %v5319_v2, %v2250_v62  ;;  %v5662_v44 = vsub.f32 %v5322_v12, %v2250_v62 }
 0x3f2   : > { %v2363_v22 = vmul.f32 %v5659_v42, %v5659_v42  ;;  %v2364_v51 = vmul.f32 %v5662_v44, %v5662_v44  ;;  %v2441_v25 = vadd.f32 %v2362_v37, %v2361_v0 }
 0x3f3   : > { %v2193_v26 = vpop.xlane.xlu0 %2192 }
 0x3f4   : > { %v2251_v4 = vmul.f32 0.00390625, %v2193_v26  ;;  %2442 = vadd.xlane.f32.xlu0 %v2441_v25  ;;  %v2444_v30 = vadd.f32 %v2364_v51, %v2363_v22 }
 0x3f5   : > { %v2196_v52 = vpop.xlane.xlu1 %2195 }
 0x3f6   : > { %v5669_v10 = vsub.f32 %v5329_v59, %v2251_v4  ;;  %v5672_v2 = vsub.f32 %v5332_v31, %v2251_v4  ;;  %v2252_v12 = vmul.f32 0.00390625, %v2196_v52  ;;  %2445 = vadd.xlane.f32.xlu1 %v2444_v30 }
 0x3f8   : > { %v2365_v18 = vmul.f32 %v5669_v10, %v5669_v10  ;;  %v2366_v62 = vmul.f32 %v5672_v2, %v5672_v2  ;;  %v5679_v0 = vsub.f32 %v5335_v23, %v2252_v12  ;;  %v5682_v37 = vsub.f32 %v5338_v21, %v2252_v12 }
 0x3fa   : > { %6285 = vst [vmem:[#allocation22_spill] sm:$0xff] %v5682_v37  ;;  %v2367_v59 = vmul.f32 %v5679_v0, %v5679_v0  ;;  %v2368_v31 = vmul.f32 %v5682_v37, %v5682_v37  ;;  %v2447_v22 = vadd.f32 %v2366_v62, %v2365_v18 }
 0x3fb   : > { %v2199_v51 = vpop.xlane.xlu0 %2198 }
 0x3fc   : > { %v2253_v25 = vmul.f32 0.00390625, %v2199_v51  ;;  %2448 = vadd.xlane.f32.xlu0 %v2447_v22  ;;  %v2450_v26 = vadd.f32 %v2368_v31, %v2367_v59 }
 0x3fd   : > { %v2202_v4 = vpop.xlane.xlu1 %2201 }
 0x3fe   : > { %v5689_v30 = vsub.f32 %v5345_v38, %v2253_v25  ;;  %v5692_v23 = vsub.f32 %v5348_v1, %v2253_v25  ;;  %v2254_v21 = vmul.f32 0.00390625, %v2202_v4  ;;  %2451 = vadd.xlane.f32.xlu1 %v2450_v26 }
 0x400   : > { %6286 = vst [vmem:[#allocation23_spill] sm:$0xff] %v5689_v30  ;;  %6287 = vst [vmem:[#allocation24_spill] sm:$0xff] %v5692_v23  ;;  %v2369_v52 = vmul.f32 %v5689_v30, %v5689_v30  ;;  %v2370_v12 = vmul.f32 %v5692_v23, %v5692_v23  ;;  %v5699_v18 = vsub.f32 %v5351_v6, %v2254_v21 }
 0x401   : > { %v5702_v62 = vsub.f32 %v5354_v54, %v2254_v21 }
 0x402   : > { %6288 = vst [vmem:[#allocation25_spill] sm:$0xff] %v5699_v18  ;;  %v2371_v38 = vmul.f32 %v5699_v18, %v5699_v18  ;;  %v2453_v59 = vadd.f32 %v2370_v12, %v2369_v52 }
 0x403   : > { %6289 = vst [vmem:[#allocation26_spill] sm:$0xff] %v5702_v62  ;;  %v2372_v1 = vmul.f32 %v5702_v62, %v5702_v62 }
 0x404   : > { %2454 = vadd.xlane.f32.xlu0 %v2453_v59 }
 0x405   : > { %v2456_v31 = vadd.f32 %v2372_v1, %v2371_v38 }
 0x407   : > { %2457 = vadd.xlane.f32.xlu1 %v2456_v31 }
 0x434   : > { %v2395_v22 = vpop.xlane.xlu0 %2394 }
 0x435   : > { %v2489_v51 = vmul.f32 0.00390625, %v2395_v22  ;;  %v2136_v22 = vld [vmem:[%s6111_s10] sm:$0x3] }
 0x436   : > { %v2398_v25 = vpop.xlane.xlu1 %2397 }
 0x437   : > { %v2521_v26 = vadd.f32 1e-05, %v2489_v51  ;;  %v2490_v4 = vmul.f32 0.00390625, %v2398_v25 }
 0x438   : > { %v2205_v6 = vpop.xlane.xlu0 %2204 }
 0x439   : > { %3780 = vrsqrt.f32 %v2521_v26  ;;  %v2522_v23 = vadd.f32 1e-05, %v2490_v4  ;;  %v2255_v54 = vmul.f32 0.00390625, %v2205_v6  ;;  %v5741_v26 = vrot.slane %v2136_v22, %v6267_v20  ;;  %v6294_v6 = vld [vmem:[#allocation18_spill] sm:$0xff] }
 0x43a   : > { %v2208_v21 = vpop.xlane.xlu1 %2207 }
 0x43b   : > { %3782 = vrsqrt.f32 %v2522_v23  ;;  %v5709_v18 = vsub.f32 %v5387_v43, %v2255_v54  ;;  %v5712_v62 = vsub.f32 %v5390_v32, %v2255_v54  ;;  %v2256_v52 = vmul.f32 0.00390625, %v2208_v21  ;;  %v2135_v43 = vld [vmem:[%s6110_s9] sm:$0x3] }
 0x43c   : > { %v5738_v51 = vrot.slane %v2135_v43, %v6268_v5 }
 0x43d   : > { %6290 = vst [vmem:[#allocation16_spill] sm:$0xff] %v5709_v18  ;;  %6291 = vst [vmem:[#allocation17_spill] sm:$0xff] %v5712_v62  ;;  %v2373_v12 = vmul.f32 %v5709_v18, %v5709_v18  ;;  %v2374_v38 = vmul.f32 %v5712_v62, %v5712_v62  ;;  %v5719_v1 = vsub.f32 %v5393_v48, %v2256_v52 }
 0x43e   : > { %v5722_v59 = vsub.f32 %v5396_v27, %v2256_v52  ;;  %v5735_v27 = vrot.slane %v2135_v43, %v6267_v20  ;;  %v5746_v52 = vrot.slane %v2136_v22, %v6268_v5 }
 0x43f   : > { %6292 = vst [vmem:[#allocation27_spill] sm:$0xff] %v5719_v1  ;;  %v2375_v32 = vmul.f32 %v5719_v1, %v5719_v1  ;;  %v2459_v31 = vadd.f32 %v2374_v38, %v2373_v12 }
 0x440   : > { %6293 = vst [vmem:[#allocation2_spill] sm:$0xff] %v5722_v59  ;;  %v2376_v23 = vmul.f32 %v5722_v59, %v5722_v59 }
 0x441   : > { %2460 = vadd.xlane.f32.xlu0 %v2459_v31  ;;  %v6296_v31 = vld [vmem:[#allocation20_spill] sm:$0xff] }
 0x442   : > { %v2462_v48 = vadd.f32 %v2376_v23, %v2375_v32  ;;  %v6295_v23 = vld [vmem:[#allocation19_spill] sm:$0xff] }
 0x443   : > { %v3781_v25 = vpop.eup %3780 }
 0x444   : > { %2463 = vadd.xlane.f32.xlu1 %v2462_v48  ;;  %v2585_v4 = vmul.f32 %v3781_v25, %v5367_v24  ;;  %v2586_v54 = vmul.f32 %v3781_v25, %v6294_v6  ;;  %v2401_v21 = vpop.xlane.xlu0 %2400 }
 0x445   : > { %v3783_v12 = vpop.eup %3782  ;;  %v2491_v38 = vmul.f32 0.00390625, %v2401_v21  ;;  %v2404_v48 = vpop.xlane.xlu1 %2403 }
 0x446   : > { %v2660_v32 = vmul.f32 %v5735_v27, %v2585_v4  ;;  %v2587_v43 = vmul.f32 %v3783_v12, %v6295_v23  ;;  %v2588_v59 = vmul.f32 %v3783_v12, %v6296_v31  ;;  %v2661_v20 = vmul.f32 %v5738_v51, %v2586_v54 }
 0x447   : > { %v2523_v1 = vadd.f32 1e-05, %v2491_v38  ;;  %v2492_v62 = vmul.f32 0.00390625, %v2404_v48 }
 0x448   : > { %v2735_v24 = vadd.f32 %v5741_v26, %v2660_v32  ;;  %v2662_v25 = vmul.f32 %v5735_v27, %v2587_v43  ;;  %v2211_v6 = vpop.xlane.xlu0 %2210  ;;  %v2663_v5 = vmul.f32 %v5738_v51, %v2588_v59  ;;  %v2736_v22 = vadd.f32 %v5746_v52, %v2661_v20 }
 0x449   : > { %3784 = vrsqrt.f32 %v2523_v1  ;;  %v2524_v4 = vadd.f32 1e-05, %v2492_v62  ;;  %v2257_v21 = vmul.f32 0.00390625, %v2211_v6  ;;  %v2214_v12 = vpop.xlane.xlu1 %2213 }
 0x44a   : > { %v2737_v23 = vadd.f32 %v5741_v26, %v2662_v25  ;;  %v2738_v31 = vadd.f32 %v5746_v52, %v2663_v5  ;;  %vm2800_vm1 = vcmp.ge.f32.partialorder %v2736_v22, 0.0  ;;  %v2864_v54 = vmul.f32 0.01, %v2736_v22 }
 0x44b   : > { %3786 = vrsqrt.f32 %v2524_v4  ;;  %v5759_v38 = vsub.f32 %v5409_v55, %v2257_v21  ;;  %v5762_v32 = vsub.f32 %v5412_v7, %v2257_v21  ;;  %v2258_v59 = vmul.f32 0.00390625, %v2214_v12 }
 0x44c   : > { %vm2802_vm2 = vcmp.ge.f32.partialorder %v2738_v31, 0.0  ;;  %v2866_v43 = vmul.f32 0.01, %v2738_v31  ;;  %v2928_v1 = vsel %vm2800_vm1, %v2736_v22, %v2864_v54  ;;  %vm2799_vm3 = vcmp.ge.f32.partialorder %v2735_v24, 0.0 }
 0x44d   : > { %6297 = vst [vmem:[#allocation3_spill] sm:$0xff] %v5759_v38  ;;  %6298 = vst [vmem:[#allocation18_spill] sm:$0xff] %v5762_v32  ;;  %v2377_v62 = vmul.f32 %v5759_v38, %v5759_v38  ;;  %v2378_v48 = vmul.f32 %v5762_v32, %v5762_v32  ;;  %v5769_v20 = vsub.f32 %v5425_v8, %v2258_v59  ;;  %vm2801_vm4 = vcmp.ge.f32.partialorder %v2737_v23, 0.0 }
 0x44e   : > { %v5772_v55 = vsub.f32 %v5428_v53, %v2258_v59  ;;  %v2407_v25 = vpop.xlane.xlu0 %2406  ;;  %v2930_v7 = vsel %vm2802_vm2, %v2738_v31, %v2866_v43  ;;  %v2863_v6 = vmul.f32 0.01, %v2735_v24  ;;  %v2865_v5 = vmul.f32 0.01, %v2737_v23 }
 0x44f   : > { %6299 = vst [vmem:[#allocation19_spill] sm:$0xff] %v5769_v20  ;;  %v2379_v22 = vmul.f32 %v5769_v20, %v5769_v20  ;;  %v2493_v21 = vmul.f32 0.00390625, %v2407_v25  ;;  %v2465_v12 = vadd.f32 %v2378_v48, %v2377_v62  ;;  %v2410_v54 = vpop.xlane.xlu1 %2409  ;;  %v2992_v32 = vpack.c.bf16 %v2930_v7, %v2928_v1  ;;  %v6300_v25 = vld [vmem:[#allocation21_spill] sm:$0xff]  ;;  %v6301_v48 = vld [vmem:[#allocation4_spill] sm:$0xff] }
 0x450   : > { %v2380_v4 = vmul.f32 %v5772_v55, %v5772_v55  ;;  %v2927_v8 = vsel %vm2799_vm3, %v2735_v24, %v2863_v6  ;;  %v2929_v38 = vsel %vm2801_vm4, %v2737_v23, %v2865_v5  ;;  %v2494_v59 = vmul.f32 0.00390625, %v2410_v54  ;;  %v6302_v6 = vld [vmem:[#allocation5_spill] sm:$0xff] }
 0x451   : > { %v2525_v53 = vadd.f32 1e-05, %v2493_v21  ;;  %2466 = vadd.xlane.f32.xlu0 %v2465_v12  ;;  %v2991_v43 = vpack.c.bf16 %v2929_v38, %v2927_v8  ;;  %3190 = vmatprep.mubr.bf16.mxu0 %v2992_v32 }
 0x452   : > { %v2468_v31 = vadd.f32 %v2380_v4, %v2379_v22  ;;  %v2217_v18 = vpop.xlane.xlu0 %2216  ;;  %v2526_v20 = vadd.f32 1e-05, %v2494_v59  ;;  %v6303_v22 = vld [vmem:[#allocation6_spill] sm:$0xff] }
 0x453   : > { %v3785_v30 = vpop.eup %3784  ;;  %3788 = vrsqrt.f32 %v2525_v53  ;;  %v2259_v37 = vmul.f32 0.00390625, %v2217_v18  ;;  %3191 = vmatmul.mubr.bf16.vlgmr.msra.gmra.mrb[32].mxu0 %v2991_v43  ;;  %v2220_v7 = vpop.xlane.xlu1 %2219 }
 0x454   : > { %2469 = vadd.xlane.f32.xlu1 %v2468_v31  ;;  %v2589_v62 = vmul.f32 %v3785_v30, %v6300_v25  ;;  %v2590_v1 = vmul.f32 %v3785_v30, %v6301_v48  ;;  %3790 = vrsqrt.f32 %v2526_v20  ;;  %v2260_v32 = vmul.f32 0.00390625, %v2220_v7 }
 0x455   : > { %v3787_v24 = vpop.eup %3786  ;;  %v5782_v23 = vsub.f32 %v5445_v33, %v2259_v37  ;;  %v5785_v38 = vsub.f32 %v5448_v58, %v2259_v37 }
 0x456   : > { %v2591_v5 = vmul.f32 %v3787_v24, %v6302_v6  ;;  %v2592_v18 = vmul.f32 %v3787_v24, %v6303_v22  ;;  %v2413_v4 = vpop.xlane.xlu0 %2412  ;;  %v2665_v21 = vmul.f32 %v5738_v51, %v2590_v1  ;;  %v2664_v12 = vmul.f32 %v5735_v27, %v2589_v62 }
 0x457   : > { %v2381_v30 = vmul.f32 %v5782_v23, %v5782_v23  ;;  %v2382_v33 = vmul.f32 %v5785_v38, %v5785_v38  ;;  %v5796_v20 = vsub.f32 %v5461_v56, %v2260_v32  ;;  %v5799_v58 = vsub.f32 %v5464_v3, %v2260_v32 }
 0x458   : > { %v2495_v37 = vmul.f32 0.00390625, %v2413_v4  ;;  %v2416_v54 = vpop.xlane.xlu1 %2415  ;;  %v2667_v8 = vmul.f32 %v5738_v51, %v2592_v18  ;;  %v2740_v53 = vadd.f32 %v5746_v52, %v2665_v21  ;;  %v2666_v59 = vmul.f32 %v5735_v27, %v2591_v5 }
 0x459   : > { %v2383_v31 = vmul.f32 %v5796_v20, %v5796_v20  ;;  %v2384_v43 = vmul.f32 %v5799_v58, %v5799_v58  ;;  %v2496_v25 = vmul.f32 0.00390625, %v2416_v54  ;;  %v2471_v56 = vadd.f32 %v2382_v33, %v2381_v30  ;;  %v6304_v54 = vld [vmem:[#allocation9_spill] sm:$0xff] }
 0x45a   : > { %v2527_v62 = vadd.f32 1e-05, %v2495_v37  ;;  %v2223_v48 = vpop.xlane.xlu0 %2222  ;;  %v2742_v3 = vadd.f32 %v5746_v52, %v2667_v8  ;;  %vm2804_vm5 = vcmp.ge.f32.partialorder %v2740_v53, 0.0  ;;  %v2868_v1 = vmul.f32 0.01, %v2740_v53 }
 0x45b   : > { %v2528_v7 = vadd.f32 1e-05, %v2496_v25  ;;  %v2261_v24 = vmul.f32 0.00390625, %v2223_v48  ;;  %2472 = vadd.xlane.f32.xlu0 %v2471_v56  ;;  %v2474_v32 = vadd.f32 %v2384_v43, %v2383_v31  ;;  %v2739_v6 = vadd.f32 %v5741_v26, %v2664_v12  ;;  %v6305_v56 = vld [vmem:[#allocation7_spill] sm:$0xff] }
 0x45c   : > { %3792 = vrsqrt.f32 %v2527_v62  ;;  %v2226_v5 = vpop.xlane.xlu1 %2225  ;;  %vm2806_vm6 = vcmp.ge.f32.partialorder %v2742_v3, 0.0  ;;  %v2870_v22 = vmul.f32 0.01, %v2742_v3  ;;  %v2932_v18 = vsel %vm2804_vm5, %v2740_v53, %v2868_v1  ;;  %v6306_v62 = vld [vmem:[#allocation10_spill] sm:$0xff] }
 0x45d   : > { %v3789_v4 = vpop.eup %3788  ;;  %3794 = vrsqrt.f32 %v2528_v7  ;;  %v5811_v21 = vsub.f32 %v5481_v50, %v2261_v24  ;;  %v5814_v30 = vsub.f32 %v5484_v49, %v2261_v24  ;;  %v2262_v33 = vmul.f32 0.00390625, %v2226_v5  ;;  %2475 = vadd.xlane.f32.xlu1 %v2474_v32 }
 0x45e   : > { %v2593_v37 = vmul.f32 %v3789_v4, %v5439_v46  ;;  %v2594_v8 = vmul.f32 %v3789_v4, %v6304_v54  ;;  %v2934_v12 = vsel %vm2806_vm6, %v2742_v3, %v2870_v22  ;;  %v2741_v31 = vadd.f32 %v5741_v26, %v2666_v59  ;;  %v3791_v43 = vpop.eup %3790 }
 0x45f   : > { %v2385_v53 = vmul.f32 %v5811_v21, %v5811_v21  ;;  %v2386_v50 = vmul.f32 %v5814_v30, %v5814_v30  ;;  %v5824_v25 = vsub.f32 %v5497_v47, %v2262_v33  ;;  %v5827_v49 = vsub.f32 %v5504_v29, %v2262_v33  ;;  %v2419_v3 = vpop.xlane.xlu0 %2418 }
 0x460   : > { %v2595_v46 = vmul.f32 %v3791_v43, %v6305_v56  ;;  %v2596_v48 = vmul.f32 %v3791_v43, %v6306_v62  ;;  %v2994_v1 = vpack.c.bf16 %v2934_v12, %v2932_v18  ;;  %vm2803_vm7 = vcmp.ge.f32.partialorder %v2739_v6, 0.0 }
 0x461   : > { %v2387_v59 = vmul.f32 %v5824_v25, %v5824_v25  ;;  %v2388_v7 = vmul.f32 %v5827_v49, %v5827_v49  ;;  %v2497_v24 = vmul.f32 0.00390625, %v2419_v3  ;;  %v2477_v32 = vadd.f32 %v2386_v50, %v2385_v53  ;;  %v2422_v47 = vpop.xlane.xlu1 %2421 }
 0x462   : > { %3198 = vmatprep.mubr.bf16.mxu0 %v2994_v1  ;;  %vm2805_vm8 = vcmp.ge.f32.partialorder %v2741_v31, 0.0  ;;  %v2867_v29 = vmul.f32 0.01, %v2739_v6  ;;  %v2869_v5 = vmul.f32 0.01, %v2741_v31  ;;  %v2669_v22 = vmul.f32 %v5738_v51, %v2594_v8 }
 0x463   : > { %v2529_v4 = vadd.f32 1e-05, %v2497_v24  ;;  %v2498_v33 = vmul.f32 0.00390625, %v2422_v47  ;;  %2478 = vadd.xlane.f32.xlu0 %v2477_v32  ;;  %v2480_v18 = vadd.f32 %v2388_v7, %v2387_v59  ;;  %v2671_v54 = vmul.f32 %v5738_v51, %v2596_v48  ;;  %v2229_v12 = vpop.xlane.xlu0 %2228  ;;  %v6308_v47 = vld [vmem:[#allocation8_spill] sm:$0xff] }
 0x464   : > { %v2931_v43 = vsel %vm2803_vm7, %v2739_v6, %v2867_v29  ;;  %v2933_v56 = vsel %vm2805_vm8, %v2741_v31, %v2869_v5  ;;  %v2744_v62 = vadd.f32 %v5746_v52, %v2669_v22  ;;  %v2668_v53 = vmul.f32 %v5735_v27, %v2593_v37  ;;  %v6307_v6 = vld [vmem:[#allocation11_spill] sm:$0xff]  ;;  %v6309_v5 = vld [vmem:[#allocation13_spill] sm:$0xff] }
 0x465   : > { %3796 = vrsqrt.f32 %v2529_v4  ;;  %v2530_v50 = vadd.f32 1e-05, %v2498_v33  ;;  %v2263_v3 = vmul.f32 0.00390625, %v2229_v12  ;;  %v2993_v1 = vpack.c.bf16 %v2933_v56, %v2931_v43  ;;  %2481 = vadd.xlane.f32.xlu1 %v2480_v18  ;;  %v2232_v24 = vpop.xlane.xlu1 %2231  ;;  %v6310_v4 = vld [vmem:[#allocation15_spill] sm:$0xff] }
 0x466   : > { %v3793_v8 = vpop.eup %3792  ;;  %v2746_v32 = vadd.f32 %v5746_v52, %v2671_v54  ;;  %vm2808_vm9 = vcmp.ge.f32.partialorder %v2744_v62, 0.0  ;;  %v2872_v59 = vmul.f32 0.01, %v2744_v62  ;;  %v2670_v48 = vmul.f32 %v5735_v27, %v2595_v46 }
 0x467   : > { %v3795_v7 = vpop.eup %3794  ;;  %v2597_v31 = vmul.f32 %v3793_v8, %v6307_v6  ;;  %v2598_v29 = vmul.f32 %v3793_v8, %v6308_v47  ;;  %3798 = vrsqrt.f32 %v2530_v50  ;;  %v5845_v37 = vsub.f32 %v5529_v34, %v2263_v3  ;;  %3199 = vmatmul.mubr.bf16.gmra.mrb[36].mxu0 %v2993_v1 }
 0x468   : > { %v2599_v22 = vmul.f32 %v3795_v7, %v6309_v5  ;;  %v2600_v33 = vmul.f32 %v3795_v7, %v6310_v4  ;;  %v5850_v18 = vsub.f32 %v5542_v35, %v2263_v3  ;;  %v2264_v54 = vmul.f32 0.00390625, %v2232_v24 }
 0x469   : > { %v2389_v46 = vmul.f32 %v5845_v37, %v5845_v37  ;;  %vm2810_vm10 = vcmp.ge.f32.partialorder %v2746_v32, 0.0  ;;  %v2874_v12 = vmul.f32 0.01, %v2746_v32  ;;  %v2936_v43 = vsel %vm2808_vm9, %v2744_v62, %v2872_v59  ;;  %v2425_v1 = vpop.xlane.xlu0 %2424 }
 0x46a   : > { %v2390_v34 = vmul.f32 %v5850_v18, %v5850_v18  ;;  %v5858_v56 = vsub.f32 %v5545_v14, %v2264_v54  ;;  %v5861_v50 = vsub.f32 %v5555_v15, %v2264_v54  ;;  %v2743_v35 = vadd.f32 %v5741_v26, %v2668_v53 }
 0x46b   : > { %v2499_v3 = vmul.f32 0.00390625, %v2425_v1  ;;  %v2938_v8 = vsel %vm2810_vm10, %v2746_v32, %v2874_v12  ;;  %v2745_v24 = vadd.f32 %v5741_v26, %v2670_v48  ;;  %v2673_v7 = vmul.f32 %v5738_v51, %v2598_v29  ;;  %v2428_v14 = vpop.xlane.xlu1 %2427 }
 0x46c   : > { %v2391_v62 = vmul.f32 %v5858_v56, %v5858_v56  ;;  %v2392_v59 = vmul.f32 %v5861_v50, %v5861_v50  ;;  %v2996_v6 = vpack.c.bf16 %v2938_v8, %v2936_v43  ;;  %v2483_v47 = vadd.f32 %v2390_v34, %v2389_v46 }
 0x46d   : > { %v2531_v15 = vadd.f32 1e-05, %v2499_v3  ;;  %v2500_v5 = vmul.f32 0.00390625, %v2428_v14  ;;  %vm2807_vm11 = vcmp.ge.f32.partialorder %v2743_v35, 0.0  ;;  %vm2809_vm12 = vcmp.ge.f32.partialorder %v2745_v24, 0.0 }
 0x46e   : > { %3206 = vmatprep.mubr.bf16.mxu0 %v2996_v6  ;;  %2484 = vadd.xlane.f32.xlu0 %v2483_v47  ;;  %v2871_v53 = vmul.f32 0.01, %v2743_v35  ;;  %v2873_v32 = vmul.f32 0.01, %v2745_v24  ;;  %v2486_v48 = vadd.f32 %v2392_v59, %v2391_v62  ;;  %v2675_v29 = vmul.f32 %v5738_v51, %v2600_v33  ;;  %v6311_v59 = vld [vmem:[#allocation14_spill] sm:$0xff] }
 0x46f   : > { %v3797_v4 = vpop.eup %3796  ;;  %3800 = vrsqrt.f32 %v2531_v15  ;;  %v2532_v54 = vadd.f32 1e-05, %v2500_v5  ;;  %v2748_v12 = vadd.f32 %v5746_v52, %v2673_v7  ;;  %v2672_v1 = vmul.f32 %v5735_v27, %v2597_v31 }
 0x470   : > { %v2601_v46 = vmul.f32 %v3797_v4, %v5523_v16  ;;  %v2602_v43 = vmul.f32 %v3797_v4, %v5526_v17  ;;  %v2935_v34 = vsel %vm2807_vm11, %v2743_v35, %v2871_v53  ;;  %v2937_v3 = vsel %vm2809_vm12, %v2745_v24, %v2873_v32  ;;  %2487 = vadd.xlane.f32.xlu1 %v2486_v48 }
 0x471   : > { %v3799_v8 = vpop.eup %3798  ;;  %3802 = vrsqrt.f32 %v2532_v54  ;;  %v2995_v14 = vpack.c.bf16 %v2937_v3, %v2935_v34  ;;  %v2750_v62 = vadd.f32 %v5746_v52, %v2675_v29  ;;  %vm2812_vm13 = vcmp.ge.f32.partialorder %v2748_v12, 0.0  ;;  %v2431_v7 = vpop.xlane.xlu0 %2430 }
 0x472   : > { %v2603_v33 = vmul.f32 %v3799_v8, %v5536_v39  ;;  %v2604_v6 = vmul.f32 %v3799_v8, %v6311_v59  ;;  %v2876_v47 = vmul.f32 0.01, %v2748_v12  ;;  %v2674_v31 = vmul.f32 %v5735_v27, %v2599_v22 }
 0x473   : > { %3207 = vmatmul.mubr.bf16.gmra.mrb[40].mxu0 %v2995_v14  ;;  %v2501_v16 = vmul.f32 0.00390625, %v2431_v7  ;;  %vm2814_vm14 = vcmp.ge.f32.partialorder %v2750_v62, 0.0  ;;  %v2878_v17 = vmul.f32 0.01, %v2750_v62  ;;  %v2747_v35 = vadd.f32 %v5741_v26, %v2672_v1  ;;  %v2434_v24 = vpop.xlane.xlu1 %2433 }
 0x474   : > { %v2940_v15 = vsel %vm2812_vm13, %v2748_v12, %v2876_v47  ;;  %v2749_v5 = vadd.f32 %v5741_v26, %v2674_v31  ;;  %v2677_v53 = vmul.f32 %v5738_v51, %v2602_v43  ;;  %v2679_v39 = vmul.f32 %v5738_v51, %v2604_v6 }
 0x475   : > { %v2533_v32 = vadd.f32 1e-05, %v2501_v16  ;;  %v2502_v48 = vmul.f32 0.00390625, %v2434_v24  ;;  %v2942_v29 = vsel %vm2814_vm14, %v2750_v62, %v2878_v17  ;;  %vm2811_vm15 = vcmp.ge.f32.partialorder %v2747_v35, 0.0 }
 0x476   : > { %v2998_v4 = vpack.c.bf16 %v2942_v29, %v2940_v15  ;;  %vm2813_vm0 = vcmp.ge.f32.partialorder %v2749_v5, 0.0  ;;  %v2875_v22 = vmul.f32 0.01, %v2747_v35  ;;  %v2877_v54 = vmul.f32 0.01, %v2749_v5 }
 0x477   : > { %3804 = vrsqrt.f32 %v2533_v32  ;;  %v2534_v34 = vadd.f32 1e-05, %v2502_v48  ;;  %v2752_v1 = vadd.f32 %v5746_v52, %v2677_v53  ;;  %v2754_v12 = vadd.f32 %v5746_v52, %v2679_v39 }
 0x478   : > { %3214 = vmatprep.mubr.bf16.mxu0 %v2998_v4  ;;  %v2939_v3 = vsel %vm2811_vm15, %v2747_v35, %v2875_v22  ;;  %v2941_v8 = vsel %vm2813_vm0, %v2749_v5, %v2877_v54  ;;  %v2676_v43 = vmul.f32 %v5735_v27, %v2601_v46  ;;  %v2678_v14 = vmul.f32 %v5735_v27, %v2603_v33 }
 0x479   : > { %v3801_v59 = vpop.eup %3800  ;;  %3806 = vrsqrt.f32 %v2534_v34  ;;  %v2997_v62 = vpack.c.bf16 %v2941_v8, %v2939_v3  ;;  %vm2816_vm1 = vcmp.ge.f32.partialorder %v2752_v1, 0.0  ;;  %vm2818_vm2 = vcmp.ge.f32.partialorder %v2754_v12, 0.0  ;;  %v2437_v7 = vpop.xlane.xlu0 %2436 }
 0x47a   : > { %v2606_v6 = vmul.f32 %v3801_v59, %v5574_v36  ;;  %v2880_v47 = vmul.f32 0.01, %v2752_v1  ;;  %v2882_v31 = vmul.f32 0.01, %v2754_v12  ;;  %v2605_v17 = vmul.f32 %v3801_v59, %v5571_v9 }
 0x47b   : > { %v3803_v16 = vpop.eup %3802  ;;  %3215 = vmatmul.mubr.bf16.gmra.mrb[44].mxu0 %v2997_v62  ;;  %v2503_v35 = vmul.f32 0.00390625, %v2437_v7  ;;  %v2751_v24 = vadd.f32 %v5741_v26, %v2676_v43  ;;  %v2753_v46 = vadd.f32 %v5741_v26, %v2678_v14  ;;  %v2440_v5 = vpop.xlane.xlu1 %2439 }
 0x47c   : > { %v2607_v33 = vmul.f32 %v3803_v16, %v5584_v40  ;;  %v2608_v15 = vmul.f32 %v3803_v16, %v5587_v45  ;;  %v2944_v53 = vsel %vm2816_vm1, %v2752_v1, %v2880_v47  ;;  %v2946_v39 = vsel %vm2818_vm2, %v2754_v12, %v2882_v31 }
 0x47d   : > { %v2535_v36 = vadd.f32 1e-05, %v2503_v35  ;;  %v2504_v32 = vmul.f32 0.00390625, %v2440_v5  ;;  %v3000_v48 = vpack.c.bf16 %v2946_v39, %v2944_v53  ;;  %vm2815_vm3 = vcmp.ge.f32.partialorder %v2751_v24, 0.0  ;;  %v6312_v35 = vld [vmem:[#allocation12_spill] sm:$0xff] }
 0x47e   : > { %vm2817_vm4 = vcmp.ge.f32.partialorder %v2753_v46, 0.0  ;;  %v2879_v29 = vmul.f32 0.01, %v2751_v24  ;;  %v2881_v9 = vmul.f32 0.01, %v2753_v46  ;;  %v2681_v4 = vmul.f32 %v5738_v51, %v2606_v6 }
 0x47f   : > { %3808 = vrsqrt.f32 %v2535_v36  ;;  %v2536_v22 = vadd.f32 1e-05, %v2504_v32  ;;  %3222 = vmatprep.mubr.bf16.mxu0 %v3000_v48  ;;  %v2683_v54 = vmul.f32 %v5738_v51, %v2608_v15  ;;  %v2680_v40 = vmul.f32 %v5735_v27, %v2605_v17 }
 0x480   : > { %v2943_v45 = vsel %vm2815_vm3, %v2751_v24, %v2879_v29  ;;  %v2945_v34 = vsel %vm2817_vm4, %v2753_v46, %v2881_v9  ;;  %v2756_v1 = vadd.f32 %v5746_v52, %v2681_v4  ;;  %v2682_v12 = vmul.f32 %v5735_v27, %v2607_v33 }
 0x481   : > { %v3805_v3 = vpop.eup %3804  ;;  %3810 = vrsqrt.f32 %v2536_v22  ;;  %v2999_v8 = vpack.c.bf16 %v2945_v34, %v2943_v45  ;;  %v2758_v43 = vadd.f32 %v5746_v52, %v2683_v54  ;;  %v2755_v14 = vadd.f32 %v5741_v26, %v2680_v40  ;;  %v2443_v6 = vpop.xlane.xlu0 %2442 }
 0x482   : > { %v2609_v59 = vmul.f32 %v3805_v3, %v5603_v19  ;;  %v2610_v62 = vmul.f32 %v3805_v3, %v5606_v13  ;;  %vm2820_vm5 = vcmp.ge.f32.partialorder %v2756_v1, 0.0  ;;  %v2884_v7 = vmul.f32 0.01, %v2756_v1 }
 0x483   : > { %v3807_v47 = vpop.eup %3806  ;;  %3223 = vmatmul.mubr.bf16.gmra.mrb[48].mxu0 %v2999_v8  ;;  %v2505_v31 = vmul.f32 0.00390625, %v2443_v6  ;;  %vm2822_vm6 = vcmp.ge.f32.partialorder %v2758_v43, 0.0  ;;  %v2886_v16 = vmul.f32 0.01, %v2758_v43  ;;  %v2757_v17 = vadd.f32 %v5741_v26, %v2682_v12  ;;  %v2446_v33 = vpop.xlane.xlu1 %2445 }
 0x484   : > { %v2611_v24 = vmul.f32 %v3807_v47, %v6312_v35  ;;  %v2612_v46 = vmul.f32 %v3807_v47, %v5619_v11  ;;  %v2948_v15 = vsel %vm2820_vm5, %v2756_v1, %v2884_v7  ;;  %vm2819_vm7 = vcmp.ge.f32.partialorder %v2755_v14, 0.0 }
 0x485   : > { %v2537_v19 = vadd.f32 1e-05, %v2505_v31  ;;  %v2506_v5 = vmul.f32 0.00390625, %v2446_v33  ;;  %v2950_v13 = vsel %vm2822_vm6, %v2758_v43, %v2886_v16  ;;  %vm2821_vm8 = vcmp.ge.f32.partialorder %v2757_v17, 0.0 }
 0x486   : > { %v3002_v53 = vpack.c.bf16 %v2950_v13, %v2948_v15  ;;  %v2883_v39 = vmul.f32 0.01, %v2755_v14  ;;  %v2885_v36 = vmul.f32 0.01, %v2757_v17  ;;  %v2685_v32 = vmul.f32 %v5738_v51, %v2610_v62 }
 0x487   : > { %3812 = vrsqrt.f32 %v2537_v19  ;;  %v2538_v48 = vadd.f32 1e-05, %v2506_v5  ;;  %v2687_v29 = vmul.f32 %v5738_v51, %v2612_v46  ;;  %v2684_v9 = vmul.f32 %v5735_v27, %v2609_v59 }
 0x488   : > { %3230 = vmatprep.mubr.bf16.mxu0 %v3002_v53  ;;  %v2947_v11 = vsel %vm2819_vm7, %v2755_v14, %v2883_v39  ;;  %v2949_v4 = vsel %vm2821_vm8, %v2757_v17, %v2885_v36  ;;  %v2760_v22 = vadd.f32 %v5746_v52, %v2685_v32  ;;  %v2686_v54 = vmul.f32 %v5735_v27, %v2611_v24 }
 0x489   : > { %v3809_v40 = vpop.eup %3808  ;;  %3814 = vrsqrt.f32 %v2538_v48  ;;  %v3001_v45 = vpack.c.bf16 %v2949_v4, %v2947_v11  ;;  %v2762_v34 = vadd.f32 %v5746_v52, %v2687_v29  ;;  %v2759_v1 = vadd.f32 %v5741_v26, %v2684_v9  ;;  %v2449_v8 = vpop.xlane.xlu0 %2448 }
 0x48a   : > { %v2613_v12 = vmul.f32 %v3809_v40, %v5629_v61  ;;  %v2614_v3 = vmul.f32 %v3809_v40, %v5632_v60  ;;  %vm2824_vm9 = vcmp.ge.f32.partialorder %v2760_v22, 0.0  ;;  %v2888_v43 = vmul.f32 0.01, %v2760_v22 }
 0x48b   : > { %v3811_v14 = vpop.eup %3810  ;;  %3231 = vmatmul.mubr.bf16.gmra.mrb[52].mxu0 %v3001_v45  ;;  %v2507_v59 = vmul.f32 0.00390625, %v2449_v8  ;;  %vm2826_vm10 = vcmp.ge.f32.partialorder %v2762_v34, 0.0  ;;  %v2890_v62 = vmul.f32 0.01, %v2762_v34  ;;  %v2761_v6 = vadd.f32 %v5741_v26, %v2686_v54  ;;  %v2452_v31 = vpop.xlane.xlu1 %2451 }
 0x48c   : > { %v2615_v7 = vmul.f32 %v3811_v14, %v5639_v41  ;;  %v2616_v47 = vmul.f32 %v3811_v14, %v5642_v57  ;;  %v2952_v16 = vsel %vm2824_vm9, %v2760_v22, %v2888_v43  ;;  %vm2823_vm11 = vcmp.ge.f32.partialorder %v2759_v1, 0.0 }
 0x48d   : > { %v2539_v61 = vadd.f32 1e-05, %v2507_v59  ;;  %v2508_v17 = vmul.f32 0.00390625, %v2452_v31  ;;  %v2954_v60 = vsel %vm2826_vm10, %v2762_v34, %v2890_v62  ;;  %vm2825_vm12 = vcmp.ge.f32.partialorder %v2761_v6, 0.0 }
 0x48e   : > { %v3004_v35 = vpack.c.bf16 %v2954_v60, %v2952_v16  ;;  %v2887_v24 = vmul.f32 0.01, %v2759_v1  ;;  %v2889_v46 = vmul.f32 0.01, %v2761_v6  ;;  %v2689_v33 = vmul.f32 %v5738_v51, %v2614_v3 }
 0x48f   : > { %3816 = vrsqrt.f32 %v2539_v61  ;;  %v2540_v15 = vadd.f32 1e-05, %v2508_v17  ;;  %v2691_v19 = vmul.f32 %v5738_v51, %v2616_v47  ;;  %v2688_v41 = vmul.f32 %v5735_v27, %v2613_v12 }
 0x490   : > { %3238 = vmatprep.mubr.bf16.mxu0 %v3004_v35  ;;  %v2951_v57 = vsel %vm2823_vm11, %v2759_v1, %v2887_v24  ;;  %v2953_v5 = vsel %vm2825_vm12, %v2761_v6, %v2889_v46  ;;  %v2764_v13 = vadd.f32 %v5746_v52, %v2689_v33  ;;  %v2690_v53 = vmul.f32 %v5735_v27, %v2615_v7 }
 0x491   : > { %v3813_v39 = vpop.eup %3812  ;;  %3818 = vrsqrt.f32 %v2540_v15  ;;  %v3003_v36 = vpack.c.bf16 %v2953_v5, %v2951_v57  ;;  %v2766_v32 = vadd.f32 %v5746_v52, %v2691_v19  ;;  %v2763_v48 = vadd.f32 %v5741_v26, %v2688_v41  ;;  %v2455_v11 = vpop.xlane.xlu0 %2454  ;;  %v6313_v5 = vld [vmem:[#allocation22_spill] sm:$0xff] }
 0x492   : > { %v2617_v29 = vmul.f32 %v3813_v39, %v5649_v28  ;;  %v2618_v9 = vmul.f32 %v3813_v39, %v5652_v63  ;;  %vm2828_vm13 = vcmp.ge.f32.partialorder %v2764_v13, 0.0  ;;  %v2892_v4 = vmul.f32 0.01, %v2764_v13 }
 0x493   : > { %v3815_v22 = vpop.eup %3814  ;;  %3239 = vmatmul.mubr.bf16.gmra.mrb[56].mxu0 %v3003_v36  ;;  %v2509_v54 = vmul.f32 0.00390625, %v2455_v11  ;;  %vm2830_vm14 = vcmp.ge.f32.partialorder %v2766_v32, 0.0  ;;  %v2894_v40 = vmul.f32 0.01, %v2766_v32  ;;  %v2765_v45 = vadd.f32 %v5741_v26, %v2690_v53 }
 0x494   : > { %v2619_v34 = vmul.f32 %v3815_v22, %v5659_v42  ;;  %v2620_v1 = vmul.f32 %v3815_v22, %v5662_v44  ;;  %v2458_v12 = vpop.xlane.xlu1 %2457  ;;  %v2956_v3 = vsel %vm2828_vm13, %v2764_v13, %v2892_v4  ;;  %vm2827_vm15 = vcmp.ge.f32.partialorder %v2763_v48, 0.0 }
 0x495   : > { %v2541_v28 = vadd.f32 1e-05, %v2509_v54  ;;  %v2510_v8 = vmul.f32 0.00390625, %v2458_v12  ;;  %v2958_v63 = vsel %vm2830_vm14, %v2766_v32, %v2894_v40  ;;  %vm2829_vm0 = vcmp.ge.f32.partialorder %v2765_v45, 0.0  ;;  %v6314_v12 = vld [vmem:[#allocation23_spill] sm:$0xff] }
 0x496   : > { %v3006_v43 = vpack.c.bf16 %v2958_v63, %v2956_v3  ;;  %v2891_v14 = vmul.f32 0.01, %v2763_v48  ;;  %v2893_v59 = vmul.f32 0.01, %v2765_v45  ;;  %v2693_v62 = vmul.f32 %v5738_v51, %v2618_v9 }
 0x497   : > { %3820 = vrsqrt.f32 %v2541_v28  ;;  %v2542_v6 = vadd.f32 1e-05, %v2510_v8  ;;  %v2695_v7 = vmul.f32 %v5738_v51, %v2620_v1  ;;  %v2692_v42 = vmul.f32 %v5735_v27, %v2617_v29  ;;  %v6315_v28 = vld [vmem:[#allocation24_spill] sm:$0xff] }
 0x498   : > { %3246 = vmatprep.mubr.bf16.mxu0 %v3006_v43  ;;  %v2955_v44 = vsel %vm2827_vm15, %v2763_v48, %v2891_v14  ;;  %v2957_v47 = vsel %vm2829_vm0, %v2765_v45, %v2893_v59  ;;  %v2768_v31 = vadd.f32 %v5746_v52, %v2693_v62  ;;  %v2694_v16 = vmul.f32 %v5735_v27, %v2619_v34  ;;  %v6316_v62 = vld [vmem:[#allocation25_spill] sm:$0xff] }
 0x499   : > { %v3817_v61 = vpop.eup %3816  ;;  %3822 = vrsqrt.f32 %v2542_v6  ;;  %v3005_v17 = vpack.c.bf16 %v2957_v47, %v2955_v44  ;;  %v2770_v60 = vadd.f32 %v5746_v52, %v2695_v7  ;;  %v2767_v35 = vadd.f32 %v5741_v26, %v2692_v42  ;;  %v6317_v7 = vld [vmem:[#allocation26_spill] sm:$0xff] }
 0x49a   : > { %v2621_v24 = vmul.f32 %v3817_v61, %v5669_v10  ;;  %v2622_v46 = vmul.f32 %v3817_v61, %v5672_v2  ;;  %vm2832_vm1 = vcmp.ge.f32.partialorder %v2768_v31, 0.0  ;;  %v2896_v33 = vmul.f32 0.01, %v2768_v31 }
 0x49b   : > { %v3819_v15 = vpop.eup %3818  ;;  %3247 = vmatmul.mubr.bf16.gmra.mrb[60].mxu0 %v3005_v17  ;;  %vm2834_vm2 = vcmp.ge.f32.partialorder %v2770_v60, 0.0  ;;  %v2898_v19 = vmul.f32 0.01, %v2770_v60  ;;  %v2769_v41 = vadd.f32 %v5741_v26, %v2694_v16  ;;  %vm2831_vm3 = vcmp.ge.f32.partialorder %v2767_v35, 0.0 }
 0x49c   : > { %v2623_v57 = vmul.f32 %v3819_v15, %v5679_v0  ;;  %v2624_v13 = vmul.f32 %v3819_v15, %v6313_v5  ;;  %v2960_v53 = vsel %vm2832_vm1, %v2768_v31, %v2896_v33  ;;  %v2895_v39 = vmul.f32 0.01, %v2767_v35 }
 0x49d   : > { %v2962_v36 = vsel %vm2834_vm2, %v2770_v60, %v2898_v19  ;;  %vm2833_vm4 = vcmp.ge.f32.partialorder %v2769_v41, 0.0  ;;  %v2897_v10 = vmul.f32 0.01, %v2769_v41  ;;  %v2697_v2 = vmul.f32 %v5738_v51, %v2622_v46 }
 0x49e   : > { %v3008_v32 = vpack.c.bf16 %v2962_v36, %v2960_v53  ;;  %v2699_v48 = vmul.f32 %v5738_v51, %v2624_v13  ;;  %v2696_v29 = vmul.f32 %v5735_v27, %v2621_v24  ;;  %v2959_v9 = vsel %vm2831_vm3, %v2767_v35, %v2895_v39 }
 0x49f   : > { %v2961_v11 = vsel %vm2833_vm4, %v2769_v41, %v2897_v10  ;;  %v2772_v4 = vadd.f32 %v5746_v52, %v2697_v2  ;;  %v2698_v0 = vmul.f32 %v5735_v27, %v2623_v57 }
 0x4a0   : > { %3254 = vmatprep.mubr.bf16.mxu0 %v3008_v32  ;;  %v3007_v22 = vpack.c.bf16 %v2961_v11, %v2959_v9  ;;  %v2774_v54 = vadd.f32 %v5746_v52, %v2699_v48  ;;  %v2771_v40 = vadd.f32 %v5741_v26, %v2696_v29 }
 0x4a1   : > { %v3821_v45 = vpop.eup %3820  ;;  %vm2836_vm5 = vcmp.ge.f32.partialorder %v2772_v4, 0.0  ;;  %v2900_v34 = vmul.f32 0.01, %v2772_v4  ;;  %v2773_v1 = vadd.f32 %v5741_v26, %v2698_v0 }
 0x4a2   : > { %v2625_v3 = vmul.f32 %v3821_v45, %v6314_v12  ;;  %v2626_v8 = vmul.f32 %v3821_v45, %v6315_v28  ;;  %vm2838_vm6 = vcmp.ge.f32.partialorder %v2774_v54, 0.0  ;;  %v2902_v63 = vmul.f32 0.01, %v2774_v54 }
 0x4a3   : > { %v3823_v43 = vpop.eup %3822  ;;  %3255 = vmatmul.mubr.bf16.gmra.mrb[64].mxu0 %v3007_v22  ;;  %v2964_v14 = vsel %vm2836_vm5, %v2772_v4, %v2900_v34  ;;  %vm2835_vm7 = vcmp.ge.f32.partialorder %v2771_v40, 0.0  ;;  %vm2837_vm8 = vcmp.ge.f32.partialorder %v2773_v1, 0.0  ;;  %v2899_v59 = vmul.f32 0.01, %v2771_v40  ;;  %v6319_v34 = vld [vmem:[#allocation17_spill] sm:$0xff] }
 0x4a4   : > { %v2627_v6 = vmul.f32 %v3823_v43, %v6316_v62  ;;  %v2628_v42 = vmul.f32 %v3823_v43, %v6317_v7  ;;  %v2966_v44 = vsel %vm2838_vm6, %v2774_v54, %v2902_v63  ;;  %v2901_v47 = vmul.f32 0.01, %v2773_v1  ;;  %v6321_v43 = vld [vmem:[#allocation2_spill] sm:$0xff] }
 0x4a5   : > { %v3010_v31 = vpack.c.bf16 %v2966_v44, %v2964_v14  ;;  %v2701_v16 = vmul.f32 %v5738_v51, %v2626_v8  ;;  %v2700_v61 = vmul.f32 %v5735_v27, %v2625_v3  ;;  %v2963_v17 = vsel %vm2835_vm7, %v2771_v40, %v2899_v59  ;;  %v6318_v40 = vld [vmem:[#allocation16_spill] sm:$0xff]  ;;  %v6320_v8 = vld [vmem:[#allocation27_spill] sm:$0xff] }
 0x4a6   : > { %v2965_v60 = vsel %vm2837_vm8, %v2773_v1, %v2901_v47  ;;  %v2703_v35 = vmul.f32 %v5738_v51, %v2628_v42  ;;  %v2702_v24 = vmul.f32 %v5735_v27, %v2627_v6 }
 0x4a7   : > { %3262 = vmatprep.mubr.bf16.mxu0 %v3010_v31  ;;  %v3009_v46 = vpack.c.bf16 %v2965_v60, %v2963_v17  ;;  %v2776_v33 = vadd.f32 %v5746_v52, %v2701_v16  ;;  %v2775_v15 = vadd.f32 %v5741_v26, %v2700_v61 }
 0x4a8   : > { %v2778_v19 = vadd.f32 %v5746_v52, %v2703_v35  ;;  %v2777_v41 = vadd.f32 %v5741_v26, %v2702_v24 }
 0x4a9   : > { %vm2840_vm9 = vcmp.ge.f32.partialorder %v2776_v33, 0.0  ;;  %v2904_v57 = vmul.f32 0.01, %v2776_v33  ;;  %v2903_v5 = vmul.f32 0.01, %v2775_v15  ;;  %vm2839_vm12 = vcmp.ge.f32.partialorder %v2775_v15, 0.0 }
 0x4aa   : > { %vm2842_vm10 = vcmp.ge.f32.partialorder %v2778_v19, 0.0  ;;  %v2906_v13 = vmul.f32 0.01, %v2778_v19  ;;  %vm2841_vm11 = vcmp.ge.f32.partialorder %v2777_v41, 0.0  ;;  %v2905_v53 = vmul.f32 0.01, %v2777_v41 }
 0x4ab   : > { %3263 = vmatmul.mubr.bf16.gmra.mrb[68].mxu0 %v3009_v46  ;;  %v2968_v39 = vsel %vm2840_vm9, %v2776_v33, %v2904_v57  ;;  %v2967_v32 = vsel %vm2839_vm12, %v2775_v15, %v2903_v5 }
 0x4ac   : > { %v2970_v36 = vsel %vm2842_vm10, %v2778_v19, %v2906_v13  ;;  %v2969_v10 = vsel %vm2841_vm11, %v2777_v41, %v2905_v53 }
 0x4ad   : > { %v3012_v2 = vpack.c.bf16 %v2970_v36, %v2968_v39  ;;  %v3011_v48 = vpack.c.bf16 %v2969_v10, %v2967_v32 }
 0x4af   : > { %3270 = vmatprep.mubr.bf16.mxu0 %v3012_v2 }
 0x4b3   : > { %3271 = vmatmul.mubr.bf16.gmra.mrb[72].mxu0 %v3011_v48 }
 0x4ce   : > { %v2461_v29 = vpop.xlane.xlu0 %2460 }
 0x4cf   : > { %v2511_v9 = vmul.f32 0.00390625, %v2461_v29  ;;  %v6322_v29 = vld [vmem:[#allocation3_spill] sm:$0xff] }
 0x4d1   : > { %v2464_v11 = vpop.xlane.xlu1 %2463  ;;  %v2543_v4 = vadd.f32 1e-05, %v2511_v9 }
 0x4d2   : > { %v2512_v0 = vmul.f32 0.00390625, %v2464_v11  ;;  %v6323_v11 = vld [vmem:[#allocation18_spill] sm:$0xff] }
 0x4d3   : > { %3824 = vrsqrt.f32 %v2543_v4 }
 0x4d4   : > { %v2544_v22 = vadd.f32 1e-05, %v2512_v0 }
 0x4d6   : > { %3826 = vrsqrt.f32 %v2544_v22  ;;  %v6324_v22 = vld [vmem:[#allocation19_spill] sm:$0xff] }
 0x4dd   : > { %v3825_v54 = vpop.eup %3824 }
 0x4de   : > { %v2629_v45 = vmul.f32 %v3825_v54, %v6318_v40  ;;  %v2630_v1 = vmul.f32 %v3825_v54, %v6319_v34  ;;  %v2467_v12 = vpop.xlane.xlu0 %2466 }
 0x4df   : > { %v2513_v28 = vmul.f32 0.00390625, %v2467_v12 }
 0x4e0   : > { %v3827_v3 = vpop.eup %3826  ;;  %v2705_v62 = vmul.f32 %v5738_v51, %v2630_v1  ;;  %v2704_v6 = vmul.f32 %v5735_v27, %v2629_v45 }
 0x4e1   : > { %v2631_v63 = vmul.f32 %v3827_v3, %v6320_v8  ;;  %v2632_v14 = vmul.f32 %v3827_v3, %v6321_v43  ;;  %v2470_v59 = vpop.xlane.xlu1 %2469  ;;  %v2545_v7 = vadd.f32 1e-05, %v2513_v28 }
 0x4e2   : > { %v2514_v42 = vmul.f32 0.00390625, %v2470_v59  ;;  %v2780_v47 = vadd.f32 %v5746_v52, %v2705_v62  ;;  %v2779_v16 = vadd.f32 %v5741_v26, %v2704_v6 }
 0x4e3   : > { %v2707_v44 = vmul.f32 %v5738_v51, %v2632_v14  ;;  %v2706_v31 = vmul.f32 %v5735_v27, %v2631_v63  ;;  %3828 = vrsqrt.f32 %v2545_v7 }
 0x4e4   : > { %v2546_v61 = vadd.f32 1e-05, %v2514_v42  ;;  %v2908_v60 = vmul.f32 0.01, %v2780_v47  ;;  %vm2844_vm13 = vcmp.ge.f32.partialorder %v2780_v47, 0.0  ;;  %vm2843_vm15 = vcmp.ge.f32.partialorder %v2779_v16, 0.0 }
 0x4e5   : > { %v2782_v17 = vadd.f32 %v5746_v52, %v2707_v44  ;;  %v2781_v35 = vadd.f32 %v5741_v26, %v2706_v31  ;;  %v2907_v24 = vmul.f32 0.01, %v2779_v16 }
 0x4e6   : > { %3830 = vrsqrt.f32 %v2546_v61  ;;  %v2972_v19 = vsel %vm2844_vm13, %v2780_v47, %v2908_v60 }
 0x4e7   : > { %vm2846_vm14 = vcmp.ge.f32.partialorder %v2782_v17, 0.0  ;;  %v2910_v46 = vmul.f32 0.01, %v2782_v17  ;;  %vm2845_vm0 = vcmp.ge.f32.partialorder %v2781_v35, 0.0  ;;  %v2909_v33 = vmul.f32 0.01, %v2781_v35 }
 0x4e8   : > { %v2473_v15 = vpop.xlane.xlu0 %2472  ;;  %v2971_v13 = vsel %vm2843_vm15, %v2779_v16, %v2907_v24 }
 0x4e9   : > { %v2974_v41 = vsel %vm2846_vm14, %v2782_v17, %v2910_v46  ;;  %v2515_v57 = vmul.f32 0.00390625, %v2473_v15  ;;  %v2973_v53 = vsel %vm2845_vm0, %v2781_v35, %v2909_v33 }
 0x4ea   : > { %v3014_v5 = vpack.c.bf16 %v2974_v41, %v2972_v19  ;;  %v2476_v39 = vpop.xlane.xlu1 %2475  ;;  %v3013_v36 = vpack.c.bf16 %v2973_v53, %v2971_v13 }
 0x4eb   : > { %v2547_v10 = vadd.f32 1e-05, %v2515_v57  ;;  %v2516_v2 = vmul.f32 0.00390625, %v2476_v39 }
 0x4ec   : > { %3278 = vmatprep.mubr.bf16.mxu0 %v3014_v5 }
 0x4ed   : > { %3279 = vmatmul.mubr.bf16.gmra.mrb[76].mxu0 %v3013_v36  ;;  %v3829_v32 = vpop.eup %3828  ;;  %3832 = vrsqrt.f32 %v2547_v10  ;;  %v2548_v48 = vadd.f32 1e-05, %v2516_v2 }
 0x4ee   : > { %v2633_v9 = vmul.f32 %v3829_v32, %v6322_v29  ;;  %v2634_v4 = vmul.f32 %v3829_v32, %v6323_v11 }
 0x4ef   : > { %3834 = vrsqrt.f32 %v2548_v48 }
 0x4f0   : > { %v3831_v0 = vpop.eup %3830  ;;  %v2479_v45 = vpop.xlane.xlu0 %2478  ;;  %v2709_v34 = vmul.f32 %v5738_v51, %v2634_v4  ;;  %v2708_v1 = vmul.f32 %v5735_v27, %v2633_v9 }
 0x4f1   : > { %v2635_v54 = vmul.f32 %v3831_v0, %v6324_v22  ;;  %v2636_v40 = vmul.f32 %v3831_v0, %v5772_v55  ;;  %v2517_v12 = vmul.f32 0.00390625, %v2479_v45 }
 0x4f2   : > { %v2482_v3 = vpop.xlane.xlu1 %2481  ;;  %v2784_v8 = vadd.f32 %v5746_v52, %v2709_v34  ;;  %v2783_v43 = vadd.f32 %v5741_v26, %v2708_v1 }
 0x4f3   : > { %v2711_v28 = vmul.f32 %v5738_v51, %v2636_v40  ;;  %v2710_v63 = vmul.f32 %v5735_v27, %v2635_v54  ;;  %v2549_v14 = vadd.f32 1e-05, %v2517_v12  ;;  %v2518_v59 = vmul.f32 0.00390625, %v2482_v3 }
 0x4f4   : > { %v2912_v55 = vmul.f32 0.01, %v2784_v8  ;;  %vm2848_vm1 = vcmp.ge.f32.partialorder %v2784_v8, 0.0  ;;  %v2911_v42 = vmul.f32 0.01, %v2783_v43  ;;  %vm2847_vm3 = vcmp.ge.f32.partialorder %v2783_v43, 0.0 }
 0x4f5   : > { %v2786_v62 = vadd.f32 %v5746_v52, %v2711_v28  ;;  %v2785_v6 = vadd.f32 %v5741_v26, %v2710_v63  ;;  %3836 = vrsqrt.f32 %v2549_v14  ;;  %v2550_v7 = vadd.f32 1e-05, %v2518_v59 }
 0x4f6   : > { %v2976_v17 = vsel %vm2848_vm1, %v2784_v8, %v2912_v55  ;;  %v2975_v46 = vsel %vm2847_vm3, %v2783_v43, %v2911_v42 }
 0x4f7   : > { %vm2850_vm2 = vcmp.ge.f32.partialorder %v2786_v62, 0.0  ;;  %v2914_v44 = vmul.f32 0.01, %v2786_v62  ;;  %vm2849_vm4 = vcmp.ge.f32.partialorder %v2785_v6, 0.0  ;;  %v3833_v47 = vpop.eup %3832  ;;  %3838 = vrsqrt.f32 %v2550_v7 }
 0x4f8   : > { %v2913_v31 = vmul.f32 0.01, %v2785_v6  ;;  %v2637_v16 = vmul.f32 %v3833_v47, %v5782_v23  ;;  %v2638_v61 = vmul.f32 %v3833_v47, %v5785_v38 }
 0x4f9   : > { %v2978_v60 = vsel %vm2850_vm2, %v2786_v62, %v2914_v44  ;;  %v3835_v35 = vpop.eup %3834 }
 0x4fa   : > { %v3016_v24 = vpack.c.bf16 %v2978_v60, %v2976_v17  ;;  %v2977_v33 = vsel %vm2849_vm4, %v2785_v6, %v2913_v31  ;;  %v2639_v15 = vmul.f32 %v3835_v35, %v5796_v20  ;;  %v2640_v19 = vmul.f32 %v3835_v35, %v5799_v58 }
 0x4fb   : > { %v3015_v41 = vpack.c.bf16 %v2977_v33, %v2975_v46  ;;  %v2713_v57 = vmul.f32 %v5738_v51, %v2638_v61  ;;  %v2485_v5 = vpop.xlane.xlu0 %2484  ;;  %v2712_v13 = vmul.f32 %v5735_v27, %v2637_v16 }
 0x4fc   : > { %3286 = vmatprep.mubr.bf16.mxu0 %v3016_v24  ;;  %v2519_v23 = vmul.f32 0.00390625, %v2485_v5  ;;  %v2715_v38 = vmul.f32 %v5738_v51, %v2640_v19  ;;  %v2714_v39 = vmul.f32 %v5735_v27, %v2639_v15 }
 0x4fd   : > { %3287 = vmatmul.mubr.bf16.gmra.mrb[80].mxu0 %v3015_v41  ;;  %v2788_v53 = vadd.f32 %v5746_v52, %v2713_v57  ;;  %v2488_v36 = vpop.xlane.xlu1 %2487  ;;  %v2787_v20 = vadd.f32 %v5741_v26, %v2712_v13 }
 0x4fe   : > { %v2551_v10 = vadd.f32 1e-05, %v2519_v23  ;;  %v2520_v58 = vmul.f32 0.00390625, %v2488_v36  ;;  %v2790_v2 = vadd.f32 %v5746_v52, %v2715_v38  ;;  %v2789_v29 = vadd.f32 %v5741_v26, %v2714_v39 }
 0x4ff   : > { %vm2852_vm5 = vcmp.ge.f32.partialorder %v2788_v53, 0.0  ;;  %v3837_v32 = vpop.eup %3836  ;;  %v2916_v48 = vmul.f32 0.01, %v2788_v53  ;;  %vm2851_vm6 = vcmp.ge.f32.partialorder %v2787_v20, 0.0  ;;  %v2915_v9 = vmul.f32 0.01, %v2787_v20 }
 0x500   : > { %v2641_v11 = vmul.f32 %v3837_v32, %v5811_v21  ;;  %v2642_v4 = vmul.f32 %v3837_v32, %v5814_v30  ;;  %3840 = vrsqrt.f32 %v2551_v10  ;;  %v2552_v0 = vadd.f32 1e-05, %v2520_v58 }
 0x501   : > { %v3839_v22 = vpop.eup %3838  ;;  %vm2854_vm7 = vcmp.ge.f32.partialorder %v2790_v2, 0.0  ;;  %v2918_v54 = vmul.f32 0.01, %v2790_v2  ;;  %v2980_v40 = vsel %vm2852_vm5, %v2788_v53, %v2916_v48  ;;  %vm2853_vm8 = vcmp.ge.f32.partialorder %v2789_v29, 0.0 }
 0x502   : > { %v2643_v45 = vmul.f32 %v3839_v22, %v5824_v25  ;;  %v2644_v34 = vmul.f32 %v3839_v22, %v5827_v49  ;;  %3842 = vrsqrt.f32 %v2552_v0  ;;  %v2917_v1 = vmul.f32 0.01, %v2789_v29 }
 0x503   : > { %v2982_v12 = vsel %vm2854_vm7, %v2790_v2, %v2918_v54  ;;  %v2979_v3 = vsel %vm2851_vm6, %v2787_v20, %v2915_v9  ;;  %v2717_v21 = vmul.f32 %v5738_v51, %v2642_v4  ;;  %v2716_v30 = vmul.f32 %v5735_v27, %v2641_v11 }
 0x504   : > { %v3018_v28 = vpack.c.bf16 %v2982_v12, %v2980_v40  ;;  %v2981_v8 = vsel %vm2853_vm8, %v2789_v29, %v2917_v1  ;;  %v2719_v63 = vmul.f32 %v5738_v51, %v2644_v34  ;;  %v2718_v43 = vmul.f32 %v5735_v27, %v2643_v45 }
 0x505   : > { %v3017_v14 = vpack.c.bf16 %v2981_v8, %v2979_v3  ;;  %v2792_v25 = vadd.f32 %v5746_v52, %v2717_v21  ;;  %v2791_v49 = vadd.f32 %v5741_v26, %v2716_v30 }
 0x506   : > { %3294 = vmatprep.mubr.bf16.mxu0 %v3018_v28  ;;  %v2794_v59 = vadd.f32 %v5746_v52, %v2719_v63  ;;  %v2793_v62 = vadd.f32 %v5741_v26, %v2718_v43 }
 0x507   : > { %3295 = vmatmul.mubr.bf16.gmra.mrb[84].mxu0 %v3017_v14  ;;  %vm2856_vm9 = vcmp.ge.f32.partialorder %v2792_v25, 0.0  ;;  %v2920_v55 = vmul.f32 0.01, %v2792_v25  ;;  %vm2855_vm10 = vcmp.ge.f32.partialorder %v2791_v49, 0.0  ;;  %v2919_v6 = vmul.f32 0.01, %v2791_v49 }
 0x508   : > { %vm2858_vm11 = vcmp.ge.f32.partialorder %v2794_v59, 0.0  ;;  %v2922_v7 = vmul.f32 0.01, %v2794_v59  ;;  %vm2857_vm12 = vcmp.ge.f32.partialorder %v2793_v62, 0.0  ;;  %v2921_v42 = vmul.f32 0.01, %v2793_v62 }
 0x509   : > { %v2984_v47 = vsel %vm2856_vm9, %v2792_v25, %v2920_v55  ;;  %v2983_v16 = vsel %vm2855_vm10, %v2791_v49, %v2919_v6 }
 0x50a   : > { %v3841_v44 = vpop.eup %3840  ;;  %v2986_v31 = vsel %vm2858_vm11, %v2794_v59, %v2922_v7  ;;  %v2985_v61 = vsel %vm2857_vm12, %v2793_v62, %v2921_v42 }
 0x50b   : > { %v2645_v17 = vmul.f32 %v3841_v44, %v5845_v37  ;;  %v2646_v60 = vmul.f32 %v3841_v44, %v5850_v18  ;;  %v3020_v35 = vpack.c.bf16 %v2986_v31, %v2984_v47  ;;  %v3019_v24 = vpack.c.bf16 %v2985_v61, %v2983_v16 }
 0x50c   : > { %v3843_v46 = vpop.eup %3842 }
 0x50d   : > { %v2647_v33 = vmul.f32 %v3843_v46, %v5858_v56  ;;  %v2648_v15 = vmul.f32 %v3843_v46, %v5861_v50  ;;  %3302 = vmatprep.mubr.bf16.mxu0 %v3020_v35  ;;  %v2721_v19 = vmul.f32 %v5738_v51, %v2646_v60  ;;  %v2720_v41 = vmul.f32 %v5735_v27, %v2645_v17 }
 0x50f   : > { %3303 = vmatmul.mubr.bf16.gmra.mrb[88].mxu0 %v3019_v24  ;;  %v2723_v57 = vmul.f32 %v5738_v51, %v2648_v15  ;;  %v2796_v5 = vadd.f32 %v5746_v52, %v2721_v19  ;;  %v2722_v37 = vmul.f32 %v5735_v27, %v2647_v33  ;;  %v2795_v18 = vadd.f32 %v5741_v26, %v2720_v41 }
 0x511   : > { %v2798_v13 = vadd.f32 %v5746_v52, %v2723_v57  ;;  %v2924_v23 = vmul.f32 0.01, %v2796_v5  ;;  %v2797_v56 = vadd.f32 %v5741_v26, %v2722_v37  ;;  %vm2860_vm13 = vcmp.ge.f32.partialorder %v2796_v5, 0.0  ;;  %v6025_v26 = vld [vmem:[%s6113_s12] ss:$0 sm:$0xff] }
 0x512   : > { %v2923_v50 = vmul.f32 0.01, %v2795_v18  ;;  %vm2859_vm15 = vcmp.ge.f32.partialorder %v2795_v18, 0.0 }
 0x513   : > { %vm2862_vm14 = vcmp.ge.f32.partialorder %v2798_v13, 0.0  ;;  %v2926_v38 = vmul.f32 0.01, %v2798_v13  ;;  %vm2861_vm0 = vcmp.ge.f32.partialorder %v2797_v56, 0.0  ;;  %v2925_v53 = vmul.f32 0.01, %v2797_v56 }
 0x514   : > { %v2988_v39 = vsel %vm2860_vm13, %v2796_v5, %v2924_v23  ;;  %v2987_v20 = vsel %vm2859_vm15, %v2795_v18, %v2923_v50 }
 0x515   : > { %v2990_v51 = vsel %vm2862_vm14, %v2798_v13, %v2926_v38  ;;  %v2989_v27 = vsel %vm2861_vm0, %v2797_v56, %v2925_v53 }
 0x516   : > { %v3022_v36 = vpack.c.bf16 %v2990_v51, %v2988_v39  ;;  %v3021_v10 = vpack.c.bf16 %v2989_v27, %v2987_v20 }
 0x518   : > { %3310 = vmatprep.mubr.bf16.mxu0 %v3022_v36 }
 0x519   : > { %3311 = vmatmul.mubr.bf16.gmra.mrb[92].mxu0 %v3021_v10 }
 0x526   : > { %v3537_v52 = vpop.f32.mrb[32].mxu0 }
 0x527   : > { %v3538_v58 = vpop.f32.mrb[33].mxu0 }
 0x528   : > { %v3539_v2 = vadd.f32 %v3538_v58, %v3537_v52  ;;  %v3540_v32 = vpop.f32.mrb[34].mxu0 }
 0x529   : > { %v3541_v48 = vpop.f32.mrb[35].mxu0 }
 0x52a   : > { %v3193_v29 = vadd.f32 %v3539_v2, %v6025_v26  ;;  %v3542_v9 = vadd.f32 %v3541_v48, %v3540_v32 }
 0x52c   : > { %3844 = vtanh.f32 %v3193_v29  ;;  %v3196_v11 = vadd.f32 %v3542_v9, %v6025_v26 }
 0x52e   : > { %3846 = vtanh.f32 %v3196_v11 }
 0x536   : > { %v3845_v4 = vpop.eup %3844 }
 0x537   : > { %3351 = vst [vmem:[%s6034_s28] sm:$0xff] %v3845_v4 }
 0x538   : > { %v3847_v0 = vpop.eup %3846 }
 0x539   : > { %3352 = vst [vmem:[%s6034_s28 + $0x8] sm:$0xff] %v3847_v0 }
 0x53a   : > { %v3543_v22 = vpop.f32.mrb[36].mxu0 }
 0x53b   : > { %v3544_v54 = vpop.f32.mrb[37].mxu0 }
 0x53c   : > { %v3545_v40 = vadd.f32 %v3544_v54, %v3543_v22  ;;  %v3546_v45 = vpop.f32.mrb[38].mxu0 }
 0x53d   : > { %v3547_v34 = vpop.f32.mrb[39].mxu0 }
 0x53e   : > { %v3201_v1 = vadd.f32 %v3545_v40, %v6025_v26  ;;  %v3548_v12 = vadd.f32 %v3547_v34, %v3546_v45 }
 0x540   : > { %3848 = vtanh.f32 %v3201_v1  ;;  %v3204_v3 = vadd.f32 %v3548_v12, %v6025_v26 }
 0x542   : > { %3850 = vtanh.f32 %v3204_v3 }
 0x546   : > { %v3549_v21 = vpop.f32.mrb[40].mxu0 }
 0x547   : > { %v3550_v30 = vpop.f32.mrb[41].mxu0 }
 0x548   : > { %v3551_v28 = vadd.f32 %v3550_v30, %v3549_v21  ;;  %v3552_v8 = vpop.f32.mrb[42].mxu0 }
 0x549   : > { %v3553_v63 = vpop.f32.mrb[43].mxu0 }
 0x54a   : > { %v3849_v43 = vpop.eup %3848  ;;  %v3209_v14 = vadd.f32 %v3551_v28, %v6025_v26  ;;  %v3554_v25 = vadd.f32 %v3553_v63, %v3552_v8 }
 0x54b   : > { %3353 = vst [vmem:[%s6034_s28 + $0x10] sm:$0xff] %v3849_v43 }
 0x54c   : > { %v3851_v49 = vpop.eup %3850  ;;  %3852 = vtanh.f32 %v3209_v14  ;;  %v3212_v59 = vadd.f32 %v3554_v25, %v6025_v26 }
 0x54d   : > { %3354 = vst [vmem:[%s6034_s28 + $0x18] sm:$0xff] %v3851_v49 }
 0x54e   : > { %3854 = vtanh.f32 %v3212_v59  ;;  %v3555_v62 = vpop.f32.mrb[44].mxu0 }
 0x54f   : > { %v3556_v55 = vpop.f32.mrb[45].mxu0 }
 0x550   : > { %v3557_v6 = vadd.f32 %v3556_v55, %v3555_v62  ;;  %v3558_v7 = vpop.f32.mrb[46].mxu0 }
 0x551   : > { %v3559_v42 = vpop.f32.mrb[47].mxu0 }
 0x552   : > { %v3217_v44 = vadd.f32 %v3557_v6, %v6025_v26  ;;  %v3560_v47 = vadd.f32 %v3559_v42, %v3558_v7 }
 0x554   : > { %3856 = vtanh.f32 %v3217_v44  ;;  %v3220_v31 = vadd.f32 %v3560_v47, %v6025_v26 }
 0x556   : > { %v3853_v16 = vpop.eup %3852  ;;  %3858 = vtanh.f32 %v3220_v31  ;;  %v3561_v61 = vpop.f32.mrb[48].mxu0 }
 0x557   : > { %3355 = vst [vmem:[%s6034_s28 + $0x20] sm:$0xff] %v3853_v16  ;;  %v3562_v17 = vpop.f32.mrb[49].mxu0 }
 0x558   : > { %v3855_v60 = vpop.eup %3854  ;;  %v3563_v35 = vadd.f32 %v3562_v17, %v3561_v61  ;;  %v3564_v24 = vpop.f32.mrb[50].mxu0 }
 0x559   : > { %3356 = vst [vmem:[%s6034_s28 + $0x28] sm:$0xff] %v3855_v60  ;;  %v3565_v46 = vpop.f32.mrb[51].mxu0 }
 0x55a   : > { %v3225_v33 = vadd.f32 %v3563_v35, %v6025_v26  ;;  %v3566_v15 = vadd.f32 %v3565_v46, %v3564_v24 }
 0x55c   : > { %3860 = vtanh.f32 %v3225_v33  ;;  %v3228_v19 = vadd.f32 %v3566_v15, %v6025_v26 }
 0x55e   : > { %v3857_v41 = vpop.eup %3856  ;;  %3862 = vtanh.f32 %v3228_v19  ;;  %v3567_v57 = vpop.f32.mrb[52].mxu0 }
 0x55f   : > { %3357 = vst [vmem:[%s6034_s28 + $0x30] sm:$0xff] %v3857_v41  ;;  %v3568_v5 = vpop.f32.mrb[53].mxu0 }
 0x560   : > { %v3859_v37 = vpop.eup %3858  ;;  %v3569_v18 = vadd.f32 %v3568_v5, %v3567_v57  ;;  %v3570_v13 = vpop.f32.mrb[54].mxu0 }
 0x561   : > { %3358 = vst [vmem:[%s6034_s28 + $0x38] sm:$0xff] %v3859_v37  ;;  %v3571_v23 = vpop.f32.mrb[55].mxu0 }
 0x562   : > { %v3233_v56 = vadd.f32 %v3569_v18, %v6025_v26  ;;  %v3572_v50 = vadd.f32 %v3571_v23, %v3570_v13 }
 0x564   : > { %3864 = vtanh.f32 %v3233_v56  ;;  %v3236_v38 = vadd.f32 %v3572_v50, %v6025_v26 }
 0x566   : > { %v3861_v53 = vpop.eup %3860  ;;  %3866 = vtanh.f32 %v3236_v38  ;;  %v3573_v39 = vpop.f32.mrb[56].mxu0 }
 0x567   : > { %3359 = vst [vmem:[%s6034_s28 + $0x40] sm:$0xff] %v3861_v53  ;;  %v3574_v51 = vpop.f32.mrb[57].mxu0 }
 0x568   : > { %v3863_v36 = vpop.eup %3862  ;;  %v3575_v20 = vadd.f32 %v3574_v51, %v3573_v39  ;;  %v3576_v27 = vpop.f32.mrb[58].mxu0 }
 0x569   : > { %3360 = vst [vmem:[%s6034_s28 + $0x48] sm:$0xff] %v3863_v36  ;;  %v3577_v10 = vpop.f32.mrb[59].mxu0 }
 0x56a   : > { %v3241_v52 = vadd.f32 %v3575_v20, %v6025_v26  ;;  %v3578_v58 = vadd.f32 %v3577_v10, %v3576_v27 }
 0x56c   : > { %3868 = vtanh.f32 %v3241_v52  ;;  %v3244_v2 = vadd.f32 %v3578_v58, %v6025_v26 }
 0x56e   : > { %v3865_v32 = vpop.eup %3864  ;;  %3870 = vtanh.f32 %v3244_v2  ;;  %v3579_v48 = vpop.f32.mrb[60].mxu0 }
 0x56f   : > { %3361 = vst [vmem:[%s6034_s28 + $0x50] sm:$0xff] %v3865_v32  ;;  %v3580_v29 = vpop.f32.mrb[61].mxu0 }
 0x570   : > { %v3867_v9 = vpop.eup %3866  ;;  %v3581_v11 = vadd.f32 %v3580_v29, %v3579_v48  ;;  %v3582_v4 = vpop.f32.mrb[62].mxu0 }
 0x571   : > { %3362 = vst [vmem:[%s6034_s28 + $0x58] sm:$0xff] %v3867_v9  ;;  %v3583_v0 = vpop.f32.mrb[63].mxu0 }
 0x572   : > { %v3249_v22 = vadd.f32 %v3581_v11, %v6025_v26  ;;  %v3584_v54 = vadd.f32 %v3583_v0, %v3582_v4 }
 0x574   : > { %3872 = vtanh.f32 %v3249_v22  ;;  %v3252_v40 = vadd.f32 %v3584_v54, %v6025_v26 }
 0x576   : > { %v3869_v45 = vpop.eup %3868  ;;  %3874 = vtanh.f32 %v3252_v40  ;;  %v3585_v34 = vpop.f32.mrb[64].mxu0 }
 0x577   : > { %3363 = vst [vmem:[%s6034_s28 + $0x60] sm:$0xff] %v3869_v45  ;;  %v3586_v1 = vpop.f32.mrb[65].mxu0 }
 0x578   : > { %v3871_v12 = vpop.eup %3870  ;;  %v3587_v3 = vadd.f32 %v3586_v1, %v3585_v34  ;;  %v3588_v21 = vpop.f32.mrb[66].mxu0 }
 0x579   : > { %3364 = vst [vmem:[%s6034_s28 + $0x68] sm:$0xff] %v3871_v12  ;;  %v3589_v30 = vpop.f32.mrb[67].mxu0 }
 0x57a   : > { %v3257_v28 = vadd.f32 %v3587_v3, %v6025_v26  ;;  %v3590_v8 = vadd.f32 %v3589_v30, %v3588_v21 }
 0x57c   : > { %3876 = vtanh.f32 %v3257_v28  ;;  %v3260_v63 = vadd.f32 %v3590_v8, %v6025_v26 }
 0x57e   : > { %v3873_v43 = vpop.eup %3872  ;;  %3878 = vtanh.f32 %v3260_v63  ;;  %v3591_v14 = vpop.f32.mrb[68].mxu0 }
 0x57f   : > { %3365 = vst [vmem:[%s6034_s28 + $0x70] sm:$0xff] %v3873_v43  ;;  %v3592_v25 = vpop.f32.mrb[69].mxu0 }
 0x580   : > { %v3875_v49 = vpop.eup %3874  ;;  %v3593_v59 = vadd.f32 %v3592_v25, %v3591_v14  ;;  %v3594_v62 = vpop.f32.mrb[70].mxu0 }
 0x581   : > { %3366 = vst [vmem:[%s6034_s28 + $0x78] sm:$0xff] %v3875_v49  ;;  %v3595_v55 = vpop.f32.mrb[71].mxu0 }
 0x582   : > { %v3265_v6 = vadd.f32 %v3593_v59, %v6025_v26  ;;  %v3596_v7 = vadd.f32 %v3595_v55, %v3594_v62 }
 0x584   : > { %3880 = vtanh.f32 %v3265_v6  ;;  %v3268_v42 = vadd.f32 %v3596_v7, %v6025_v26 }
 0x586   : > { %v3877_v44 = vpop.eup %3876  ;;  %3882 = vtanh.f32 %v3268_v42  ;;  %v3597_v47 = vpop.f32.mrb[72].mxu0 }
 0x587   : > { %3367 = vst [vmem:[%s6034_s28 + $0x80] sm:$0xff] %v3877_v44  ;;  %v3598_v31 = vpop.f32.mrb[73].mxu0 }
 0x588   : > { %v3879_v16 = vpop.eup %3878  ;;  %v3599_v61 = vadd.f32 %v3598_v31, %v3597_v47  ;;  %v3600_v17 = vpop.f32.mrb[74].mxu0 }
 0x589   : > { %3368 = vst [vmem:[%s6034_s28 + $0x88] sm:$0xff] %v3879_v16  ;;  %v3601_v60 = vpop.f32.mrb[75].mxu0 }
 0x58a   : > { %v3273_v35 = vadd.f32 %v3599_v61, %v6025_v26  ;;  %v3602_v24 = vadd.f32 %v3601_v60, %v3600_v17 }
 0x58c   : > { %3884 = vtanh.f32 %v3273_v35  ;;  %v3276_v46 = vadd.f32 %v3602_v24, %v6025_v26 }
 0x58e   : > { %v3881_v33 = vpop.eup %3880  ;;  %3886 = vtanh.f32 %v3276_v46 }
 0x58f   : > { %3369 = vst [vmem:[%s6034_s28 + $0x90] sm:$0xff] %v3881_v33 }
 0x590   : > { %v3883_v15 = vpop.eup %3882 }
 0x591   : > { %3370 = vst [vmem:[%s6034_s28 + $0x98] sm:$0xff] %v3883_v15 }
 0x596   : > { %v3885_v19 = vpop.eup %3884 }
 0x597   : > { %3371 = vst [vmem:[%s6034_s28 + $0xa0] sm:$0xff] %v3885_v19 }
 0x598   : > { %v3887_v41 = vpop.eup %3886 }
 0x599   : > { %3372 = vst [vmem:[%s6034_s28 + $0xa8] sm:$0xff] %v3887_v41 }
 0x5c0   : > { %v3603_v57 = vpop.f32.mrb[76].mxu0 }
 0x5c1   : > { %v3604_v5 = vpop.f32.mrb[77].mxu0 }
 0x5c2   : > { %v3605_v37 = vadd.f32 %v3604_v5, %v3603_v57  ;;  %v3606_v18 = vpop.f32.mrb[78].mxu0 }
 0x5c3   : > { %v3607_v13 = vpop.f32.mrb[79].mxu0 }
 0x5c4   : > { %v3281_v23 = vadd.f32 %v3605_v37, %v6025_v26  ;;  %v3608_v56 = vadd.f32 %v3607_v13, %v3606_v18 }
 0x5c6   : > { %3888 = vtanh.f32 %v3281_v23  ;;  %v3284_v50 = vadd.f32 %v3608_v56, %v6025_v26 }
 0x5c8   : > { %3890 = vtanh.f32 %v3284_v50 }
 0x5d0   : > { %v3889_v38 = vpop.eup %3888  ;;  %v3609_v53 = vpop.f32.mrb[80].mxu0 }
 0x5d1   : > { %3373 = vst [vmem:[%s6034_s28 + $0xb0] sm:$0xff] %v3889_v38  ;;  %v3610_v39 = vpop.f32.mrb[81].mxu0 }
 0x5d2   : > { %v3891_v51 = vpop.eup %3890  ;;  %v3611_v36 = vadd.f32 %v3610_v39, %v3609_v53  ;;  %v3612_v20 = vpop.f32.mrb[82].mxu0 }
 0x5d3   : > { %3374 = vst [vmem:[%s6034_s28 + $0xb8] sm:$0xff] %v3891_v51  ;;  %v3613_v27 = vpop.f32.mrb[83].mxu0 }
 0x5d4   : > { %v3289_v10 = vadd.f32 %v3611_v36, %v6025_v26  ;;  %v3614_v52 = vadd.f32 %v3613_v27, %v3612_v20 }
 0x5d6   : > { %3892 = vtanh.f32 %v3289_v10  ;;  %v3292_v58 = vadd.f32 %v3614_v52, %v6025_v26 }
 0x5d8   : > { %3894 = vtanh.f32 %v3292_v58 }
 0x5da   : > { %v3615_v2 = vpop.f32.mrb[84].mxu0 }
 0x5db   : > { %v3616_v32 = vpop.f32.mrb[85].mxu0 }
 0x5dc   : > { %v3617_v48 = vadd.f32 %v3616_v32, %v3615_v2  ;;  %v3618_v29 = vpop.f32.mrb[86].mxu0 }
 0x5dd   : > { %v3619_v9 = vpop.f32.mrb[87].mxu0 }
 0x5de   : > { %v3297_v11 = vadd.f32 %v3617_v48, %v6025_v26  ;;  %v3620_v4 = vadd.f32 %v3619_v9, %v3618_v29 }
 0x5e0   : > { %v3893_v0 = vpop.eup %3892  ;;  %3896 = vtanh.f32 %v3297_v11  ;;  %v3300_v22 = vadd.f32 %v3620_v4, %v6025_v26 }
 0x5e1   : > { %3375 = vst [vmem:[%s6034_s28 + $0xc0] sm:$0xff] %v3893_v0 }
 0x5e2   : > { %v3895_v54 = vpop.eup %3894  ;;  %3898 = vtanh.f32 %v3300_v22  ;;  %v3621_v40 = vpop.f32.mrb[88].mxu0 }
 0x5e3   : > { %3376 = vst [vmem:[%s6034_s28 + $0xc8] sm:$0xff] %v3895_v54  ;;  %v3622_v45 = vpop.f32.mrb[89].mxu0 }
 0x5e4   : > { %v3623_v34 = vadd.f32 %v3622_v45, %v3621_v40  ;;  %v3624_v1 = vpop.f32.mrb[90].mxu0 }
 0x5e5   : > { %v3625_v12 = vpop.f32.mrb[91].mxu0 }
 0x5e6   : > { %v3305_v3 = vadd.f32 %v3623_v34, %v6025_v26  ;;  %v3626_v21 = vadd.f32 %v3625_v12, %v3624_v1 }
 0x5e8   : > { %3900 = vtanh.f32 %v3305_v3  ;;  %v3308_v30 = vadd.f32 %v3626_v21, %v6025_v26 }
 0x5ea   : > { %v3897_v28 = vpop.eup %3896  ;;  %3902 = vtanh.f32 %v3308_v30 }
 0x5eb   : > { %3377 = vst [vmem:[%s6034_s28 + $0xd0] sm:$0xff] %v3897_v28 }
 0x5ec   : > { %v3899_v8 = vpop.eup %3898  ;;  %v3627_v63 = vpop.f32.mrb[92].mxu0 }
 0x5ed   : > { %3378 = vst [vmem:[%s6034_s28 + $0xd8] sm:$0xff] %v3899_v8  ;;  %v3628_v43 = vpop.f32.mrb[93].mxu0 }
 0x5ee   : > { %v3629_v14 = vadd.f32 %v3628_v43, %v3627_v63  ;;  %v3630_v25 = vpop.f32.mrb[94].mxu0 }
 0x5ef   : > { %v3631_v49 = vpop.f32.mrb[95].mxu0 }
 0x5f0   : > { %v3313_v59 = vadd.f32 %v3629_v14, %v6025_v26  ;;  %v3632_v62 = vadd.f32 %v3631_v49, %v3630_v25 }
 0x5f2   : > { %v3901_v55 = vpop.eup %3900  ;;  %3904 = vtanh.f32 %v3313_v59  ;;  %v3316_v6 = vadd.f32 %v3632_v62, %v6025_v26 }
 0x5f3   : > { %3379 = vst [vmem:[%s6034_s28 + $0xe0] sm:$0xff] %v3901_v55 }
 0x5f4   : > { %v3903_v7 = vpop.eup %3902  ;;  %3906 = vtanh.f32 %v3316_v6 }
 0x5f5   : > { %3380 = vst [vmem:[%s6034_s28 + $0xe8] sm:$0xff] %v3903_v7 }
 0x5fc   : > { %v3905_v42 = vpop.eup %3904 }
 0x5fd   : > { %3381 = vst [vmem:[%s6034_s28 + $0xf0] sm:$0xff] %v3905_v42 }
 0x5fe   : > { %v3907_v44 = vpop.eup %3906 }
 0x5ff   : > { %3382 = vst [vmem:[%s6034_s28 + $0xf8] sm:$0xff] %v3907_v44 }
 0x600 PF: > { %s23_s25 = sadd.s32 1, %s3914_s25  }
 0x601   : > { %p20_p4 = scmp.ge.s32.totalorder %s23_s25, 4  }
 0x603   :  { %22 = sbr.rel (!%p20_p4) target bundleno = 1 (0x1), region = 102 }

</bundles_post_ra>
